<compile_context>
chip_gen: v5e
topology: v5e:2x2
jax: 0.10.0
libtpu: 0.0.40
codegen_flags: <defaults>
</compile_context>

<pallas_src>
import math
import numpy as np
import jax
import jax.numpy as jnp
from jax.experimental import pallas as pl
from jax.experimental.pallas import tpu as pltpu


# ----------------------------------------------------------------------------
# Butterfly permutation (direct translation of _butterfly_permutation)
# ----------------------------------------------------------------------------
def butterfly_permutation(num_channels: int, cardinality: int, depth: int) -> np.ndarray:
    wing_size = 2 ** depth
    groups = [
        index + wing_size
        if (index % (2 * wing_size)) / (2 * wing_size) < 0.5
        else index - wing_size
        for index in range(cardinality)
    ]
    group_size = num_channels // cardinality
    indices = []
    for group in groups:
        indices.extend([group * group_size + index for index in range(group_size)])
    return np.asarray(indices, dtype=np.int32)


# ----------------------------------------------------------------------------
# Small helpers
# ----------------------------------------------------------------------------
def _round_up(x: int, m: int) -> int:
    return (x + m - 1) // m * m


def _pick_th(Ho: int, Wo: int, c2: int) -> int:
    """Largest divisor `th` of Ho with th*Wo a sublane multiple and a bounded
    f32 accumulator; falls back to whole-image tiles (block == full extent,
    which satisfies the (8,128) rule via the 'equal full dim' escape)."""
    row_budget = max(Wo, min(2048, (16 << 20) // max(1, 4 * c2)))
    best = None
    for th in range(1, Ho + 1):
        if Ho % th:
            continue
        tp = th * Wo
        if tp % 8 == 0 and tp <= row_budget:
            best = th
    return best if best is not None else Ho


def _vmem_limit(need_bytes: int) -> int:
    # Derived from tile footprint; capped so it is valid on v7x (64 MiB phys).
    return int(min(max(32 << 20, 2 * int(need_bytes) + (8 << 20)), 56 << 20))


def weight_blockdiag(w_oihw, groups, Cin):
    """PyTorch grouped Conv2d weight [Cout, Cin/g, kh, kw] -> dense block-diagonal
    matmul weight [kh*kw*Cin, Cout] in (ky, kx, cin) patch ordering."""
    Cout, Cin_g, kh, kw = w_oihw.shape
    Cout_g = Cout // groups
    w = jnp.transpose(w_oihw, (2, 3, 1, 0))                         # [kh,kw,Cin_g,Cout]
    W = jnp.zeros((kh, kw, Cin, Cout), w_oihw.dtype)
    for g in range(groups):
        W = W.at[:, :, g * Cin_g:(g + 1) * Cin_g,
                 g * Cout_g:(g + 1) * Cout_g].set(
            w[:, :, :, g * Cout_g:(g + 1) * Cout_g])
    return W.reshape(kh * kw * Cin, Cout)


# ----------------------------------------------------------------------------
# Kernel 1: in-kernel im2col conv (body||wing fused) + per-tile BN partial sums
# ----------------------------------------------------------------------------
def make_conv_stats_kernel(k, stride, th, Wo, Cin, Cout):
    C2 = 2 * Cout
    tp = th * Wo
    row_span = (th - 1) * stride + 1
    col_span = (Wo - 1) * stride + 1
    slab_rows = (th - 1) * stride + k

    def kernel(x_ref, w_ref, yb_ref, yw_ref, s_ref, sq_ref):
        # x_ref : (1, Hp, Wp, Cin) bf16  zero-padded NHWC image for sample n
        # w_ref : (k*k, Cin, 2C)   bf16  per-tap fused [body | wing(perm)] weights
        # yb/yw : (1, tp, C)       bf16  raw conv outputs for this row tile
        # s/sq  : (1, 1, 2C)       f32   per-tile partial BN sums (parallel-safe)
        h = pl.program_id(1)
        r0 = h * (th * stride)
        slab = x_ref[0, pl.ds(r0, slab_rows), :, :]        # (slab_rows, Wp, Cin)

        acc = jnp.zeros((tp, C2), jnp.float32)
        for ky in range(k):                                # static unroll: k*k taps
            rows = slab[ky:ky + row_span]
            if stride > 1:
                # TODO(synk): stride>1 path uses strided value slices; only the
                # stride==1 path is exercised/tuned here.
                rows = rows[::stride]
            for kx in range(k):
                cols = rows[:, kx:kx + col_span, :]
                if stride > 1:
                    cols = cols[:, ::stride, :]
                lhs = cols.reshape(tp, Cin)
                acc = acc + jnp.dot(lhs, w_ref[ky * k + kx],
                                    preferred_element_type=jnp.float32)

        yb_ref[0] = acc[:, :Cout].astype(yb_ref.dtype)
        yw_ref[0] = acc[:, Cout:].astype(yw_ref.dtype)

        s_ref[0] = jnp.sum(acc, axis=0, keepdims=True)
        sq_ref[0] = jnp.sum(acc * acc, axis=0, keepdims=True)

    return kernel


# ----------------------------------------------------------------------------
# Kernel 2: fused BN affine + ReLU on both branches + butterfly add (pure VPU)
# ----------------------------------------------------------------------------
def bn_relu_add_kernel(yb_ref, yw_ref, sb_ref, bb_ref, sw_ref, bw_ref, o_ref):
    zb = yb_ref[...].astype(jnp.float32) * sb_ref[...] + bb_ref[...]
    zw = yw_ref[...].astype(jnp.float32) * sw_ref[...] + bw_ref[...]
    o_ref[...] = (jnp.maximum(zb, 0.0) + jnp.maximum(zw, 0.0)).astype(o_ref.dtype)


# ----------------------------------------------------------------------------
# Wrapper: full ButterflyConvStep forward
# ----------------------------------------------------------------------------
def butterfly_conv_step(x_nchw, w_body, w_wing, perm, *,
                        stride, padding, groups, eps=1e-5):
    N, Cin, H, W = x_nchw.shape
    Cout, _, k, _ = w_body.shape
    C2 = 2 * Cout

    Ho = (H + 2 * padding - k) // stride + 1
    Wo = (W + 2 * padding - k) // stride + 1
    Q = Ho * Wo
    P = N * Q

    # NHWC + spatial zero pad: one cheap pass, replaces the k*k im2col blow-up.
    x = jnp.transpose(x_nchw, (0, 2, 3, 1))
    x = jnp.pad(x, ((0, 0), (padding, padding), (padding, padding), (0, 0)))
    x = x.astype(jnp.bfloat16)
    Hp, Wp = int(x.shape[1]), int(x.shape[2])

    # Fused per-tap weights: block-diagonal groups, [body | wing], wing columns
    # pre-permuted (BN with gamma=1, beta=0 commutes with a channel permutation).
    Wb = weight_blockdiag(w_body, groups, Cin)
    Ww = weight_blockdiag(w_wing, groups, Cin)[:, perm]
    w_taps = jnp.concatenate([Wb, Ww], axis=1).astype(jnp.bfloat16)
    w_taps = w_taps.reshape(k * k, Cin, C2)                    # (ky,kx) major order

    th = _pick_th(Ho, Wo, C2)
    n_ht = Ho // th
    tp = th * Wo
    T = N * n_ht

    kernel1 = make_conv_stats_kernel(k, stride, th, Wo, Cin, Cout)
    k1_need = (2 * Hp * Wp * Cin * 2          # input image block (double-buffered)
               + 2 * k * k * Cin * C2 * 2     # fused per-tap weights
               + 2 * 2 * tp * Cout * 2        # y_body / y_wing blocks
               + 2 * tp * C2 * 4)             # f32 accumulator + tap temporaries

    yb, yw, s_p, sq_p = pl.pallas_call(
        kernel1,
        out_shape=(
            jax.ShapeDtypeStruct((N, Q, Cout), jnp.bfloat16),
            jax.ShapeDtypeStruct((N, Q, Cout), jnp.bfloat16),
            jax.ShapeDtypeStruct((T, 1, C2), jnp.float32),
            jax.ShapeDtypeStruct((T, 1, C2), jnp.float32),
        ),
        grid=(N, n_ht),
        in_specs=[
            pl.BlockSpec((1, Hp, Wp, Cin), lambda n, h: (n, 0, 0, 0)),
            pl.BlockSpec((k * k, Cin, C2), lambda n, h: (0, 0, 0)),
        ],
        out_specs=(
            pl.BlockSpec((1, tp, Cout), lambda n, h: (n, h, 0)),
            pl.BlockSpec((1, tp, Cout), lambda n, h: (n, h, 0)),
            pl.BlockSpec((1, 1, C2), lambda n, h: (n * n_ht + h, 0, 0)),
            pl.BlockSpec((1, 1, C2), lambda n, h: (n * n_ht + h, 0, 0)),
        ),
        compiler_params=pltpu.CompilerParams(
            dimension_semantics=("parallel", "parallel"),
            vmem_limit_bytes=_vmem_limit(k1_need)),
    )(x, w_taps)

    # --- tiny XLA glue: reduce partial sums -> BN affine (training-mode BN) ---
    # NOTE: var = E[y^2] - E[y]^2 in f32 (clamped >= 0); adequate here, could be
    # shifted/centered for very large activations.
    s = jnp.sum(s_p, axis=0)                  # (1, 2C)
    sq = jnp.sum(sq_p, axis=0)
    inv_p = 1.0 / float(P)
    mean = s * inv_p
    var = jnp.maximum(sq * inv_p - mean * mean, 0.0)
    scale = jax.lax.rsqrt(var + eps)          # gamma = 1
    bias = -mean * scale                      # beta  = 0
    sb, sw = scale[:, :Cout], scale[:, Cout:]
    bb, bw = bias[:, :Cout], bias[:, Cout:]

    # --- lane-dense layout for the mem-bound BN+ReLU+add pass ----------------
    E = N * Q * Cout
    if Cout % 128 == 0:
        L, R = Cout, N * Q                    # already lane-dense
        yb2 = yb.reshape(R, L)
        yw2 = yw.reshape(R, L)
    elif 128 % Cout == 0 and E % 128 == 0:
        L, R = 128, E // 128                  # free reshape of contiguous buffers
        rep = 128 // Cout
        yb2 = yb.reshape(R, L)
        yw2 = yw.reshape(R, L)
        sb, bb = jnp.tile(sb, (1, rep)), jnp.tile(bb, (1, rep))
        sw, bw = jnp.tile(sw, (1, rep)), jnp.tile(bw, (1, rep))
    else:
        # TODO(synk): lane-dense path for Cout that neither divides nor is a
        # multiple of 128 (falls back to narrow C-lane blocks, still correct).
        L, R = Cout, N * Q
        yb2 = yb.reshape(R, L)
        yw2 = yw.reshape(R, L)

    tq_cap = max(8, ((8 << 20) // (8 * L)) // 8 * 8)   # ~8 MiB HBM traffic / step
    tq = min(_round_up(R, 8), tq_cap)
    R_pad = _round_up(R, tq)
    if R_pad != R:
        yb2 = jnp.pad(yb2, ((0, R_pad - R), (0, 0)))
        yw2 = jnp.pad(yw2, ((0, R_pad - R), (0, 0)))

    k2_need = 2 * (2 * tq * L * 2 + tq * L * 4) + 6 * L * 4
    out_flat = pl.pallas_call(
        bn_relu_add_kernel,
        out_shape=jax.ShapeDtypeStruct((R_pad, L), jnp.float32),
        grid=(R_pad // tq,),
        in_specs=[
            pl.BlockSpec((tq, L), lambda q: (q, 0)),
            pl.BlockSpec((tq, L), lambda q: (q, 0)),
            pl.BlockSpec((1, L), lambda q: (0, 0)),
            pl.BlockSpec((1, L), lambda q: (0, 0)),
            pl.BlockSpec((1, L), lambda q: (0, 0)),
            pl.BlockSpec((1, L), lambda q: (0, 0)),
        ],
        out_specs=pl.BlockSpec((tq, L), lambda q: (q, 0)),
        compiler_params=pltpu.CompilerParams(
            dimension_semantics=("parallel",),
            vmem_limit_bytes=_vmem_limit(k2_need)),
    )(yb2, yw2, sb, bb, sw, bw)

    out = out_flat[:R].reshape(N, Ho, Wo, Cout)
    # TODO(synk): keep NHWC downstream (or emit channel-major tiles from kernel
    # 2) to drop this final full-output transpose; kept for the NCHW contract.
    return jnp.transpose(out, (0, 3, 1, 2))


# ----------------------------------------------------------------------------
# Pure-JAX reference (mirrors the PyTorch forward, training-mode BN)
# ----------------------------------------------------------------------------
def ref_forward(x_nchw, w_body, w_wing, perm, groups, stride, pad, eps=1e-5):
    def convbn(x, w):
        y = jax.lax.conv_general_dilated(
            x, w, window_strides=(stride, stride),
            padding=[(pad, pad), (pad, pad)],
            dimension_numbers=('NCHW', 'OIHW', 'NCHW'),
            feature_group_count=groups,
            precision=jax.lax.Precision.HIGHEST)
        mean = jnp.mean(y, axis=(0, 2, 3), keepdims=True)
        var = jnp.mean((y - mean) ** 2, axis=(0, 2, 3), keepdims=True)
        y = (y - mean) / jnp.sqrt(var + eps)
        return jnp.maximum(y, 0.0)

    body = convbn(x_nchw, w_body)
    wing = convbn(x_nchw, w_wing)[:, perm]
    return body + wing


# ----------------------------------------------------------------------------
if __name__ == "__main__":
    # ButterflyConvStep(depth=0, in=8, out=8, k=3, stride=1, pad=1, cardinality=2)
    depth, Cin, Cout, k, stride, pad, card = 0, 8, 8, 3, 1, 1, 2
    N, H, W = 2, 16, 16

    key = jax.random.PRNGKey(0)
    kx, kb, kw = jax.random.split(key, 3)
    x = jax.random.normal(kx, (N, Cin, H, W), jnp.float32)

    # Deterministic Kaiming-normal-like init (fan_out, relu gain), bias-free convs.
    fan_out = Cout * k * k
    std = math.sqrt(2.0 / fan_out)
    w_body = std * jax.random.normal(kb, (Cout, Cin // card, k, k), jnp.float32)
    w_wing = std * jax.random.normal(kw, (Cout, Cin // card, k, k), jnp.float32)

    perm = butterfly_permutation(Cout, card, depth)

    out = butterfly_conv_step(x, w_body, w_wing, perm,
                              stride=stride, padding=pad, groups=card)
    out = jax.block_until_ready(out)

    ref = ref_forward(x, w_body, w_wing, perm, card, stride, pad)
    err = float(jnp.max(jnp.abs(out - ref)))
    assert out.shape == (N, Cout, H, W), out.shape
    assert err < 5e-2, f"max abs error too large: {err}"
    print("KERNEL_OK")
</pallas_src>

<mosaic_0001>
module attributes {stable_mosaic.version = 11 : i64} {
  func.func @kernel(%arg0: i32, %arg1: i32, %arg2: memref<1x18x18x8xbf16, #tpu.memory_space<vmem>>, %arg3: memref<9x8x16xbf16, #tpu.memory_space<vmem>>, %arg4: memref<1x256x8xbf16, #tpu.memory_space<vmem>>, %arg5: memref<1x256x8xbf16, #tpu.memory_space<vmem>>, %arg6: memref<1x1x16xf32, #tpu.memory_space<vmem>>, %arg7: memref<1x1x16xf32, #tpu.memory_space<vmem>>) attributes {dimension_semantics = [#tpu.dimension_semantics<parallel>, #tpu.dimension_semantics<parallel>], iteration_bounds = array<i64: 2, 1>, scalar_prefetch = 0 : i64, scratch_operands = 0 : i64, tpu.core_type = #tpu.core_type<tc>, window_params = [{transform_indices = @transform_0, window_bounds = array<i64: 1, 18, 18, 8>}, {pipeline_mode = #tpu.pipeline_mode<synchronous>, transform_indices = @transform_1, window_bounds = array<i64: 9, 8, 16>}, {transform_indices = @transform_2, window_bounds = array<i64: 1, 256, 8>}, {transform_indices = @transform_3, window_bounds = array<i64: 1, 256, 8>}, {transform_indices = @transform_4, window_bounds = array<i64: 1, 1, 16>}, {transform_indices = @transform_5, window_bounds = array<i64: 1, 1, 16>}]} {
    %c16_i32 = arith.constant 16 : i32
    %0 = arith.muli %arg1, %c16_i32 : i32
    %c0 = arith.constant 0 : index
    %1 = arith.index_cast %0 : i32 to index
    %c0_0 = arith.constant 0 : index
    %c0_1 = arith.constant 0 : index
    %2 = vector.load %arg2[%c0, %1, %c0_0, %c0_1] : memref<1x18x18x8xbf16, #tpu.memory_space<vmem>>, vector<1x18x18x8xbf16>
    %3 = vector.shape_cast %2 : vector<1x18x18x8xbf16> to vector<18x18x8xbf16>
    %cst = arith.constant 0.000000e+00 : f32
    %4 = vector.broadcast %cst : f32 to vector<256x16xf32>
    %5 = vector.extract_strided_slice %3 {offsets = [0, 0, 0], sizes = [16, 18, 8], strides = [1, 1, 1]} : vector<18x18x8xbf16> to vector<16x18x8xbf16>
    %6 = vector.extract_strided_slice %5 {offsets = [0, 0, 0], sizes = [16, 16, 8], strides = [1, 1, 1]} : vector<16x18x8xbf16> to vector<16x16x8xbf16>
    %7 = vector.shape_cast %6 : vector<16x16x8xbf16> to vector<256x8xbf16>
    %c0_2 = arith.constant 0 : index
    %c0_3 = arith.constant 0 : index
    %c0_4 = arith.constant 0 : index
    %8 = vector.load %arg3[%c0_2, %c0_3, %c0_4] : memref<9x8x16xbf16, #tpu.memory_space<vmem>>, vector<1x8x16xbf16>
    %9 = vector.shape_cast %8 : vector<1x8x16xbf16> to vector<8x16xbf16>
    %cst_5 = arith.constant dense<0.000000e+00> : vector<256x16xf32>
    %10 = tpu.matmul %7, %9, %cst_5 {dimension_numbers = #tpu.dot_dimension_numbers<[1], [0], [0], [1], [0, 0, 1, 1], [], []>} : vector<256x8xbf16>, vector<8x16xbf16>, vector<256x16xf32> -> vector<256x16xf32>
    %11 = arith.addf %4, %10 : vector<256x16xf32>
    %12 = vector.extract_strided_slice %5 {offsets = [0, 1, 0], sizes = [16, 16, 8], strides = [1, 1, 1]} : vector<16x18x8xbf16> to vector<16x16x8xbf16>
    %13 = vector.shape_cast %12 : vector<16x16x8xbf16> to vector<256x8xbf16>
    %c1 = arith.constant 1 : index
    %c0_6 = arith.constant 0 : index
    %c0_7 = arith.constant 0 : index
    %14 = vector.load %arg3[%c1, %c0_6, %c0_7] : memref<9x8x16xbf16, #tpu.memory_space<vmem>>, vector<1x8x16xbf16>
    %15 = vector.shape_cast %14 : vector<1x8x16xbf16> to vector<8x16xbf16>
    %cst_8 = arith.constant dense<0.000000e+00> : vector<256x16xf32>
    %16 = tpu.matmul %13, %15, %cst_8 {dimension_numbers = #tpu.dot_dimension_numbers<[1], [0], [0], [1], [0, 0, 1, 1], [], []>} : vector<256x8xbf16>, vector<8x16xbf16>, vector<256x16xf32> -> vector<256x16xf32>
    %17 = arith.addf %11, %16 : vector<256x16xf32>
    %18 = vector.extract_strided_slice %5 {offsets = [0, 2, 0], sizes = [16, 16, 8], strides = [1, 1, 1]} : vector<16x18x8xbf16> to vector<16x16x8xbf16>
    %19 = vector.shape_cast %18 : vector<16x16x8xbf16> to vector<256x8xbf16>
    %c2 = arith.constant 2 : index
    %c0_9 = arith.constant 0 : index
    %c0_10 = arith.constant 0 : index
    %20 = vector.load %arg3[%c2, %c0_9, %c0_10] : memref<9x8x16xbf16, #tpu.memory_space<vmem>>, vector<1x8x16xbf16>
    %21 = vector.shape_cast %20 : vector<1x8x16xbf16> to vector<8x16xbf16>
    %cst_11 = arith.constant dense<0.000000e+00> : vector<256x16xf32>
    %22 = tpu.matmul %19, %21, %cst_11 {dimension_numbers = #tpu.dot_dimension_numbers<[1], [0], [0], [1], [0, 0, 1, 1], [], []>} : vector<256x8xbf16>, vector<8x16xbf16>, vector<256x16xf32> -> vector<256x16xf32>
    %23 = arith.addf %17, %22 : vector<256x16xf32>
    %24 = vector.extract_strided_slice %3 {offsets = [1, 0, 0], sizes = [16, 18, 8], strides = [1, 1, 1]} : vector<18x18x8xbf16> to vector<16x18x8xbf16>
    %25 = vector.extract_strided_slice %24 {offsets = [0, 0, 0], sizes = [16, 16, 8], strides = [1, 1, 1]} : vector<16x18x8xbf16> to vector<16x16x8xbf16>
    %26 = vector.shape_cast %25 : vector<16x16x8xbf16> to vector<256x8xbf16>
    %c3 = arith.constant 3 : index
    %c0_12 = arith.constant 0 : index
    %c0_13 = arith.constant 0 : index
    %27 = vector.load %arg3[%c3, %c0_12, %c0_13] : memref<9x8x16xbf16, #tpu.memory_space<vmem>>, vector<1x8x16xbf16>
    %28 = vector.shape_cast %27 : vector<1x8x16xbf16> to vector<8x16xbf16>
    %cst_14 = arith.constant dense<0.000000e+00> : vector<256x16xf32>
    %29 = tpu.matmul %26, %28, %cst_14 {dimension_numbers = #tpu.dot_dimension_numbers<[1], [0], [0], [1], [0, 0, 1, 1], [], []>} : vector<256x8xbf16>, vector<8x16xbf16>, vector<256x16xf32> -> vector<256x16xf32>
    %30 = arith.addf %23, %29 : vector<256x16xf32>
    %31 = vector.extract_strided_slice %24 {offsets = [0, 1, 0], sizes = [16, 16, 8], strides = [1, 1, 1]} : vector<16x18x8xbf16> to vector<16x16x8xbf16>
    %32 = vector.shape_cast %31 : vector<16x16x8xbf16> to vector<256x8xbf16>
    %c4 = arith.constant 4 : index
    %c0_15 = arith.constant 0 : index
    %c0_16 = arith.constant 0 : index
    %33 = vector.load %arg3[%c4, %c0_15, %c0_16] : memref<9x8x16xbf16, #tpu.memory_space<vmem>>, vector<1x8x16xbf16>
    %34 = vector.shape_cast %33 : vector<1x8x16xbf16> to vector<8x16xbf16>
    %cst_17 = arith.constant dense<0.000000e+00> : vector<256x16xf32>
    %35 = tpu.matmul %32, %34, %cst_17 {dimension_numbers = #tpu.dot_dimension_numbers<[1], [0], [0], [1], [0, 0, 1, 1], [], []>} : vector<256x8xbf16>, vector<8x16xbf16>, vector<256x16xf32> -> vector<256x16xf32>
    %36 = arith.addf %30, %35 : vector<256x16xf32>
    %37 = vector.extract_strided_slice %24 {offsets = [0, 2, 0], sizes = [16, 16, 8], strides = [1, 1, 1]} : vector<16x18x8xbf16> to vector<16x16x8xbf16>
    %38 = vector.shape_cast %37 : vector<16x16x8xbf16> to vector<256x8xbf16>
    %c5 = arith.constant 5 : index
    %c0_18 = arith.constant 0 : index
    %c0_19 = arith.constant 0 : index
    %39 = vector.load %arg3[%c5, %c0_18, %c0_19] : memref<9x8x16xbf16, #tpu.memory_space<vmem>>, vector<1x8x16xbf16>
    %40 = vector.shape_cast %39 : vector<1x8x16xbf16> to vector<8x16xbf16>
    %cst_20 = arith.constant dense<0.000000e+00> : vector<256x16xf32>
    %41 = tpu.matmul %38, %40, %cst_20 {dimension_numbers = #tpu.dot_dimension_numbers<[1], [0], [0], [1], [0, 0, 1, 1], [], []>} : vector<256x8xbf16>, vector<8x16xbf16>, vector<256x16xf32> -> vector<256x16xf32>
    %42 = arith.addf %36, %41 : vector<256x16xf32>
    %43 = vector.extract_strided_slice %3 {offsets = [2, 0, 0], sizes = [16, 18, 8], strides = [1, 1, 1]} : vector<18x18x8xbf16> to vector<16x18x8xbf16>
    %44 = vector.extract_strided_slice %43 {offsets = [0, 0, 0], sizes = [16, 16, 8], strides = [1, 1, 1]} : vector<16x18x8xbf16> to vector<16x16x8xbf16>
    %45 = vector.shape_cast %44 : vector<16x16x8xbf16> to vector<256x8xbf16>
    %c6 = arith.constant 6 : index
    %c0_21 = arith.constant 0 : index
    %c0_22 = arith.constant 0 : index
    %46 = vector.load %arg3[%c6, %c0_21, %c0_22] : memref<9x8x16xbf16, #tpu.memory_space<vmem>>, vector<1x8x16xbf16>
    %47 = vector.shape_cast %46 : vector<1x8x16xbf16> to vector<8x16xbf16>
    %cst_23 = arith.constant dense<0.000000e+00> : vector<256x16xf32>
    %48 = tpu.matmul %45, %47, %cst_23 {dimension_numbers = #tpu.dot_dimension_numbers<[1], [0], [0], [1], [0, 0, 1, 1], [], []>} : vector<256x8xbf16>, vector<8x16xbf16>, vector<256x16xf32> -> vector<256x16xf32>
    %49 = arith.addf %42, %48 : vector<256x16xf32>
    %50 = vector.extract_strided_slice %43 {offsets = [0, 1, 0], sizes = [16, 16, 8], strides = [1, 1, 1]} : vector<16x18x8xbf16> to vector<16x16x8xbf16>
    %51 = vector.shape_cast %50 : vector<16x16x8xbf16> to vector<256x8xbf16>
    %c7 = arith.constant 7 : index
    %c0_24 = arith.constant 0 : index
    %c0_25 = arith.constant 0 : index
    %52 = vector.load %arg3[%c7, %c0_24, %c0_25] : memref<9x8x16xbf16, #tpu.memory_space<vmem>>, vector<1x8x16xbf16>
    %53 = vector.shape_cast %52 : vector<1x8x16xbf16> to vector<8x16xbf16>
    %cst_26 = arith.constant dense<0.000000e+00> : vector<256x16xf32>
    %54 = tpu.matmul %51, %53, %cst_26 {dimension_numbers = #tpu.dot_dimension_numbers<[1], [0], [0], [1], [0, 0, 1, 1], [], []>} : vector<256x8xbf16>, vector<8x16xbf16>, vector<256x16xf32> -> vector<256x16xf32>
    %55 = arith.addf %49, %54 : vector<256x16xf32>
    %56 = vector.extract_strided_slice %43 {offsets = [0, 2, 0], sizes = [16, 16, 8], strides = [1, 1, 1]} : vector<16x18x8xbf16> to vector<16x16x8xbf16>
    %57 = vector.shape_cast %56 : vector<16x16x8xbf16> to vector<256x8xbf16>
    %c8 = arith.constant 8 : index
    %c0_27 = arith.constant 0 : index
    %c0_28 = arith.constant 0 : index
    %58 = vector.load %arg3[%c8, %c0_27, %c0_28] : memref<9x8x16xbf16, #tpu.memory_space<vmem>>, vector<1x8x16xbf16>
    %59 = vector.shape_cast %58 : vector<1x8x16xbf16> to vector<8x16xbf16>
    %cst_29 = arith.constant dense<0.000000e+00> : vector<256x16xf32>
    %60 = tpu.matmul %57, %59, %cst_29 {dimension_numbers = #tpu.dot_dimension_numbers<[1], [0], [0], [1], [0, 0, 1, 1], [], []>} : vector<256x8xbf16>, vector<8x16xbf16>, vector<256x16xf32> -> vector<256x16xf32>
    %61 = arith.addf %55, %60 : vector<256x16xf32>
    %62 = vector.extract_strided_slice %61 {offsets = [0, 0], sizes = [256, 8], strides = [1, 1]} : vector<256x16xf32> to vector<256x8xf32>
    %63 = arith.truncf %62 : vector<256x8xf32> to vector<256x8xbf16>
    %c0_30 = arith.constant 0 : index
    %c0_31 = arith.constant 0 : index
    %c0_32 = arith.constant 0 : index
    %64 = vector.load %arg4[%c0_30, %c0_31, %c0_32] : memref<1x256x8xbf16, #tpu.memory_space<vmem>>, vector<1x256x8xbf16>
    %65 = vector.shape_cast %64 : vector<1x256x8xbf16> to vector<256x8xbf16>
    %66 = vector.shape_cast %63 : vector<256x8xbf16> to vector<1x256x8xbf16>
    tpu.vector_store %arg4[%c0_30, %c0_31, %c0_32], %66 {strides = array<i32>} : memref<1x256x8xbf16, #tpu.memory_space<vmem>>, vector<1x256x8xbf16>,
    %67 = vector.extract_strided_slice %61 {offsets = [0, 8], sizes = [256, 8], strides = [1, 1]} : vector<256x16xf32> to vector<256x8xf32>
    %68 = arith.truncf %67 : vector<256x8xf32> to vector<256x8xbf16>
    %c0_33 = arith.constant 0 : index
    %c0_34 = arith.constant 0 : index
    %c0_35 = arith.constant 0 : index
    %69 = vector.load %arg5[%c0_33, %c0_34, %c0_35] : memref<1x256x8xbf16, #tpu.memory_space<vmem>>, vector<1x256x8xbf16>
    %70 = vector.shape_cast %69 : vector<1x256x8xbf16> to vector<256x8xbf16>
    %71 = vector.shape_cast %68 : vector<256x8xbf16> to vector<1x256x8xbf16>
    tpu.vector_store %arg5[%c0_33, %c0_34, %c0_35], %71 {strides = array<i32>} : memref<1x256x8xbf16, #tpu.memory_space<vmem>>, vector<1x256x8xbf16>,
    %cst_36 = arith.constant dense<0.000000e+00> : vector<16xf32>
    %72 = vector.multi_reduction <add>, %61, %cst_36 [0] : vector<256x16xf32> to vector<16xf32>
    %73 = vector.shape_cast %72 : vector<16xf32> to vector<1x16xf32>
    %c0_37 = arith.constant 0 : index
    %c0_38 = arith.constant 0 : index
    %c0_39 = arith.constant 0 : index
    %74 = vector.load %arg6[%c0_37, %c0_38, %c0_39] : memref<1x1x16xf32, #tpu.memory_space<vmem>>, vector<1x1x16xf32>
    %75 = vector.shape_cast %74 : vector<1x1x16xf32> to vector<1x16xf32>
    %76 = vector.shape_cast %73 : vector<1x16xf32> to vector<1x1x16xf32>
    tpu.vector_store %arg6[%c0_37, %c0_38, %c0_39], %76 {strides = array<i32>} : memref<1x1x16xf32, #tpu.memory_space<vmem>>, vector<1x1x16xf32>,
    %77 = arith.mulf %61, %61 : vector<256x16xf32>
    %cst_40 = arith.constant dense<0.000000e+00> : vector<16xf32>
    %78 = vector.multi_reduction <add>, %77, %cst_40 [0] : vector<256x16xf32> to vector<16xf32>
    %79 = vector.shape_cast %78 : vector<16xf32> to vector<1x16xf32>
    %c0_41 = arith.constant 0 : index
    %c0_42 = arith.constant 0 : index
    %c0_43 = arith.constant 0 : index
    %80 = vector.load %arg7[%c0_41, %c0_42, %c0_43] : memref<1x1x16xf32, #tpu.memory_space<vmem>>, vector<1x1x16xf32>
    %81 = vector.shape_cast %80 : vector<1x1x16xf32> to vector<1x16xf32>
    %82 = vector.shape_cast %79 : vector<1x16xf32> to vector<1x1x16xf32>
    tpu.vector_store %arg7[%c0_41, %c0_42, %c0_43], %82 {strides = array<i32>} : memref<1x1x16xf32, #tpu.memory_space<vmem>>, vector<1x1x16xf32>,
    return
  }
  func.func @transform_0(%arg0: i32, %arg1: i32) -> (i32, i32, i32, i32) {
    %c0_i32 = arith.constant 0 : i32
    %c0_i32_0 = arith.constant 0 : i32
    %c0_i32_1 = arith.constant 0 : i32
    %c0_i32_2 = arith.constant 0 : i32
    return %arg0, %c0_i32, %c0_i32_0, %c0_i32_1 : i32, i32, i32, i32
  }
  func.func @transform_1(%arg0: i32, %arg1: i32) -> (i32, i32, i32) {
    %c0_i32 = arith.constant 0 : i32
    %c0_i32_0 = arith.constant 0 : i32
    %c0_i32_1 = arith.constant 0 : i32
    %c0_i32_2 = arith.constant 0 : i32
    return %c0_i32, %c0_i32_0, %c0_i32_1 : i32, i32, i32
  }
  func.func @transform_2(%arg0: i32, %arg1: i32) -> (i32, i32, i32) {
    %c0_i32 = arith.constant 0 : i32
    %c0_i32_0 = arith.constant 0 : i32
    return %arg0, %arg1, %c0_i32 : i32, i32, i32
  }
  func.func @transform_3(%arg0: i32, %arg1: i32) -> (i32, i32, i32) {
    %c0_i32 = arith.constant 0 : i32
    %c0_i32_0 = arith.constant 0 : i32
    return %arg0, %arg1, %c0_i32 : i32, i32, i32
  }
  func.func @transform_4(%arg0: i32, %arg1: i32) -> (i32, i32, i32) {
    %c1_i32 = arith.constant 1 : i32
    %0 = arith.muli %arg0, %c1_i32 : i32
    %1 = arith.addi %0, %arg1 : i32
    %c0_i32 = arith.constant 0 : i32
    %c0_i32_0 = arith.constant 0 : i32
    %c0_i32_1 = arith.constant 0 : i32
    return %1, %c0_i32, %c0_i32_0 : i32, i32, i32
  }
  func.func @transform_5(%arg0: i32, %arg1: i32) -> (i32, i32, i32) {
    %c1_i32 = arith.constant 1 : i32
    %0 = arith.muli %arg0, %c1_i32 : i32
    %1 = arith.addi %0, %arg1 : i32
    %c0_i32 = arith.constant 0 : i32
    %c0_i32_0 = arith.constant 0 : i32
    %c0_i32_1 = arith.constant 0 : i32
    return %1, %c0_i32, %c0_i32_0 : i32, i32, i32
  }
}

</mosaic_0001>

<bundles_post_ra>
// kernel: tpu_custom_call.1
= control target key start
LH: loop header
LB: loop body
LE: loop exit
PB: predicated region body
PF: predicated region fallthrough
CT: control target
= control target key end

     0   :  { %11 = vsyncpa [#allocation3], 0  ;;  %s4912_s0 = inlined_call_operand.vmem [shape: bf16[2,18,18,8], index: 0, kind: input, shape index: {}]   ;;  %s4913_s1 = inlined_call_operand.vmem [shape: bf16[9,8,16], index: 1, kind: input, shape index: {}]   ;;  %s4914_s2 = inlined_call_operand.vmem [shape: bf16[2,256,8], index: 2, kind: output, shape index: {0}]   ;;  %s4915_s3 = inlined_call_operand.vmem [shape: bf16[2,256,8], index: 3, kind: output, shape index: {1}]   ;;  %s4916_s4 = inlined_call_operand.hbm [shape: f32[2,1,16], index: 4, kind: output, shape index: {2}]   ;;  %s4917_s5 = inlined_call_operand.hbm [shape: f32[2,1,16], index: 5, kind: output, shape index: {3}]  }
   0x1   :  { %13 = vsyncpa [#allocation3 + $0x1], 0 }
   0x2   :  { %14 = vsyncpa [#allocation5], 0 }
   0x3   :  { %16 = vsyncpa [#allocation5 + $0x1], 0  ;;  %s3484_s18 = smov 0   ;;  %s3486_s19 = smov 0  }
   0x4   :  { %s3488_s20 = smov 0   ;;  %s3490_s21 = smov 0  }
   0x5   :  { %s3492_s22 = smov 0   ;;  %s3494_s23 = smov 0  }
   0x6 LB: > { %s2994_s24 = sadd.s32 4294967295, %s3451_s23   ;;  %s2995_s25 = sadd.s32 4294967294, %s3451_s23   ;;  %s3451_s23 = sphi %s3494_s23, %s22_s23   ;;  %s3447_s22 = sphi %s3492_s22, %s5062_s22   ;;  %s3443_s21 = sphi %s3490_s21, %s5061_s21   ;;  %s3439_s20 = sphi %s3488_s20, %s5060_s20   ;;  %s3435_s19 = sphi %s3486_s19, %s5059_s19   ;;  %s3431_s18 = sphi %s3484_s18, %s5058_s18  }
   0x7   : > { %s34_s26 = sadd.s32 1, %s3447_s22  ;;  %s146_s27 = sadd.s32 1, %s3439_s20 }
   0x8   : > { %p36_p0 = scmp.ge.s32.totalorder %s34_s26, 2  ;;  %p156_p1 = scmp.ne.s32.totalorder %s3439_s20, %s3435_s19 }
   0x9   : > { %p157_p2 = scmp.eq.s32.totalorder %s2994_s24, 1  ;;  %p162_p3 = scmp.ne.s32.totalorder %s3435_s19, %s3431_s18 }
   0xa   : > { %s5064_s26 = smov (%p36_p0, %s34_s26), 0  ;;  %p163_p5 = scmp.eq.s32.totalorder %s2995_s25, 1 }
   0xb   : > { %p3524_p4 = por %p157_p2, %p156_p1  ;;  %s143_s29 = ssub.s32 %s3447_s22, %s5064_s26 }
   0xc   : > { %p2998_p6 = scmp.ge.s32.totalorder %s3451_s23, 1  ;;  %p144_p7 = scmp.eq.s32.totalorder %s143_s29, 0 }
   0xd   : > { %p3531_p8 = por %p163_p5, %p162_p3  ;;  %p220_p9 = scmp.lt.s32.totalorder %s3451_s23, 3 }
   0xe   : > { %s3537_s6 = scalar_select %p144_p7, %s3439_s20, %s146_s27  }
   0xf   : > { %p221_p10 = pnand %p2998_p6, %p220_p9 }
  0x11   : > { %224 = sbr.rel (%p221_p10) target bundleno = 883 (0x373), region = 28 }
  0x16   : > { %v3004_v0 = vld [vmem:[%s4913_s1 + $0x4] sm:$0xf]  ;;  %vm842_vm0 = vcmask 1043456   ;;  %p269_p11 = scmp.lt.s32.totalorder %s3443_s21, 1  ;;  %v3117_v2 = vld [vmem:[%s4913_s1 + $0x8] sm:$0xf]  ;;  %s2807_s12 = scalar_lea.hbm %s4916_s4, %s3443_s21 }
  0x17   : > { %v844_v1 = vsel %vm842_vm0, %v3004_v0, 0  ;;  %v1385_v3 = vsel %vm842_vm0, %v3117_v2, 0  ;;  %v3134_v4 = vld [vmem:[%s4913_s1 + $0xc] sm:$0xf]  ;;  %v355_v5 = vld [vmem:[%s4913_s1] sm:$0xf]  ;;  %s2821_s15 = scalar_lea.hbm %s4917_s5, %s3443_s21 }
  0x18   : > { %3268 = vmatpush.bf16.msra.mxu1 %v844_v1  ;;  %3269 = vmatpush.bf16.msra.mxu2 %v844_v1  ;;  %s3548_s11 = scalar_select %p269_p11, %s3443_s21, 1  ;;  %v3155_v6 = vld [vmem:[%s4913_s1 + $0x10] sm:$0xf]  ;;  %v1519_v7 = vsel %vm842_vm0, %v3134_v4, 0  ;;  %v1064_v8 = vsel %vm842_vm0, %v355_v5, 0  ;;  %vm793_vm4 = vcmask 64512  }
  0x19   : > { %3270 = vmatpush.bf16.msra.mxu3 %v844_v1  ;;  %853 = vmatpush.bf16.msra.mxu0 %v844_v1  ;;  %v1675_v9 = vsel %vm842_vm0, %v3155_v6, 0  ;;  %vm356_vm1 = vsmask.f32 3328  ;;  %vm357_vm2 = vsmask.f32 7440  ;;  %vm1171_vm5 = vcmask 1042432  }
  0x1a   : > { %s3271_s24 = smul.u32 216, %s3548_s11  ;;  %vm3594_vm3 = vmor %vm356_vm1, %vm357_vm2  ;;  %vm1172_vm6 = vcmask 1046532   ;;  %s3248_s16 = sshll.u32 %s3548_s11, 7  ;;  %vm2400_vm8 = vcmask 60416   ;;  %vm2593_vm9 = vcmask 130048   ;;  %vm2663_vm10 = vcmask 122880  }
  0x1b   : > { %vm3897_vm7 = vmor %vm1171_vm5, %vm1172_vm6  ;;  %s4490_s25 = scalar_lea.vmem %s4914_s2, %s3248_s16  ;;  %s3453_s27 = smov 120  }
  0x1c   : > { %1394 = vmatpush.bf16.msrb.mxu2 %v1385_v3  ;;  %1073 = vmatpush.bf16.msrb.mxu1 %v1064_v8  ;;  %s3567_s29 = scalar_lea.vmem %s4912_s0, %s3271_s24  ;;  %s4668_s8 = scalar_lea.vmem %s4915_s3, %s3248_s16 }
  0x1d   : > { %1528 = vmatpush.bf16.msrb.mxu3 %v1519_v7  ;;  %1684 = vmatpush.bf16.msrb.mxu0 %v1675_v9  ;;  %v3570_v10 = vld [vmem:[%s3567_s29 + $0x30] sm:$0xf]  ;;  %v3573_v11 = vld [vmem:[%s3567_s29 + $0x34] sm:$0xf]  ;;  %v3576_v12 = vld [vmem:[%s3567_s29 + $0x38] sm:$0x1] }
  0x1e   : > { %v456_v13 = vshrl.u32 %v3570_v10, 16  ;;  %v459_v14 = vshll.u32 %v3570_v10, 16  ;;  %v465_v15 = vshll.u32 %v3573_v11, 16  ;;  %v469_v16 = vshrl.u32 %v3573_v11, 16  ;;  %v325_v17 = vld [vmem:[%s3567_s29 + $0x60] sm:$0xf] }
  0x1f   : > { %v475_v18 = vshll.u32 %v3576_v12, 16  ;;  %v3585_v19 = vld [vmem:[%s3567_s29 + $0x64] sm:$0xf]  ;;  %v327_v20 = vld [vmem:[%s3567_s29 + $0x68] sm:$0x1]  ;;  %v552_v21 = vshrl.u32 %v325_v17, 16 }
  0x20   : > { %v458_v22 = vrot.slane %v456_v13, 4  ;;  %v461_v23 = vrot.slane %v459_v14, 5  ;;  %v467_v24 = vrot.slane %v465_v15, 5  ;;  %v471_v25 = vrot.slane %v469_v16, 4  ;;  %v337_v26 = vld [vmem:[%s3567_s29 + $0x90] sm:$0xf] }
  0x21   : > { %v477_v27 = vrot.slane %v475_v18, 5  ;;  %v554_v28 = vrot.slane %v552_v21, 4  ;;  %v555_v29 = vshll.u32 %v325_v17, 16  ;;  %v561_v30 = vshll.u32 %v3585_v19, 16  ;;  %v338_v35 = vld [vmem:[%s3567_s29 + $0x94] sm:$0xf] }
  0x22   : > { %v462_v31 = vor.u32 %v461_v23, %v458_v22  ;;  %v472_v32 = vor.u32 %v471_v25, %v467_v24  ;;  %v565_v33 = vshrl.u32 %v3585_v19, 16  ;;  %v571_v34 = vshll.u32 %v327_v20, 16  ;;  %v339_v45 = vld [vmem:[%s3567_s29 + $0x98] sm:$0x1]  ;;  %v3604_v61 = vld [vmem:[%s3567_s29] sm:$0xf] }
  0x23   : > { %v557_v37 = vrot.slane %v555_v29, 5  ;;  %v563_v38 = vrot.slane %v561_v30, 5  ;;  %v648_v39 = vshrl.u32 %v337_v26, 16  ;;  %v651_v47 = vshll.u32 %v337_v26, 16  ;;  %v3611_v1 = vld [vmem:[%s3567_s29 + $0x4] sm:$0xf] }
  0x24   : > { %v463_v40 = vrot.slane %v462_v31, 4  ;;  %v473_v41 = vrot.slane %v472_v32, 4  ;;  %v567_v42 = vrot.slane %v565_v33, 4  ;;  %v573_v43 = vrot.slane %v571_v34, 5  ;;  %v3614_v2 = vld [vmem:[%s3567_s29 + $0x8] sm:$0x1] }
  0x25   : > { %v558_v44 = vor.u32 %v557_v37, %v554_v28  ;;  %v650_v46 = vrot.slane %v648_v39, 4  ;;  %v657_v48 = vshll.u32 %v338_v35, 16  ;;  %v661_v52 = vshrl.u32 %v338_v35, 16  ;;  %v3630_v23 = vld [vmem:[%s3567_s29 + $0x3c] sm:$0xf]  ;;  %s4810_s11 = sand.u32 1, %s3435_s19  }
  0x26   : > { %v468_v49 = vsel %vm3594_vm3, %v463_v40, %v467_v24  ;;  %v478_v50 = vsel %vm3594_vm3, %v473_v41, %v477_v27  ;;  %v568_v51 = vor.u32 %v567_v42, %v563_v38  ;;  %v653_v56 = vrot.slane %v651_v47, 5  ;;  %v3633_v24 = vld [vmem:[%s3567_s29 + $0x40] sm:$0xf]  ;;  %v3638_v29 = vld [vmem:[%s3567_s29 + $0x44] sm:$0x1]  ;;  %s262_s16 = scalar_lea.vmem [#allocation2], %s4810_s11 }
  0x27   : > { %v753_v53 = vunpack.c.l.b16 %v468_v49  ;;  %v754_v54 = vunpack.c.l.b16 %v478_v50  ;;  %v559_v55 = vrot.slane %v558_v44, 4  ;;  %v659_v58 = vrot.slane %v657_v48, 5  ;;  %v3653_v47 = vld [vmem:[%s3567_s29 + $0x70] sm:$0xf]  ;;  %s4821_s17 = sshll.u32 %s262_s16, 4  ;;  %s4823_s24 = sshll.u32 %s2807_s12, 4  ;;  %s2810_s17 = int_to_ptr.vmem [resolvable:$true] %s4821_s17  ;;  %s2812_s24 = int_to_ptr.hbm [resolvable:$true] %s4823_s24 }
  0x28   : > { %v569_v57 = vrot.slane %v568_v51, 4  ;;  %v663_v59 = vrot.slane %v661_v52, 4  ;;  %v667_v60 = vshll.u32 %v339_v45, 16  ;;  %v654_v0 = vor.u32 %v653_v56, %v650_v46  ;;  %v3660_v51 = vld [vmem:[%s3567_s29 + $0x74] sm:$0x1]  ;;  %s2786_s21 = scalar_lea.sflag [#allocation3], %s4810_s11 }
  0x29   : > { %v3606_v62 = vpack.c.b16 %v754_v54, %v753_v53  ;;  %v564_v63 = vsel %vm3594_vm3, %v559_v55, %v563_v38  ;;  %v360_v9 = vshrl.u32 %v3604_v61, 16  ;;  %v363_v13 = vshll.u32 %v3604_v61, 16  ;;  %v3646_v38 = vld [vmem:[%s3567_s29 + $0x6c] sm:$0xf]  ;;  %s3355_s7 = sshra.s32 %s2812_s24, 4  ;;  %s3361_s13 = scalar_lea.hbm %s4916_s4, 2  ;;  %s3356_s7 = int_to_ptr.hbm [resolvable:$true] %s3355_s7 }
  0x2a   : > { %v574_v3 = vsel %vm3594_vm3, %v569_v57, %v573_v43  ;;  %v761_v4 = vunpack.c.l.b16 %v564_v63  ;;  %v664_v5 = vor.u32 %v663_v59, %v659_v58  ;;  %v669_v6 = vrot.slane %v667_v60, 5  ;;  %s3357_s9 = scalar_lea.hbm %s3356_s7, 1  ;;  %p3362_p1 = scmp.lt.s32.totalorder %s3356_s7, %s4916_s4 }
  0x2b   : > { %3009 = vmatmul.msk.bf16.vlgmr.msra.gmra.mxu1 %vm793_vm4, %v3606_v62  ;;  %v762_v7 = vunpack.c.l.b16 %v574_v3  ;;  %v655_v8 = vrot.slane %v654_v0, 4  ;;  %v369_v15 = vshll.u32 %v3611_v1, 16  ;;  %v373_v16 = vshrl.u32 %v3611_v1, 16  ;;  %p3358_p12 = scmp.ne.s32.totalorder %s3356_s7, %s3357_s9  ;;  %p3363_p2 = scmp.lt.s32.totalorder %s3361_s13, %s3357_s9 }
  0x2c   : > { %v665_v14 = vrot.slane %v664_v5, 4  ;;  %v379_v17 = vshll.u32 %v3614_v2, 16  ;;  %v362_v21 = vrot.slane %v360_v9, 4  ;;  %v365_v22 = vrot.slane %v363_v13, 5  ;;  %v340_v5 = vld [vmem:[%s3567_s29 + $0x9c] sm:$0xf] }
  0x2d   : > { %v3625_v18 = vpack.c.b16 %v762_v7, %v761_v4  ;;  %v660_v20 = vsel %vm3594_vm3, %v655_v8, %v659_v58  ;;  %v371_v27 = vrot.slane %v369_v15, 5  ;;  %v375_v28 = vrot.slane %v373_v16, 4  ;;  %v341_v9 = vld [vmem:[%s3567_s29 + $0xa0] sm:$0xf]  ;;  %p3359_p13 = pnand %p3358_p12, %p3524_p4  ;;  %p3364_p3 = por %p3363_p2, %p3362_p1 }
  0x2e   : > { %v670_v25 = vsel %vm3594_vm3, %v665_v14, %v669_v6  ;;  %v769_v26 = vunpack.c.l.b16 %v660_v20  ;;  %v366_v31 = vor.u32 %v365_v22, %v362_v21  ;;  %v381_v32 = vrot.slane %v379_v17, 5  ;;  %v342_v17 = vld [vmem:[%s3567_s29 + $0xa4] sm:$0x1] }
  0x2f   : > { %4962 = vst [vmem:[#allocation8_spill] sm:$0xff] %v3625_v18  ;;  %3013 = vmatmul.msk.bf16.vlgmr.msra.gmra.mxu2 %vm793_vm4, %v3625_v18  ;;  %v770_v30 = vunpack.c.l.b16 %v670_v25  ;;  %v376_v33 = vor.u32 %v375_v28, %v371_v27  ;;  %v480_v34 = vshrl.u32 %v3630_v23, 16  ;;  %v483_v35 = vshll.u32 %v3630_v23, 16  ;;  %p3360_p0 = pneg %p3359_p13 }
  0x30   : > { %v489_v37 = vshll.u32 %v3633_v24, 16  ;;  %v367_v40 = vrot.slane %v366_v31, 4  ;;  %v493_v41 = vshrl.u32 %v3633_v24, 16  ;;  %v499_v42 = vshll.u32 %v3638_v29, 16 }
  0x31   : > { %v3648_v39 = vpack.c.b16 %v770_v30, %v769_v26  ;;  %v377_v43 = vrot.slane %v376_v33, 4  ;;  %v482_v44 = vrot.slane %v480_v34, 4  ;;  %v485_v45 = vrot.slane %v483_v35, 5  ;;  %v3678_v35 = vld [vmem:[%s3567_s29 + $0xc] sm:$0xf]  ;;  %p3365_p5 = pnand %p3364_p3, %p3360_p0 }
  0x32   : > { %v491_v46 = vrot.slane %v489_v37, 5  ;;  %v372_v48 = vsel %vm3594_vm3, %v367_v40, %v371_v27  ;;  %v495_v49 = vrot.slane %v493_v41, 4  ;;  %v501_v50 = vrot.slane %v499_v42, 5 }
  0x33   : > { %4963 = vst [vmem:[#allocation9_spill] sm:$0xff] %v3648_v39  ;;  %3017 = vmatmul.msk.bf16.vlgmr.msra.gmra.mxu3 %vm793_vm4, %v3648_v39  ;;  %v576_v52 = vshrl.u32 %v3646_v38, 16  ;;  %v382_v53 = vsel %vm3594_vm3, %v377_v43, %v381_v32  ;;  %v745_v54 = vunpack.c.l.b16 %v372_v48  ;;  %v486_v55 = vor.u32 %v485_v45, %v482_v44  ;;  %v3685_v43 = vld [vmem:[%s3567_s29 + $0x10] sm:$0xf]  ;;  %v3688_v48 = vld [vmem:[%s3567_s29 + $0x14] sm:$0x1] }
  0x34   : > { %v579_v56 = vshll.u32 %v3646_v38, 16  ;;  %v746_v57 = vunpack.c.l.b16 %v382_v53  ;;  %v496_v58 = vor.u32 %v495_v49, %v491_v46  ;;  %v585_v60 = vshll.u32 %v3653_v47, 16  ;;  %v3865_v39 = vld [vmem:[%s3567_s29 + $0x2c] sm:$0x1] }
  0x35   : > { %v578_v59 = vrot.slane %v576_v52, 4  ;;  %v487_v63 = vrot.slane %v486_v55, 4  ;;  %v589_v3 = vshrl.u32 %v3653_v47, 16  ;;  %v595_v4 = vshll.u32 %v3660_v51, 16 }
  0x36   : > { %v581_v0 = vrot.slane %v579_v56, 5  ;;  %v777_v6 = vpack.c.b16 %v746_v57, %v745_v54  ;;  %v497_v7 = vrot.slane %v496_v58, 4  ;;  %v587_v8 = vrot.slane %v585_v60, 5  ;;  %v3698_v58 = vld [vmem:[%s3567_s29 + $0x48] sm:$0xf] }
  0x37   : > { %v492_v13 = vsel %vm3594_vm3, %v487_v63, %v491_v46  ;;  %v591_v15 = vrot.slane %v589_v3, 4  ;;  %v597_v16 = vrot.slane %v595_v4, 5  ;;  %v672_v22 = vshrl.u32 %v340_v5, 16  ;;  %v3703_v3 = vld [vmem:[%s3567_s29 + $0x4c] sm:$0xf] }
  0x38   : > { %v582_v14 = vor.u32 %v581_v0, %v578_v59  ;;  %3005 = vmatmul.msk.bf16.vlgmr.msra.gmra.mxu0 %vm793_vm4, %v777_v6  ;;  %v502_v20 = vsel %vm3594_vm3, %v497_v7, %v501_v50  ;;  %v755_v21 = vunpack.c.l.b16 %v492_v13  ;;  %v675_v25 = vshll.u32 %v340_v5, 16 }
  0x39   : > { %v756_v26 = vunpack.c.l.b16 %v502_v20  ;;  %v592_v28 = vor.u32 %v591_v15, %v587_v8  ;;  %v681_v30 = vshll.u32 %v341_v9, 16  ;;  %v674_v31 = vrot.slane %v672_v22, 4  ;;  %v3710_v15 = vld [vmem:[%s3567_s29 + $0x50] sm:$0x1] }
  0x3a   : > { %v583_v27 = vrot.slane %v582_v14, 4  ;;  %v677_v32 = vrot.slane %v675_v25, 5  ;;  %v685_v33 = vshrl.u32 %v341_v9, 16  ;;  %v691_v34 = vshll.u32 %v342_v17, 16 }
  0x3b   : > { %v3680_v37 = vpack.c.b16 %v756_v26, %v755_v21  ;;  %v593_v41 = vrot.slane %v592_v28, 4  ;;  %v683_v42 = vrot.slane %v681_v30, 5  ;;  %v384_v52 = vshrl.u32 %v3678_v35, 16  ;;  %v3721_v28 = vld [vmem:[%s3567_s29 + $0x78] sm:$0xf] }
  0x3c   : > { %v588_v40 = vsel %vm3594_vm3, %v583_v27, %v587_v8  ;;  %v678_v45 = vor.u32 %v677_v32, %v674_v31  ;;  %v687_v46 = vrot.slane %v685_v33, 4  ;;  %v693_v50 = vrot.slane %v691_v34, 5  ;;  %v3725_v34 = vld [vmem:[%s3567_s29 + $0x7c] sm:$0xf] }
  0x3d   : > { %v763_v44 = vunpack.c.l.b16 %v588_v40  ;;  %3010 = vmatmul.msk.bf16.gmra.mxu1 %vm793_vm4, %v3680_v37  ;;  %v598_v49 = vsel %vm3594_vm3, %v593_v41, %v597_v16  ;;  %v387_v53 = vshll.u32 %v3678_v35, 16  ;;  %v393_v57 = vshll.u32 %v3685_v43, 16 }
  0x3e   : > { %v764_v54 = vunpack.c.l.b16 %v598_v49  ;;  %v679_v55 = vrot.slane %v678_v45, 4  ;;  %v688_v56 = vor.u32 %v687_v46, %v683_v42  ;;  %v386_v59 = vrot.slane %v384_v52, 4 }
  0x3f   : > { %v389_v60 = vrot.slane %v387_v53, 5  ;;  %v397_v63 = vshrl.u32 %v3685_v43, 16  ;;  %v403_v0 = vshll.u32 %v3688_v48, 16  ;;  %v395_v7 = vrot.slane %v393_v57, 5 }
  0x40   : > { %v3705_v4 = vpack.c.b16 %v764_v54, %v763_v44  ;;  %v684_v5 = vsel %vm3594_vm3, %v679_v55, %v683_v42  ;;  %v689_v6 = vrot.slane %v688_v56, 4  ;;  %v504_v17 = vshrl.u32 %v3698_v58, 16 }
  0x41   : > { %v771_v8 = vunpack.c.l.b16 %v684_v5  ;;  %v390_v9 = vor.u32 %v389_v60, %v386_v59  ;;  %v399_v13 = vrot.slane %v397_v63, 4  ;;  %v405_v14 = vrot.slane %v403_v0, 5 }
  0x42   : > { %3014 = vmatmul.msk.bf16.gmra.mxu2 %vm793_vm4, %v3705_v4  ;;  %v694_v16 = vsel %vm3594_vm3, %v689_v6, %v693_v50  ;;  %v507_v20 = vshll.u32 %v3698_v58, 16  ;;  %v513_v21 = vshll.u32 %v3703_v3, 16  ;;  %v517_v27 = vshrl.u32 %v3703_v3, 16  ;;  %v3732_v50 = vld [vmem:[%s3567_s29 + $0x80] sm:$0x1] }
  0x43   : > { %v772_v22 = vunpack.c.l.b16 %v694_v16  ;;  %v391_v25 = vrot.slane %v390_v9, 4  ;;  %v400_v26 = vor.u32 %v399_v13, %v395_v7  ;;  %v506_v30 = vrot.slane %v504_v17, 4  ;;  %v3751_v16 = vld [vmem:[%s3567_s29 + $0xac] sm:$0xf]  ;;  %v3754_v17 = vld [vmem:[%s3567_s29 + $0xb0] sm:$0x1] }
  0x44   : > { %v509_v31 = vrot.slane %v507_v20, 5  ;;  %v515_v32 = vrot.slane %v513_v21, 5  ;;  %v523_v33 = vshll.u32 %v3710_v15, 16  ;;  %v519_v44 = vrot.slane %v517_v27, 4  ;;  %4966 = vst [vmem:[#allocation12_spill] sm:$0xff] %v3751_v16 }
  0x45   : > { %v3727_v40 = vpack.c.b16 %v772_v22, %v771_v8  ;;  %v396_v41 = vsel %vm3594_vm3, %v391_v25, %v395_v7  ;;  %v401_v42 = vrot.slane %v400_v26, 4  ;;  %v600_v52 = vshrl.u32 %v3721_v28, 16  ;;  %v3744_v8 = vld [vmem:[%s3567_s29 + $0xa8] sm:$0xf]  ;;  %4967 = vst [vmem:[#allocation13_spill] sm:$0xff] %v3754_v17 }
  0x46   : > { %v747_v45 = vunpack.c.l.b16 %v396_v41  ;;  %v510_v46 = vor.u32 %v509_v31, %v506_v30  ;;  %v525_v49 = vrot.slane %v523_v33, 5  ;;  %v520_v54 = vor.u32 %v519_v44, %v515_v32  ;;  %4965 = vst [vmem:[#allocation11_spill] sm:$0xff] %v3744_v8 }
  0x47   : > { %4964 = vst [vmem:[#allocation10_spill] sm:$0xff] %v3727_v40  ;;  %3018 = vmatmul.msk.bf16.gmra.mxu3 %vm793_vm4, %v3727_v40  ;;  %v406_v53 = vsel %vm3594_vm3, %v401_v42, %v405_v14  ;;  %v603_v55 = vshll.u32 %v3721_v28, 16  ;;  %v609_v56 = vshll.u32 %v3725_v34, 16  ;;  %v602_v60 = vrot.slane %v600_v52, 4  ;;  %v3768_v52 = vld [vmem:[%s3567_s29 + $0x18] sm:$0xf] }
  0x48   : > { %v748_v57 = vunpack.c.l.b16 %v406_v53  ;;  %v511_v59 = vrot.slane %v510_v46, 4  ;;  %v613_v63 = vshrl.u32 %v3725_v34, 16  ;;  %v521_v0 = vrot.slane %v520_v54, 4  ;;  %v3854_v40 = vld [vmem:[%s3567_s29 + $0x24] sm:$0xf] }
  0x49   : > { %v605_v5 = vrot.slane %v603_v55, 5  ;;  %v611_v6 = vrot.slane %v609_v56, 5  ;;  %v619_v7 = vshll.u32 %v3732_v50, 16  ;;  %v696_v30 = vshrl.u32 %v3744_v8, 16  ;;  %v3773_v56 = vld [vmem:[%s3567_s29 + $0x1c] sm:$0xf] }
  0x4a   : > { %v3746_v9 = vpack.c.b16 %v748_v57, %v747_v45  ;;  %v516_v13 = vsel %vm3594_vm3, %v511_v59, %v515_v32  ;;  %v615_v14 = vrot.slane %v613_v63, 4  ;;  %v526_v20 = vsel %vm3594_vm3, %v521_v0, %v525_v49  ;;  %v3776_v57 = vld [vmem:[%s3567_s29 + $0x20] sm:$0x1] }
  0x4b   : > { %v757_v21 = vunpack.c.l.b16 %v516_v13  ;;  %v606_v22 = vor.u32 %v605_v5, %v602_v60  ;;  %v621_v25 = vrot.slane %v619_v7, 5  ;;  %v758_v26 = vunpack.c.l.b16 %v526_v20 }
  0x4c   : > { %3006 = vmatmul.msk.bf16.gmra.mxu0 %vm793_vm4, %v3746_v9  ;;  %v616_v27 = vor.u32 %v615_v14, %v611_v6  ;;  %v699_v31 = vshll.u32 %v3744_v8, 16  ;;  %v705_v33 = vshll.u32 %v3751_v16, 16  ;;  %v709_v41 = vshrl.u32 %v3751_v16, 16 }
  0x4d   : > { %v607_v32 = vrot.slane %v606_v22, 4  ;;  %v715_v42 = vshll.u32 %v3754_v17, 16  ;;  %v3765_v44 = vpack.c.b16 %v758_v26, %v757_v21  ;;  %v698_v46 = vrot.slane %v696_v30, 4  ;;  %v3788_v26 = vld [vmem:[%s3567_s29 + $0x54] sm:$0xf] }
  0x4e   : > { %v617_v45 = vrot.slane %v616_v27, 4  ;;  %v701_v49 = vrot.slane %v699_v31, 5  ;;  %v707_v54 = vrot.slane %v705_v33, 5  ;;  %v711_v55 = vrot.slane %v709_v41, 4  ;;  %v3832_v17 = vld [vmem:[%s3567_s29 + $0xb4] sm:$0xf] }
  0x4f   : > { %4968 = vst [vmem:[#allocation14_spill] sm:$0xff] %v3765_v44  ;;  %v612_v53 = vsel %vm3594_vm3, %v607_v32, %v611_v6  ;;  %3011 = vmatmul.msk.bf16.gmra.mxu1 %vm793_vm4, %v3765_v44  ;;  %v717_v0 = vrot.slane %v715_v42, 5  ;;  %v408_v6 = vshrl.u32 %v3768_v52, 16  ;;  %v411_v13 = vshll.u32 %v3768_v52, 16  ;;  %v3793_v32 = vld [vmem:[%s3567_s29 + $0x58] sm:$0xf] }
  0x50   : > { %v622_v59 = vsel %vm3594_vm3, %v617_v45, %v621_v25  ;;  %v765_v60 = vunpack.c.l.b16 %v612_v53  ;;  %v702_v63 = vor.u32 %v701_v49, %v698_v46  ;;  %v712_v7 = vor.u32 %v711_v55, %v707_v54  ;;  %v3798_v46 = vld [vmem:[%s3567_s29 + $0x5c] sm:$0x1]  ;;  %4971 = vst [vmem:[#allocation17_spill] sm:$0xff] %v3832_v17 }
  0x51   : > { %v766_v5 = vunpack.c.l.b16 %v622_v59  ;;  %v417_v20 = vshll.u32 %v3773_v56, 16  ;;  %v421_v21 = vshrl.u32 %v3773_v56, 16  ;;  %v427_v22 = vshll.u32 %v3776_v57, 16 }
  0x52   : > { %v703_v14 = vrot.slane %v702_v63, 4  ;;  %v713_v27 = vrot.slane %v712_v7, 4  ;;  %v410_v30 = vrot.slane %v408_v6, 4  ;;  %v413_v31 = vrot.slane %v411_v13, 5  ;;  %v3808_v7 = vld [vmem:[%s3567_s29 + $0x84] sm:$0xf] }
  0x53   : > { %v3790_v25 = vpack.c.b16 %v766_v5, %v765_v60  ;;  %v419_v41 = vrot.slane %v417_v20, 5  ;;  %v423_v42 = vrot.slane %v421_v21, 4  ;;  %v429_v45 = vrot.slane %v427_v22, 5  ;;  %4969 = vst [vmem:[#allocation15_spill] sm:$0xff] %v3808_v7 }
  0x54   : > { %v708_v33 = vsel %vm3594_vm3, %v703_v14, %v707_v54  ;;  %v718_v49 = vsel %vm3594_vm3, %v713_v27, %v717_v0  ;;  %v414_v55 = vor.u32 %v413_v31, %v410_v30  ;;  %v528_v59 = vshrl.u32 %v3788_v26, 16  ;;  %v3815_v30 = vld [vmem:[%s3567_s29 + $0x88] sm:$0xf] }
  0x55   : > { %3015 = vmatmul.msk.bf16.gmra.mxu2 %vm793_vm4, %v3790_v25  ;;  %v773_v53 = vunpack.c.l.b16 %v708_v33  ;;  %v774_v60 = vunpack.c.l.b16 %v718_v49  ;;  %v424_v63 = vor.u32 %v423_v42, %v419_v41  ;;  %v531_v54 = vshll.u32 %v3788_v26, 16  ;;  %v3820_v49 = vld [vmem:[%s3567_s29 + $0x8c] sm:$0x1] }
  0x56   : > { %v537_v5 = vshll.u32 %v3793_v32, 16  ;;  %v415_v6 = vrot.slane %v414_v55, 4  ;;  %v530_v13 = vrot.slane %v528_v59, 4  ;;  %v541_v14 = vshrl.u32 %v3793_v32, 16 }
  0x57   : > { %v547_v0 = vshll.u32 %v3798_v46, 16  ;;  %v3812_v20 = vpack.c.b16 %v774_v60, %v773_v53  ;;  %v425_v21 = vrot.slane %v424_v63, 4  ;;  %v533_v22 = vrot.slane %v531_v54, 5 }
  0x58   : > { %v539_v27 = vrot.slane %v537_v5, 5  ;;  %v420_v31 = vsel %vm3594_vm3, %v415_v6, %v419_v41  ;;  %v543_v33 = vrot.slane %v541_v14, 4  ;;  %v624_v55 = vshrl.u32 %v3808_v7, 16 }
  0x59   : > { %4970 = vst [vmem:[#allocation16_spill] sm:$0xff] %v3812_v20  ;;  %v549_v42 = vrot.slane %v547_v0, 5  ;;  %3019 = vmatmul.msk.bf16.gmra.mxu3 %vm793_vm4, %v3812_v20  ;;  %v430_v53 = vsel %vm3594_vm3, %v425_v21, %v429_v45  ;;  %v749_v59 = vunpack.c.l.b16 %v420_v31  ;;  %v534_v60 = vor.u32 %v533_v22, %v530_v13  ;;  %v3837_v22 = vld [vmem:[%s3567_s29 + $0xb8] sm:$0xf] }
  0x5a   : > { %v627_v63 = vshll.u32 %v3808_v7, 16  ;;  %v750_v54 = vunpack.c.l.b16 %v430_v53  ;;  %v544_v41 = vor.u32 %v543_v33, %v539_v27  ;;  %v626_v5 = vrot.slane %v624_v55, 4  ;;  %4972 = vst [vmem:[#allocation18_spill] sm:$0xff] %v3837_v22 }
  0x5b   : > { %v633_v6 = vshll.u32 %v3815_v30, 16  ;;  %v535_v14 = vrot.slane %v534_v60, 4  ;;  %v637_v8 = vshrl.u32 %v3815_v30, 16  ;;  %v643_v20 = vshll.u32 %v3820_v49, 16  ;;  %v3842_v60 = vld [vmem:[%s3567_s29 + $0xbc] sm:$0x1] }
  0x5c   : > { %v629_v0 = vrot.slane %v627_v63, 5  ;;  %v3834_v45 = vpack.c.b16 %v750_v54, %v749_v59  ;;  %v545_v21 = vrot.slane %v544_v41, 4  ;;  %4973 = vst [vmem:[#allocation19_spill] sm:$0xff] %v3842_v60  ;;  %v720_v54 = vshrl.u32 %v3832_v17, 16 }
  0x5d   : > { %v635_v13 = vrot.slane %v633_v6, 5  ;;  %v540_v31 = vsel %vm3594_vm3, %v535_v14, %v539_v27  ;;  %v639_v55 = vrot.slane %v637_v8, 4  ;;  %v645_v53 = vrot.slane %v643_v20, 5 }
  0x5e   : > { %v630_v33 = vor.u32 %v629_v0, %v626_v5  ;;  %3007 = vmatmul.msk.bf16.gmra.mxu0 %vm793_vm4, %v3834_v45  ;;  %v550_v59 = vsel %vm3594_vm3, %v545_v21, %v549_v42  ;;  %v759_v63 = vunpack.c.l.b16 %v540_v31  ;;  %v723_v41 = vshll.u32 %v3832_v17, 16 }
  0x5f   : > { %v760_v6 = vunpack.c.l.b16 %v550_v59  ;;  %v640_v5 = vor.u32 %v639_v55, %v635_v13  ;;  %v729_v8 = vshll.u32 %v3837_v22, 16  ;;  %v722_v20 = vrot.slane %v720_v54, 4 }
  0x60   : > { %v631_v27 = vrot.slane %v630_v33, 4  ;;  %v725_v14 = vrot.slane %v723_v41, 5  ;;  %v733_v0 = vshrl.u32 %v3837_v22, 16  ;;  %v739_v16 = vshll.u32 %v3842_v60, 16  ;;  %v3861_v33 = vld [vmem:[%s3567_s29 + $0x28] sm:$0xf] }
  0x61   : > { %v3856_v42 = vpack.c.b16 %v760_v6, %v759_v63  ;;  %v641_v31 = vrot.slane %v640_v5, 4  ;;  %v731_v59 = vrot.slane %v729_v8, 5  ;;  %v1179_v55 = vrot.slane %v3614_v2, 5 }
  0x62   : > { %v636_v21 = vsel %vm3594_vm3, %v631_v27, %v635_v13  ;;  %v726_v54 = vor.u32 %v725_v14, %v722_v20  ;;  %v735_v41 = vrot.slane %v733_v0, 4  ;;  %v741_v6 = vrot.slane %v739_v16, 5 }
  0x63   : > { %4974 = vst [vmem:[#allocation20_spill] sm:$0xff] %v3856_v42  ;;  %v767_v17 = vunpack.c.l.b16 %v636_v21  ;;  %3012 = vmatmul.msk.bf16.gmra.mxu1 %vm793_vm4, %v3856_v42  ;;  %v646_v63 = vsel %vm3594_vm3, %v641_v31, %v645_v53  ;;  %v432_v13 = vshrl.u32 %v3854_v40, 16  ;;  %v435_v27 = vshll.u32 %v3854_v40, 16 }
  0x64   : > { %v768_v5 = vunpack.c.l.b16 %v646_v63  ;;  %v727_v8 = vrot.slane %v726_v54, 4  ;;  %v736_v60 = vor.u32 %v735_v41, %v731_v59  ;;  %v441_v2 = vshll.u32 %v3861_v33, 16  ;;  %v3190_v54 = vld [vmem:[%s4913_s1 + $0x18] sm:$0xf]  ;;  %v3211_v41 = vld [vmem:[%s4913_s1 + $0x1c] sm:$0xf] }
  0x65   : > { %v434_v20 = vrot.slane %v432_v13, 4  ;;  %v437_v14 = vrot.slane %v435_v27, 5  ;;  %v445_v0 = vshrl.u32 %v3861_v33, 16  ;;  %v451_v21 = vshll.u32 %v3865_v39, 16 }
  0x66   : > { %v3876_v22 = vpack.c.b16 %v768_v5, %v767_v17  ;;  %v732_v16 = vsel %vm3594_vm3, %v727_v8, %v731_v59  ;;  %v737_v53 = vrot.slane %v736_v60, 4  ;;  %v443_v31 = vrot.slane %v441_v2, 5  ;;  %v3173_v17 = vld [vmem:[%s4913_s1 + $0x14] sm:$0xf]  ;;  %v3229_v60 = vld [vmem:[%s4913_s1 + $0x20] sm:$0xf] }
  0x67   : > { %v775_v63 = vunpack.c.l.b16 %v732_v16  ;;  %v438_v13 = vor.u32 %v437_v14, %v434_v20  ;;  %v447_v27 = vrot.slane %v445_v0, 4  ;;  %v453_v7 = vrot.slane %v451_v21, 5 }
  0x68   : > { %4975 = vst [vmem:[#allocation21_spill] sm:$0xff] %v3876_v22  ;;  %3016 = vmatmul.msk.bf16.gmra.mxu2 %vm793_vm4, %v3876_v22  ;;  %v742_v59 = vsel %vm3594_vm3, %v737_v53, %v741_v6  ;;  %v3101_v5 = vrot.slane %v3604_v61, 9  ;;  %v1176_v0 = vrot.slane %v3611_v1, 5  ;;  %v1949_v21 = vsel %vm842_vm0, %v3190_v54, 0 }
  0x69   : > { %v776_v8 = vunpack.c.l.b16 %v742_v59  ;;  %v439_v2 = vrot.slane %v438_v13, 4  ;;  %v448_v20 = vor.u32 %v447_v27, %v443_v31  ;;  %v2105_v16 = vsel %vm842_vm0, %v3211_v41, 0  ;;  %1958 = vmatpush.bf16.msra.mxu2 %v1949_v21  ;;  %v3251_v21 = vld [vmem:[%s3567_s29 + $0xc] sm:$0xff] }
  0x6a   : > { %v1815_v22 = vsel %vm842_vm0, %v3173_v17, 0  ;;  %v2245_v6 = vsel %vm842_vm0, %v3229_v60, 0  ;;  %v1177_v27 = vsel %vm3897_vm7, %v3101_v5, %v1176_v0  ;;  %2114 = vmatpush.bf16.msra.mxu3 %v2105_v16  ;;  %v1178_v54 = vrot.slane %v1176_v0, 4 }
  0x6b   : > { %v3906_v53 = vpack.c.b16 %v776_v8, %v775_v63  ;;  %v444_v61 = vsel %vm3594_vm3, %v439_v2, %v443_v31  ;;  %v449_v13 = vrot.slane %v448_v20, 4  ;;  %1824 = vmatpush.bf16.msra.mxu1 %v1815_v22  ;;  %2254 = vmatpush.bf16.msra.mxu0 %v2245_v6  ;;  %v3102_v41 = vrot.slane %v3678_v35, 9  ;;  %v3250_v22 = vld [vmem:[%s3567_s29] sm:$0xff]  ;;  %v3943_v6 = vld [vmem:[%s3567_s29 + $0x18] sm:$0xff] }
  0x6c   : > { %v751_v1 = vunpack.c.l.b16 %v444_v61  ;;  %v1288_v31 = vunpack.c.l.b16 %v1177_v27  ;;  %v1183_v17 = vrot.slane %v3685_v43, 5  ;;  %v1186_v60 = vrot.slane %v3688_v48, 5 }
  0x6d   : > { %3020 = vmatmul.msk.bf16.gmra.mxu3 %vm793_vm4, %v3906_v53  ;;  %v454_v63 = vsel %vm3594_vm3, %v449_v13, %v453_v7  ;;  %v1180_v5 = vsel %vm3897_vm7, %v1178_v54, %v1179_v55  ;;  %v1190_v16 = vrot.slane %v3773_v56, 5  ;;  %v3103_v61 = vrot.slane %v3768_v52, 9 }
  0x6e   : > { %v752_v59 = vunpack.c.l.b16 %v454_v63  ;;  %v1289_v8 = vunpack.c.l.b16 %v1180_v5  ;;  %v1184_v35 = vsel %vm3897_vm7, %v3102_v41, %v1183_v17  ;;  %v1185_v2 = vrot.slane %v1183_v17, 4  ;;  %v3963_v41 = vld [vmem:[%s3567_s29 + $0x24] sm:$0xff] }
  0x6f   : > { %v1290_v7 = vunpack.c.l.b16 %v1184_v35  ;;  %v1192_v13 = vrot.slane %v1190_v16, 4  ;;  %v1193_v27 = vrot.slane %v3776_v57, 5  ;;  %v1197_v57 = vrot.slane %v3861_v33, 5 }
  0x70   : > { %v3924_v20 = vpack.c.b16 %v752_v59, %v751_v1  ;;  %v1320_v0 = vpack.c.b16 %v1289_v8, %v1288_v31  ;;  %v1187_v43 = vsel %vm3897_vm7, %v1185_v2, %v1186_v60  ;;  %v3104_v63 = vrot.slane %v3854_v40, 9  ;;  %v3985_v8 = vld [vmem:[%s3567_s29 + $0x30] sm:$0xff] }
  0x71   : > { %v1291_v48 = vunpack.c.l.b16 %v1187_v43  ;;  %v1194_v56 = vsel %vm3897_vm7, %v1192_v13, %v1193_v27  ;;  %v1199_v31 = vrot.slane %v1197_v57, 4  ;;  %v1200_v17 = vrot.slane %v3865_v39, 5  ;;  %v4013_v27 = vld [vmem:[%s3567_s29 + $0x3c] sm:$0xff] }
  0x72   : > { %3008 = vmatmul.msk.bf16.gmra.mxu0 %vm793_vm4, %v3924_v20  ;;  %v1293_v54 = vunpack.c.l.b16 %v1194_v56  ;;  %v1198_v60 = vsel %vm3897_vm7, %v3104_v63, %v1197_v57  ;;  %v1204_v39 = vrot.slane %v3573_v11, 5  ;;  %v3105_v35 = vrot.slane %v3570_v10, 9 }
  0x73   : > { %3085 = vmatmul.msk.bf16.vlgmr.msrb.gmra.mxu1 %vm793_vm4, %v3250_v22  ;;  %v3931_v55 = vpack.c.b16 %v1291_v48, %v1290_v7  ;;  %v1201_v33 = vsel %vm3897_vm7, %v1199_v31, %v1200_v17  ;;  %v1294_v59 = vunpack.c.l.b16 %v1198_v60  ;;  %v1207_v7 = vrot.slane %v3576_v12, 5 }
  0x74   : > { %v1295_v5 = vunpack.c.l.b16 %v1201_v33  ;;  %v1206_v2 = vrot.slane %v1204_v39, 4  ;;  %v1211_v13 = vrot.slane %v3633_v24, 5  ;;  %v3106_v56 = vrot.slane %v3630_v23, 9 }
  0x76   : > { %v3977_v40 = vpack.c.b16 %v1295_v5, %v1294_v59  ;;  %v1208_v11 = vsel %vm3897_vm7, %v1206_v2, %v1207_v7  ;;  %v1212_v24 = vsel %vm3897_vm7, %v3106_v56, %v1211_v13  ;;  %v1218_v5 = vrot.slane %v3703_v3, 5 }
  0x77   : > { %v1298_v23 = vunpack.c.l.b16 %v1212_v24  ;;  %v3107_v7 = vrot.slane %v3698_v58, 9  ;;  %v1225_v24 = vrot.slane %v3793_v32, 5 }
  0x78   : > { %3118 = vmatmul.msk.bf16.vlgmr.msrb.gmra.mxu2 %vm793_vm4, %v1320_v0  ;;  %v1205_v0 = vsel %vm3897_vm7, %v3105_v35, %v1204_v39  ;;  %v4047_v35 = vld [vmem:[%s3567_s29 + $0x48] sm:$0xff] }
  0x79   : > { %v1296_v48 = vunpack.c.l.b16 %v1205_v0  ;;  %4980 = vst [vmem:[#allocation24_spill] sm:$0xff] %v4047_v35  ;;  %v1220_v0 = vrot.slane %v1218_v5, 4 }
  0x7d   : > { %3139 = vmatmul.msk.bf16.vlgmr.msrb.gmra.mxu3 %vm793_vm4, %v3251_v21 }
  0x82   : > { %3156 = vmatmul.msk.bf16.vlgmr.msrb.gmra.mxu0 %vm793_vm4, %v3746_v9  ;;  %v1191_v9 = vsel %vm3897_vm7, %v3103_v61, %v1190_v16 }
  0x83   : > { %3086 = vmatmul.msk.bf16.gmra.mxu1 %vm793_vm4, %v3251_v21  ;;  %v1292_v1 = vunpack.c.l.b16 %v1191_v9  ;;  %v1297_v21 = vunpack.c.l.b16 %v1208_v11  ;;  %v1221_v11 = vrot.slane %v3710_v15, 5 }
  0x85   : > { %v3957_v52 = vpack.c.b16 %v1293_v54, %v1292_v1  ;;  %v4005_v12 = vpack.c.b16 %v1297_v21, %v1296_v48  ;;  %v1213_v1 = vrot.slane %v1211_v13, 4  ;;  %v1214_v54 = vrot.slane %v3638_v29, 5 }
  0x86   : > { %v1219_v21 = vsel %vm3897_vm7, %v3107_v7, %v1218_v5  ;;  %v1222_v13 = vsel %vm3897_vm7, %v1220_v0, %v1221_v11  ;;  %v3108_v5 = vrot.slane %v3788_v26, 9  ;;  %v1227_v7 = vrot.slane %v1225_v24, 4 }
  0x87   : > { %v1215_v63 = vsel %vm3897_vm7, %v1213_v1, %v1214_v54  ;;  %v1300_v56 = vunpack.c.l.b16 %v1219_v21  ;;  %v1301_v1 = vunpack.c.l.b16 %v1222_v13  ;;  %v1228_v0 = vrot.slane %v3798_v46, 5 }
  0x88   : > { %3119 = vmatmul.msk.bf16.gmra.mxu2 %vm793_vm4, %v3931_v55  ;;  %v1299_v60 = vunpack.c.l.b16 %v1215_v63  ;;  %v1226_v32 = vsel %vm3897_vm7, %v3108_v5, %v1225_v24  ;;  %v1232_v5 = vrot.slane %v3585_v19, 5 }
  0x89   : > { %v4071_v54 = vpack.c.b16 %v1301_v1, %v1300_v56  ;;  %v1229_v13 = vsel %vm3897_vm7, %v1227_v7, %v1228_v0  ;;  %v1302_v56 = vunpack.c.l.b16 %v1226_v32  ;;  %v3333_v32 = vld [vmem:[%s3567_s29 + $0x68] sm:$0x1] }
  0x8a   : > { %v4037_v33 = vpack.c.b16 %v1299_v60, %v1298_v23  ;;  %v4081_v60 = vld [vmem:[%s3567_s29 + $0x54] sm:$0xff]  ;;  %v1303_v46 = vunpack.c.l.b16 %v1229_v13  ;;  %v1235_v13 = vrot.slane %v3333_v32, 5 }
  0x8b   : > { %4983 = vst [vmem:[#allocation27_spill] sm:$0xff] %v4071_v54 }
  0x8c   : > { %4984 = vst [vmem:[#allocation28_spill] sm:$0xff] %v4081_v60 }
  0x8d   : > { %3140 = vmatmul.msk.bf16.gmra.mxu3 %vm793_vm4, %v3943_v6 }
  0x92   : > { %3157 = vmatmul.msk.bf16.gmra.mxu0 %vm793_vm4, %v3834_v45 }
  0x93   : > { %3087 = vmatmul.msk.bf16.gmra.mxu1 %vm793_vm4, %v3943_v6 }
  0x98   : > { %3120 = vmatmul.msk.bf16.gmra.mxu2 %vm793_vm4, %v3957_v52 }
  0x9d   : > { %3141 = vmatmul.msk.bf16.gmra.mxu3 %vm793_vm4, %v3963_v41 }
  0xa2   : > { %3158 = vmatmul.msk.bf16.gmra.mxu0 %vm793_vm4, %v3924_v20 }
  0xa3   : > { %3088 = vmatmul.msk.bf16.gmra.mxu1 %vm793_vm4, %v3963_v41 }
  0xa8   : > { %v3980_v22 = vpop.f32.mrf.mxu1  ;;  %3121 = vmatmul.msk.bf16.gmra.mxu2 %vm793_vm4, %v3977_v40 }
  0xad   : > { %3142 = vmatmul.msk.bf16.gmra.mxu3 %vm793_vm4, %v3985_v8 }
  0xb0   : > { %v3995_v43 = vpop.f32.mrf.mxu1 }
  0xb2   : > { %v3997_v16 = vpop.f32.mrf.mxu2  ;;  %3159 = vmatmul.msk.bf16.gmra.mxu0 %vm793_vm4, %v3606_v62 }
  0xb3   : > { %3089 = vmatmul.msk.bf16.gmra.mxu1 %vm793_vm4, %v3985_v8 }
  0xb5   : > { %v4003_v10 = vpop.f32.mrf.mxu0 }
  0xb6   : > { %v4007_v61 = vpop.f32.mrf.mxu3 }
  0xb7   : > { %4978 = vst [vmem:[#allocation22_spill] sm:$0xff] %v4007_v61 }
  0xb8   : > { %3122 = vmatmul.msk.bf16.gmra.mxu2 %vm793_vm4, %v4005_v12 }
  0xba   : > { %v4015_v9 = vpop.f32.mrf.mxu1  ;;  %v4019_v57 = vpop.f32.mrf.mxu2 }
  0xbd   : > { %3143 = vmatmul.msk.bf16.gmra.mxu3 %vm793_vm4, %v4013_v27  ;;  %v4027_v31 = vpop.f32.mrf.mxu0 }
  0xbe   : > { %v4029_v17 = vpop.f32.mrf.mxu3 }
  0xbf   : > { %4979 = vst [vmem:[#allocation23_spill] sm:$0xff] %v4029_v17 }
  0xc2   : > { %3160 = vmatmul.msk.bf16.gmra.mxu0 %vm793_vm4, %v3680_v37  ;;  %v4033_v29 = vpop.f32.mrf.mxu1 }
  0xc3   : > { %3090 = vmatmul.msk.bf16.gmra.mxu1 %vm793_vm4, %v4013_v27 }
  0xc5   : > { %v4039_v59 = vpop.f32.mrf.mxu2 }
  0xc8   : > { %3123 = vmatmul.msk.bf16.gmra.mxu2 %vm793_vm4, %v4037_v33 }
  0xc9   : > { %v4042_v39 = vpop.f32.mrf.mxu0 }
  0xca   : > { %v4049_v2 = vpop.f32.mrf.mxu3 }
  0xcb   : > { %4981 = vst [vmem:[#allocation25_spill] sm:$0xff] %v4049_v2 }
  0xcc   : > { %v4053_v48 = vpop.f32.mrf.mxu1 }
  0xcd   : > { %3144 = vmatmul.msk.bf16.gmra.mxu3 %vm793_vm4, %v4047_v35  ;;  %v4057_v3 = vpop.f32.mrf.mxu2 }
  0xd1   : > { %v4063_v58 = vpop.f32.mrf.mxu0 }
  0xd2   : > { %3161 = vmatmul.msk.bf16.gmra.mxu0 %vm793_vm4, %v3765_v44  ;;  %v4067_v15 = vpop.f32.mrf.mxu3 }
  0xd3   : > { %4982 = vst [vmem:[#allocation26_spill] sm:$0xff] %v4067_v15  ;;  %3091 = vmatmul.msk.bf16.gmra.mxu1 %vm793_vm4, %v4047_v35  ;;  %v4116_v15 = vld [vmem:[%s3567_s29 + $0x60] sm:$0xff] }
  0xd4   : > { %v4074_v63 = vpop.f32.mrf.mxu1  ;;  %4988 = vst [vmem:[#allocation32_spill] sm:$0xff] %v4116_v15 }
  0xd8   : > { %v4076_v23 = vpop.f32.mrf.mxu2  ;;  %3124 = vmatmul.msk.bf16.gmra.mxu2 %vm793_vm4, %v4071_v54 }
  0xdb   : > { %v4085_v11 = vpop.f32.mrf.mxu0 }
  0xdc   : > { %v4087_v21 = vpop.f32.mrf.mxu3 }
  0xdd   : > { %4985 = vst [vmem:[#allocation29_spill] sm:$0xff] %v4087_v21  ;;  %3145 = vmatmul.msk.bf16.gmra.mxu3 %vm793_vm4, %v4081_v60  ;;  %v4103_v21 = vpack.c.b16 %v1303_v46, %v1302_v56 }
  0xdf   : > { %4986 = vst [vmem:[#allocation30_spill] sm:$0xff] %v4103_v21 }
  0xe0   : > { %v4095_v26 = vpop.f32.mrf.mxu1  ;;  %v4097_v1 = vpop.f32.mrf.mxu2 }
  0xe2   : > { %3162 = vmatmul.msk.bf16.gmra.mxu0 %vm793_vm4, %v3856_v42  ;;  %v3334_v42 = vld [vmem:[%s3567_s29 + $0x60] sm:$0xf] }
  0xe3   : > { %3092 = vmatmul.msk.bf16.gmra.mxu1 %vm793_vm4, %v4081_v60  ;;  %v4105_v24 = vpop.f32.mrf.mxu0  ;;  %v3109_v2 = vrot.slane %v3334_v42, 9  ;;  %v1234_v60 = vrot.slane %v1232_v5, 4 }
  0xe4   : > { %v4108_v7 = vpop.f32.mrf.mxu3 }
  0xe5   : > { %4987 = vst [vmem:[#allocation31_spill] sm:$0xff] %v4108_v7  ;;  %v1233_v19 = vsel %vm3897_vm7, %v3109_v2, %v1232_v5  ;;  %v1236_v46 = vsel %vm3897_vm7, %v1234_v60, %v1235_v13  ;;  %v1239_v60 = vrot.slane %v3653_v47, 5 }
  0xe6   : > { %v1304_v17 = vunpack.c.l.b16 %v1233_v19  ;;  %v1305_v42 = vunpack.c.l.b16 %v1236_v46  ;;  %v4149_v19 = vld [vmem:[%s3567_s29 + $0x6c] sm:$0xff] }
  0xe8   : > { %3125 = vmatmul.msk.bf16.gmra.mxu2 %vm793_vm4, %v4103_v21  ;;  %v4112_v0 = vpop.f32.mrf.mxu1  ;;  %v4138_v2 = vpack.c.b16 %v1305_v42, %v1304_v17  ;;  %v1241_v17 = vrot.slane %v1239_v60, 4 }
  0xea   : > { %4990 = vst [vmem:[#allocation34_spill] sm:$0xff] %v4138_v2 }
  0xeb   : > { %v4119_v56 = vpop.f32.mrf.mxu2 }
  0xed   : > { %3146 = vmatmul.msk.bf16.gmra.mxu3 %vm793_vm4, %v4116_v15 }
  0xef   : > { %v4127_v7 = vpop.f32.mrf.mxu0 }
  0xf0   : > { %v4129_v32 = vpop.f32.mrf.mxu3  ;;  %v1075_v21 = vpop.f32.mrf.mxu1 }
  0xf1   : > { %4989 = vst [vmem:[#allocation33_spill] sm:$0xff] %v4129_v32  ;;  %v1076_v54 = vadd.f32 %v1075_v21, %v4003_v10  ;;  %v1242_v21 = vrot.slane %v3660_v51, 5  ;;  %v3110_v32 = vrot.slane %v3646_v38, 9 }
  0xf2   : > { %3163 = vmatmul.msk.bf16.gmra.mxu0 %vm793_vm4, %v3625_v18 }
  0xf3   : > { %v4134_v44 = vpop.f32.mrf.mxu2  ;;  %3093 = vmatmul.msk.bf16.gmra.mxu1 %vm793_vm4, %v4116_v15  ;;  %v1240_v47 = vsel %vm3897_vm7, %v3110_v32, %v1239_v60 }
  0xf4   : > { %v1306_v61 = vunpack.c.l.b16 %v1240_v47 }
  0xf7   : > { %v4141_v5 = vpop.f32.mrf.mxu0 }
  0xf8   : > { %v4143_v13 = vpop.f32.mrf.mxu3  ;;  %3126 = vmatmul.msk.bf16.gmra.mxu2 %vm793_vm4, %v4138_v2  ;;  %v1077_v10 = vpop.f32.mrf.mxu1 }
  0xf9   : > { %4991 = vst [vmem:[#allocation35_spill] sm:$0xff] %v4143_v13  ;;  %v1078_v46 = vadd.f32 %v1077_v10, %v4027_v31  ;;  %v1243_v13 = vsel %vm3897_vm7, %v1241_v17, %v1242_v21  ;;  %v1246_v21 = vrot.slane %v3725_v34, 5 }
  0xfa   : > { %v1307_v35 = vunpack.c.l.b16 %v1243_v13  ;;  %v1249_v13 = vrot.slane %v3732_v50, 5 }
  0xfb   : > { %v1396_v42 = vpop.f32.mrf.mxu2 }
  0xfc   : > { %v1476_v18 = vadd.f32 %v1396_v42, %v1076_v54  ;;  %v4166_v10 = vpack.c.b16 %v1307_v35, %v1306_v61  ;;  %v4173_v42 = vld [vmem:[%s3567_s29 + $0x78] sm:$0xff] }
  0xfd   : > { %3147 = vmatmul.msk.bf16.gmra.mxu3 %vm793_vm4, %v4149_v19 }
  0xff   : > { %v1686_v2 = vpop.f32.mrf.mxu0 }
 0x100   : > { %v1530_v51 = vpop.f32.mrf.mxu3  ;;  %v1080_v15 = vpop.f32.mrf.mxu1 }
 0x101   : > { %v1610_v31 = vadd.f32 %v1530_v51, %v1476_v18  ;;  %v1081_v38 = vadd.f32 %v1080_v15, %v4042_v39 }
 0x102   : > { %3164 = vmatmul.msk.bf16.gmra.mxu0 %vm793_vm4, %v3705_v4 }
 0x103   : > { %v1398_v54 = vpop.f32.mrf.mxu2  ;;  %3094 = vmatmul.msk.bf16.gmra.mxu1 %vm793_vm4, %v4149_v19  ;;  %v4164_v32 = vadd.f32 %v1686_v2, %v1610_v31  ;;  %v3111_v2 = vrot.slane %v3721_v28, 9 }
 0x104   : > { %v1477_v60 = vadd.f32 %v1398_v54, %v1078_v46  ;;  %v1248_v46 = vrot.slane %v1246_v21, 4 }
 0x105   : > { %v1247_v50 = vsel %vm3897_vm7, %v3111_v2, %v1246_v21 }
 0x106   : > { %v1250_v51 = vsel %vm3897_vm7, %v1248_v46, %v1249_v13  ;;  %v1256_v46 = vrot.slane %v3820_v49, 5 }
 0x107   : > { %v1688_v17 = vpop.f32.mrf.mxu0 }
 0x108   : > { %v1532_v18 = vpop.f32.mrf.mxu3  ;;  %3127 = vmatmul.msk.bf16.gmra.mxu2 %vm793_vm4, %v4166_v10  ;;  %v1082_v39 = vpop.f32.mrf.mxu1 }
 0x109   : > { %v1611_v15 = vadd.f32 %v1532_v18, %v1477_v60  ;;  %v1083_v47 = vadd.f32 %v1082_v39, %v4063_v58  ;;  %v1308_v58 = vunpack.c.l.b16 %v1247_v50  ;;  %v1309_v18 = vunpack.c.l.b16 %v1250_v51  ;;  %v4199_v50 = vld [vmem:[%s3567_s29 + $0x84] sm:$0xff] }
 0x10b   : > { %v1401_v61 = vpop.f32.mrf.mxu2  ;;  %v4177_v35 = vadd.f32 %v1688_v17, %v1611_v15  ;;  %v4192_v13 = vpack.c.b16 %v1309_v18, %v1308_v58  ;;  %v1253_v15 = vrot.slane %v3815_v30, 5 }
 0x10c   : > { %v1478_v34 = vadd.f32 %v1401_v61, %v1081_v38 }
 0x10d   : > { %3148 = vmatmul.msk.bf16.gmra.mxu3 %vm793_vm4, %v4173_v42 }
 0x10f   : > { %v1691_v31 = vpop.f32.mrf.mxu0 }
 0x110   : > { %v1535_v54 = vpop.f32.mrf.mxu3  ;;  %v1085_v60 = vpop.f32.mrf.mxu1 }
 0x111   : > { %v1612_v28 = vadd.f32 %v1535_v54, %v1478_v34  ;;  %v1086_v17 = vadd.f32 %v1085_v60, %v4085_v11 }
 0x112   : > { %3165 = vmatmul.msk.bf16.gmra.mxu0 %vm793_vm4, %v3790_v25 }
 0x113   : > { %v1403_v38 = vpop.f32.mrf.mxu2  ;;  %3095 = vmatmul.msk.bf16.gmra.mxu1 %vm793_vm4, %v4173_v42  ;;  %v4190_v21 = vadd.f32 %v1691_v31, %v1612_v28  ;;  %v4992_v31 = vld [vmem:[#allocation15_spill] sm:$0xff] }
 0x114   : > { %v1479_v39 = vadd.f32 %v1403_v38, %v1083_v47  ;;  %v3112_v54 = vrot.slane %v4992_v31, 9  ;;  %v1255_v47 = vrot.slane %v1253_v15, 4 }
 0x116   : > { %v1254_v49 = vsel %vm3897_vm7, %v3112_v54, %v1253_v15  ;;  %v1257_v18 = vsel %vm3897_vm7, %v1255_v47, %v1256_v46  ;;  %v3335_v54 = vld [vmem:[%s3567_s29 + $0x94] sm:$0xf] }
 0x117   : > { %v1693_v2 = vpop.f32.mrf.mxu0  ;;  %v1260_v47 = vrot.slane %v3335_v54, 5 }
 0x118   : > { %v1537_v61 = vpop.f32.mrf.mxu3  ;;  %3128 = vmatmul.msk.bf16.gmra.mxu2 %vm793_vm4, %v4192_v13  ;;  %v1087_v11 = vpop.f32.mrf.mxu1 }
 0x119   : > { %v1613_v34 = vadd.f32 %v1537_v61, %v1479_v39  ;;  %v1088_v51 = vadd.f32 %v1087_v11, %v4105_v24  ;;  %v1310_v39 = vunpack.c.l.b16 %v1254_v49  ;;  %v1311_v61 = vunpack.c.l.b16 %v1257_v18 }
 0x11b   : > { %v1406_v60 = vpop.f32.mrf.mxu2  ;;  %v4203_v58 = vadd.f32 %v1693_v2, %v1613_v34  ;;  %v4218_v31 = vpack.c.b16 %v1311_v61, %v1310_v39 }
 0x11c   : > { %v1480_v30 = vadd.f32 %v1406_v60, %v1086_v17  ;;  %v4994_v17 = vld [vmem:[#allocation21_spill] sm:$0xff] }
 0x11d   : > { %4993 = vst [vmem:[#allocation15_spill] sm:$0xff] %v4203_v58  ;;  %3149 = vmatmul.msk.bf16.gmra.mxu3 %vm793_vm4, %v4199_v50 }
 0x11e   : > { %4996 = vst [vmem:[#allocation37_spill] sm:$0xff] %v4218_v31 }
 0x11f   : > { %v1696_v28 = vpop.f32.mrf.mxu0 }
 0x120   : > { %v1540_v24 = vpop.f32.mrf.mxu3  ;;  %v1090_v38 = vpop.f32.mrf.mxu1 }
 0x121   : > { %v1614_v11 = vadd.f32 %v1540_v24, %v1480_v30  ;;  %v1091_v2 = vadd.f32 %v1090_v38, %v4127_v7  ;;  %v3336_v30 = vld [vmem:[%s3567_s29 + $0x98] sm:$0x1]  ;;  %v4225_v38 = vld [vmem:[%s3567_s29 + $0x90] sm:$0xff] }
 0x122   : > { %3166 = vmatmul.msk.bf16.gmra.mxu0 %vm793_vm4, %v4994_v17  ;;  %v1263_v49 = vrot.slane %v3336_v30, 5  ;;  %4997 = vst [vmem:[#allocation38_spill] sm:$0xff] %v4225_v38 }
 0x123   : > { %v1408_v34 = vpop.f32.mrf.mxu2  ;;  %3096 = vmatmul.msk.bf16.gmra.mxu1 %vm793_vm4, %v4199_v50  ;;  %v4216_v15 = vadd.f32 %v1696_v28, %v1614_v11  ;;  %v3337_v28 = vld [vmem:[%s3567_s29 + $0x90] sm:$0xf] }
 0x124   : > { %v1481_v46 = vadd.f32 %v1408_v34, %v1088_v51  ;;  %v3113_v11 = vrot.slane %v3337_v28, 9  ;;  %v1262_v51 = vrot.slane %v1260_v47, 4 }
 0x125   : > { %4995 = vst [vmem:[#allocation36_spill] sm:$0xff] %v4216_v15 }
 0x126   : > { %v1261_v54 = vsel %vm3897_vm7, %v3113_v11, %v1260_v47  ;;  %v3338_v11 = vld [vmem:[%s3567_s29 + $0xa0] sm:$0xf] }
 0x127   : > { %v1698_v60 = vpop.f32.mrf.mxu0 }
 0x128   : > { %v1542_v7 = vpop.f32.mrf.mxu3  ;;  %3129 = vmatmul.msk.bf16.gmra.mxu2 %vm793_vm4, %v4218_v31  ;;  %v1092_v18 = vpop.f32.mrf.mxu1  ;;  %v3340_v31 = vld [vmem:[%s3567_s29 + $0x9c] sm:$0xf] }
 0x129   : > { %v1615_v24 = vadd.f32 %v1542_v7, %v1481_v46  ;;  %v1093_v58 = vadd.f32 %v1092_v18, %v4141_v5  ;;  %v1264_v46 = vsel %vm3897_vm7, %v1262_v51, %v1263_v49  ;;  %v1312_v18 = vunpack.c.l.b16 %v1261_v54 }
 0x12a   : > { %v1313_v28 = vunpack.c.l.b16 %v1264_v46  ;;  %v1267_v51 = vrot.slane %v3338_v11, 5  ;;  %v3339_v46 = vld [vmem:[%s3567_s29 + $0xa4] sm:$0x1] }
 0x12b   : > { %v1411_v39 = vpop.f32.mrf.mxu2  ;;  %v4229_v61 = vadd.f32 %v1698_v60, %v1615_v24  ;;  %v4999_v60 = vld [vmem:[#allocation9_spill] sm:$0xff] }
 0x12c   : > { %v1482_v34 = vadd.f32 %v1411_v39, %v1091_v2  ;;  %v4243_v49 = vpack.c.b16 %v1313_v28, %v1312_v18 }
 0x12d   : > { %4998 = vst [vmem:[#allocation39_spill] sm:$0xff] %v4229_v61  ;;  %3150 = vmatmul.msk.bf16.gmra.mxu3 %vm793_vm4, %v4225_v38 }
 0x12e   : > { %5001 = vst [vmem:[#allocation41_spill] sm:$0xff] %v4243_v49 }
 0x12f   : > { %v1701_v30 = vpop.f32.mrf.mxu0 }
 0x130   : > { %v1545_v7 = vpop.f32.mrf.mxu3  ;;  %v1095_v5 = vpop.f32.mrf.mxu1 }
 0x131   : > { %v1616_v15 = vadd.f32 %v1545_v7, %v1482_v34  ;;  %v1270_v7 = vrot.slane %v3339_v46, 5 }
 0x132   : > { %3167 = vmatmul.msk.bf16.gmra.mxu0 %vm793_vm4, %v4999_v60  ;;  %v4250_v60 = vld [vmem:[%s3567_s29 + $0x9c] sm:$0xff] }
 0x133   : > { %v1413_v2 = vpop.f32.mrf.mxu2  ;;  %3097 = vmatmul.msk.bf16.gmra.mxu1 %vm793_vm4, %v4225_v38  ;;  %v4241_v47 = vadd.f32 %v1701_v30, %v1616_v15  ;;  %5002 = vst [vmem:[#allocation42_spill] sm:$0xff] %v4250_v60  ;;  %v3114_v38 = vrot.slane %v3340_v31, 9  ;;  %v1269_v15 = vrot.slane %v1267_v51, 4 }
 0x134   : > { %v1483_v24 = vadd.f32 %v1413_v2, %v1093_v58  ;;  %v1096_v58 = vadd.f32 %v1095_v5, %v3980_v22  ;;  %v5004_v5 = vld [vmem:[#allocation10_spill] sm:$0xff] }
 0x135   : > { %5000 = vst [vmem:[#allocation40_spill] sm:$0xff] %v4241_v47  ;;  %v1268_v2 = vsel %vm3897_vm7, %v3114_v38, %v1267_v51 }
 0x136   : > { %v1314_v31 = vunpack.c.l.b16 %v1268_v2 }
 0x137   : > { %v1703_v39 = vpop.f32.mrf.mxu0 }
 0x138   : > { %v1547_v54 = vpop.f32.mrf.mxu3  ;;  %3130 = vmatmul.msk.bf16.gmra.mxu2 %vm793_vm4, %v4243_v49  ;;  %v1097_v34 = vpop.f32.mrf.mxu1 }
 0x139   : > { %v1617_v61 = vadd.f32 %v1547_v54, %v1483_v24  ;;  %v1271_v24 = vsel %vm3897_vm7, %v1269_v15, %v1270_v7  ;;  %v5007_v15 = vld [vmem:[#allocation12_spill] sm:$0xff] }
 0x13a   : > { %v1315_v47 = vunpack.c.l.b16 %v1271_v24  ;;  %v5008_v24 = vld [vmem:[#allocation13_spill] sm:$0xff] }
 0x13b   : > { %v1416_v30 = vpop.f32.mrf.mxu2  ;;  %v4254_v18 = vadd.f32 %v1703_v39, %v1617_v61  ;;  %v1098_v61 = vadd.f32 %v1097_v34, %v3995_v43  ;;  %v4276_v34 = vld [vmem:[%s3567_s29 + $0xa8] sm:$0xff] }
 0x13c   : > { %v1484_v28 = vadd.f32 %v1416_v30, %v1096_v58  ;;  %v4269_v7 = vpack.c.b16 %v1315_v47, %v1314_v31  ;;  %v1274_v58 = vrot.slane %v5007_v15, 5  ;;  %5009 = vst [vmem:[#allocation12_spill] sm:$0xff] %v4276_v34 }
 0x13d   : > { %5003 = vst [vmem:[#allocation43_spill] sm:$0xff] %v4254_v18  ;;  %3151 = vmatmul.msk.bf16.gmra.mxu3 %vm793_vm4, %v4250_v60  ;;  %v5010_v18 = vld [vmem:[#allocation11_spill] sm:$0xff] }
 0x13e   : > { %5006 = vst [vmem:[#allocation45_spill] sm:$0xff] %v4269_v7 }
 0x13f   : > { %v1706_v11 = vpop.f32.mrf.mxu0 }
 0x140   : > { %v1550_v54 = vpop.f32.mrf.mxu3  ;;  %v1100_v46 = vpop.f32.mrf.mxu1 }
 0x141   : > { %v1618_v22 = vadd.f32 %v1550_v54, %v1484_v28  ;;  %v1277_v54 = vrot.slane %v5008_v24, 5 }
 0x142   : > { %3168 = vmatmul.msk.bf16.gmra.mxu0 %vm793_vm4, %v5004_v5  ;;  %v3115_v5 = vrot.slane %v5010_v18, 9 }
 0x143   : > { %v1418_v39 = vpop.f32.mrf.mxu2  ;;  %3098 = vmatmul.msk.bf16.gmra.mxu1 %vm793_vm4, %v4250_v60  ;;  %v4267_v38 = vadd.f32 %v1706_v11, %v1618_v22  ;;  %v1276_v11 = vrot.slane %v1274_v58, 4  ;;  %v1101_v22 = vadd.f32 %v1100_v46, %v4015_v9 }
 0x144   : > { %v1485_v51 = vadd.f32 %v1418_v39, %v1098_v61  ;;  %v1275_v39 = vsel %vm3897_vm7, %v3115_v5, %v1274_v58  ;;  %v4294_v5 = vld [vmem:[%s3567_s29 + $0xc0] sm:$0xf] }
 0x145   : > { %5005 = vst [vmem:[#allocation44_spill] sm:$0xff] %v4267_v38  ;;  %v1316_v24 = vunpack.c.l.b16 %v1275_v39  ;;  %v5012_v38 = vld [vmem:[#allocation16_spill] sm:$0xff]  ;;  %v1643_v39 = vshrl.u32 %v4294_v5, 16 }
 0x146   : > { %5013 = vst [vmem:[#allocation11_spill] sm:$0xff] %v4294_v5 }
 0x147   : > { %v1708_v30 = vpop.f32.mrf.mxu0 }
 0x148   : > { %v1552_v2 = vpop.f32.mrf.mxu3  ;;  %3131 = vmatmul.msk.bf16.gmra.mxu2 %vm793_vm4, %v4269_v7  ;;  %v1102_v28 = vpop.f32.mrf.mxu1 }
 0x149   : > { %v1619_v43 = vadd.f32 %v1552_v2, %v1485_v51  ;;  %v1278_v51 = vsel %vm3897_vm7, %v1276_v11, %v1277_v54 }
 0x14a   : > { %v1317_v9 = vunpack.c.l.b16 %v1278_v51 }
 0x14b   : > { %v1421_v47 = vpop.f32.mrf.mxu2  ;;  %v4280_v31 = vadd.f32 %v1708_v30, %v1619_v43  ;;  %v1103_v30 = vadd.f32 %v1102_v28, %v4033_v29  ;;  %v1646_v29 = vshll.u32 %v4294_v5, 16 }
 0x14c   : > { %v1486_v61 = vadd.f32 %v1421_v47, %v1101_v22  ;;  %v4298_v11 = vpack.c.b16 %v1317_v9, %v1316_v24  ;;  %v4301_v22 = vld [vmem:[%s3567_s29 + $0xc4] sm:$0xf]  ;;  %v5017_v47 = vld [vmem:[#allocation18_spill] sm:$0xff]  ;;  %v5018_v24 = vld [vmem:[#allocation19_spill] sm:$0xff] }
 0x14d   : > { %5011 = vst [vmem:[#allocation13_spill] sm:$0xff] %v4280_v31  ;;  %3152 = vmatmul.msk.bf16.gmra.mxu3 %vm793_vm4, %v4276_v34  ;;  %v1652_v28 = vshll.u32 %v4301_v22, 16  ;;  %v1284_v9 = vrot.slane %v5018_v24, 5  ;;  %v1648_v7 = vrot.slane %v1646_v29, 5 }
 0x14e   : > { %5015 = vst [vmem:[#allocation47_spill] sm:$0xff] %v4298_v11 }
 0x14f   : > { %v1711_v15 = vpop.f32.mrf.mxu0  ;;  %5016 = vst [vmem:[#allocation48_spill] sm:$0xff] %v4301_v22 }
 0x150   : > { %v1555_v18 = vpop.f32.mrf.mxu3  ;;  %v1105_v2 = vpop.f32.mrf.mxu1 }
 0x151   : > { %v1620_v46 = vadd.f32 %v1555_v18, %v1486_v61  ;;  %v1281_v61 = vrot.slane %v5017_v47, 5  ;;  %v1656_v18 = vshrl.u32 %v4301_v22, 16  ;;  %v1106_v5 = vadd.f32 %v1105_v2, %v4053_v48 }
 0x152   : > { %3169 = vmatmul.msk.bf16.gmra.mxu0 %vm793_vm4, %v5012_v38  ;;  %v1645_v38 = vrot.slane %v1643_v39, 4  ;;  %v1654_v22 = vrot.slane %v1652_v28, 5 }
 0x153   : > { %v1423_v43 = vpop.f32.mrf.mxu2  ;;  %3099 = vmatmul.msk.bf16.gmra.mxu1 %vm793_vm4, %v4276_v34  ;;  %v4296_v58 = vadd.f32 %v1711_v15, %v1620_v46  ;;  %v1658_v60 = vrot.slane %v1656_v18, 4 }
 0x154   : > { %v1487_v54 = vadd.f32 %v1423_v43, %v1103_v30  ;;  %v4312_v30 = vld [vmem:[%s3567_s29 + $0xb4] sm:$0xff]  ;;  %v5019_v43 = vld [vmem:[#allocation17_spill] sm:$0xff]  ;;  %v1649_v2 = vor.u32 %v1648_v7, %v1645_v38 }
 0x155   : > { %5014 = vst [vmem:[#allocation46_spill] sm:$0xff] %v4296_v58  ;;  %v3116_v47 = vrot.slane %v5019_v43, 9  ;;  %v1283_v58 = vrot.slane %v1281_v61, 4  ;;  %v1659_v39 = vor.u32 %v1658_v60, %v1654_v22 }
 0x157   : > { %v1713_v51 = vpop.f32.mrf.mxu0  ;;  %v1660_v38 = vrot.slane %v1659_v39, 4 }
 0x158   : > { %v1557_v31 = vpop.f32.mrf.mxu3  ;;  %3132 = vmatmul.msk.bf16.gmra.mxu2 %vm793_vm4, %v4298_v11  ;;  %v1107_v15 = vpop.f32.mrf.mxu1  ;;  %v4319_v11 = vld [vmem:[%s3567_s29 + $0xc8] sm:$0x1] }
 0x159   : > { %v1621_v46 = vadd.f32 %v1557_v31, %v1487_v54  ;;  %v1282_v31 = vsel %vm3897_vm7, %v3116_v47, %v1281_v61  ;;  %v1285_v54 = vsel %vm3897_vm7, %v1283_v58, %v1284_v9  ;;  %v1662_v29 = vshll.u32 %v4319_v11, 16 }
 0x15a   : > { %v1318_v18 = vunpack.c.l.b16 %v1282_v31  ;;  %v1108_v24 = vadd.f32 %v1107_v15, %v4074_v63  ;;  %v1650_v58 = vrot.slane %v1649_v2, 4 }
 0x15b   : > { %v1426_v34 = vpop.f32.mrf.mxu2  ;;  %v4316_v49 = vadd.f32 %v1713_v51, %v1621_v46  ;;  %v1664_v60 = vrot.slane %v1662_v29, 5 }
 0x15c   : > { %v1488_v17 = vadd.f32 %v1426_v34, %v1106_v5  ;;  %v1319_v34 = vunpack.c.l.b16 %v1285_v54  ;;  %v4344_v54 = vld [vmem:[%s3567_s29 + $0xc0] sm:$0xff] }
 0x15d   : > { %3153 = vmatmul.msk.bf16.gmra.mxu3 %vm793_vm4, %v4312_v30  ;;  %v1665_v63 = vsel %vm3594_vm3, %v1660_v38, %v1664_v60 }
 0x15e   : > { %v4335_v46 = vpack.c.b16 %v1319_v34, %v1318_v18  ;;  %v1669_v39 = vunpack.c.l.b16 %v1665_v63 }
 0x15f   : > { %v1716_v48 = vpop.f32.mrf.mxu0 }
 0x160   : > { %v1560_v28 = vpop.f32.mrf.mxu3  ;;  %v1110_v51 = vpop.f32.mrf.mxu1 }
 0x161   : > { %v1622_v5 = vadd.f32 %v1560_v28, %v1488_v17  ;;  %v1655_v17 = vsel %vm3594_vm3, %v1650_v58, %v1654_v22 }
 0x162   : > { %3170 = vmatmul.msk.bf16.gmra.mxu0 %vm793_vm4, %v3906_v53  ;;  %v1668_v2 = vunpack.c.l.b16 %v1655_v17 }
 0x163   : > { %v1428_v61 = vpop.f32.mrf.mxu2  ;;  %3100 = vmatmul.msk.bf16.gmra.mxu1 %vm793_vm4, %v4312_v30  ;;  %v4333_v7 = vadd.f32 %v1716_v48, %v1622_v5  ;;  %v1111_v48 = vadd.f32 %v1110_v51, %v4095_v26 }
 0x164   : > { %v1489_v9 = vadd.f32 %v1428_v61, %v1108_v24  ;;  %v4351_v22 = vpack.c.b16 %v1669_v39, %v1668_v2 }
 0x167   : > { %v1718_v43 = vpop.f32.mrf.mxu0 }
 0x168   : > { %v1562_v15 = vpop.f32.mrf.mxu3  ;;  %3133 = vmatmul.msk.bf16.gmra.mxu2 %vm793_vm4, %v4335_v46  ;;  %v1112_v47 = vpop.f32.mrf.mxu1 }
 0x169   : > { %v1623_v31 = vadd.f32 %v1562_v15, %v1489_v9  ;;  %v1113_v26 = vadd.f32 %v1112_v47, %v4112_v0 }
 0x16b   : > { %v1431_v29 = vpop.f32.mrf.mxu2  ;;  %v4347_v28 = vadd.f32 %v1718_v43, %v1623_v31 }
 0x16c   : > { %v1490_v18 = vadd.f32 %v1431_v29, %v1111_v48 }
 0x16d   : > { %3154 = vmatmul.msk.bf16.gmra.mxu3 %vm793_vm4, %v4344_v54 }
 0x16f   : > { %v1721_v34 = vpop.f32.mrf.mxu0 }
 0x170   : > { %v1565_v5 = vpop.f32.mrf.mxu3  ;;  %v1115_v24 = vpop.f32.mrf.mxu1 }
 0x171   : > { %v1624_v61 = vadd.f32 %v1565_v5, %v1490_v18  ;;  %v1116_v63 = vadd.f32 %v1115_v24, %v3997_v16 }
 0x172   : > { %3171 = vmatmul.msk.bf16.gmra.mxu0 %vm793_vm4, %v4351_v22 }
 0x173   : > { %v1433_v51 = vpop.f32.mrf.mxu2  ;;  %3174 = vmatmul.msk.bf16.vlgmr.msra.gmra.mxu1 %vm793_vm4, %v3931_v55  ;;  %v4358_v58 = vadd.f32 %v1721_v34, %v1624_v61 }
 0x174   : > { %v1491_v38 = vadd.f32 %v1433_v51, %v1113_v26 }
 0x177   : > { %v1723_v60 = vpop.f32.mrf.mxu0 }
 0x178   : > { %v1567_v9 = vpop.f32.mrf.mxu3  ;;  %3195 = vmatmul.msk.bf16.vlgmr.msra.gmra.mxu2 %vm793_vm4, %v3943_v6  ;;  %v1117_v43 = vpop.f32.mrf.mxu1 }
 0x179   : > { %v1625_v17 = vadd.f32 %v1567_v9, %v1491_v38  ;;  %v1118_v6 = vadd.f32 %v1117_v43, %v4019_v57 }
 0x17b   : > { %v1436_v15 = vpop.f32.mrf.mxu2  ;;  %v4363_v31 = vadd.f32 %v1723_v60, %v1625_v17 }
 0x17c   : > { %v1492_v0 = vadd.f32 %v1436_v15, %v1116_v63 }
 0x17d   : > { %3212 = vmatmul.msk.bf16.vlgmr.msra.gmra.mxu3 %vm793_vm4, %v3834_v45 }
 0x17f   : > { %v1726_v55 = vpop.f32.mrf.mxu0 }
 0x180   : > { %v1570_v47 = vpop.f32.mrf.mxu3  ;;  %v1120_v48 = vpop.f32.mrf.mxu1 }
 0x181   : > { %v1626_v2 = vadd.f32 %v1570_v47, %v1492_v0  ;;  %v1121_v24 = vadd.f32 %v1120_v48, %v4039_v59 }
 0x182   : > { %3230 = vmatmul.msk.bf16.vlgmr.msra.gmra.mxu0 %vm793_vm4, %v3957_v52 }
 0x183   : > { %v1438_v39 = vpop.f32.mrf.mxu2  ;;  %3175 = vmatmul.msk.bf16.gmra.mxu1 %vm793_vm4, %v3957_v52  ;;  %v4372_v16 = vadd.f32 %v1726_v55, %v1626_v2 }
 0x184   : > { %v1493_v29 = vadd.f32 %v1438_v39, %v1118_v6 }
 0x187   : > { %v1728_v18 = vpop.f32.mrf.mxu0 }
 0x188   : > { %v1572_v34 = vpop.f32.mrf.mxu3  ;;  %3196 = vmatmul.msk.bf16.gmra.mxu2 %vm793_vm4, %v3963_v41  ;;  %v1122_v45 = vpop.f32.mrf.mxu1 }
 0x189   : > { %v1627_v5 = vadd.f32 %v1572_v34, %v1493_v29  ;;  %v1123_v41 = vadd.f32 %v1122_v45, %v4057_v3 }
 0x18b   : > { %v1441_v61 = vpop.f32.mrf.mxu2  ;;  %v4377_v26 = vadd.f32 %v1728_v18, %v1627_v5 }
 0x18c   : > { %v1494_v57 = vadd.f32 %v1441_v61, %v1121_v24 }
 0x18d   : > { %3213 = vmatmul.msk.bf16.gmra.mxu3 %vm793_vm4, %v3924_v20 }
 0x18f   : > { %v1731_v52 = vpop.f32.mrf.mxu0 }
 0x190   : > { %v1575_v51 = vpop.f32.mrf.mxu3  ;;  %v1125_v38 = vpop.f32.mrf.mxu1 }
 0x191   : > { %v1628_v60 = vadd.f32 %v1575_v51, %v1494_v57  ;;  %v1126_v0 = vadd.f32 %v1125_v38, %v4076_v23 }
 0x192   : > { %3231 = vmatmul.msk.bf16.gmra.mxu0 %vm793_vm4, %v3977_v40 }
 0x193   : > { %v1443_v9 = vpop.f32.mrf.mxu2  ;;  %3176 = vmatmul.msk.bf16.gmra.mxu1 %vm793_vm4, %v3977_v40  ;;  %v4386_v59 = vadd.f32 %v1731_v52, %v1628_v60 }
 0x194   : > { %v1495_v43 = vadd.f32 %v1443_v9, %v1123_v41 }
 0x197   : > { %v1733_v17 = vpop.f32.mrf.mxu0 }
 0x198   : > { %v1577_v63 = vpop.f32.mrf.mxu3  ;;  %3197 = vmatmul.msk.bf16.gmra.mxu2 %vm793_vm4, %v3985_v8  ;;  %v1127_v20 = vpop.f32.mrf.mxu1 }
 0x199   : > { %v1629_v15 = vadd.f32 %v1577_v63, %v1495_v43  ;;  %v1128_v8 = vadd.f32 %v1127_v20, %v4097_v1  ;;  %v5020_v43 = vld [vmem:[#allocation24_spill] sm:$0xff]  ;;  %v5021_v63 = vld [vmem:[#allocation22_spill] sm:$0xff] }
 0x19b   : > { %v1446_v55 = vpop.f32.mrf.mxu2  ;;  %v4391_v47 = vadd.f32 %v1733_v17, %v1629_v15 }
 0x19c   : > { %v1496_v3 = vadd.f32 %v1446_v55, %v1126_v0  ;;  %v5022_v55 = vld [vmem:[#allocation14_spill] sm:$0xff] }
 0x19d   : > { %3214 = vmatmul.msk.bf16.gmra.mxu3 %vm793_vm4, %v3606_v62 }
 0x19f   : > { %v1736_v40 = vpop.f32.mrf.mxu0 }
 0x1a0   : > { %v1580_v48 = vpop.f32.mrf.mxu3  ;;  %v1130_v2 = vpop.f32.mrf.mxu1 }
 0x1a1   : > { %v1630_v6 = vadd.f32 %v1580_v48, %v1496_v3  ;;  %v1131_v5 = vadd.f32 %v1130_v2, %v4119_v56  ;;  %v5023_v2 = vld [vmem:[#allocation27_spill] sm:$0xff] }
 0x1a2   : > { %3232 = vmatmul.msk.bf16.gmra.mxu0 %vm793_vm4, %v4005_v12 }
 0x1a3   : > { %v1448_v39 = vpop.f32.mrf.mxu2  ;;  %3177 = vmatmul.msk.bf16.gmra.mxu1 %vm793_vm4, %v4005_v12  ;;  %v4400_v23 = vadd.f32 %v1736_v40, %v1630_v6  ;;  %v5024_v6 = vld [vmem:[#allocation23_spill] sm:$0xff] }
 0x1a4   : > { %v1497_v29 = vadd.f32 %v1448_v39, %v1128_v8 }
 0x1a7   : > { %v1738_v18 = vpop.f32.mrf.mxu0 }
 0x1a8   : > { %v1582_v34 = vpop.f32.mrf.mxu3  ;;  %3198 = vmatmul.msk.bf16.gmra.mxu2 %vm793_vm4, %v4013_v27  ;;  %v1132_v62 = vpop.f32.mrf.mxu1 }
 0x1a9   : > { %v1631_v45 = vadd.f32 %v1582_v34, %v1497_v29  ;;  %v1133_v27 = vadd.f32 %v1132_v62, %v4134_v44 }
 0x1ab   : > { %v1451_v24 = vpop.f32.mrf.mxu2  ;;  %v4405_v61 = vadd.f32 %v1738_v18, %v1631_v45  ;;  %v5025_v45 = vld [vmem:[#allocation28_spill] sm:$0xff] }
 0x1ac   : > { %v1498_v1 = vadd.f32 %v1451_v24, %v1131_v5 }
 0x1ad   : > { %3215 = vmatmul.msk.bf16.gmra.mxu3 %vm793_vm4, %v3680_v37 }
 0x1af   : > { %v1741_v12 = vpop.f32.mrf.mxu0 }
 0x1b0   : > { %v1585_v57 = vpop.f32.mrf.mxu3  ;;  %v1135_v52 = vpop.f32.mrf.mxu1 }
 0x1b1   : > { %v1632_v51 = vadd.f32 %v1585_v57, %v1498_v1  ;;  %v1136_v20 = vadd.f32 %v1135_v52, %v5021_v63  ;;  %v5026_v1 = vld [vmem:[#allocation25_spill] sm:$0xff] }
 0x1b2   : > { %3233 = vmatmul.msk.bf16.gmra.mxu0 %vm793_vm4, %v4037_v33 }
 0x1b3   : > { %v1453_v38 = vpop.f32.mrf.mxu2  ;;  %3178 = vmatmul.msk.bf16.gmra.mxu1 %vm793_vm4, %v4037_v33  ;;  %v4414_v56 = vadd.f32 %v1741_v12, %v1632_v51 }
 0x1b4   : > { %v1499_v60 = vadd.f32 %v1453_v38, %v1133_v27  ;;  %v5027_v27 = vld [vmem:[#allocation20_spill] sm:$0xff] }
 0x1b7   : > { %v1743_v41 = vpop.f32.mrf.mxu0 }
 0x1b8   : > { %v1587_v9 = vpop.f32.mrf.mxu3  ;;  %3199 = vmatmul.msk.bf16.gmra.mxu2 %vm793_vm4, %v5020_v43  ;;  %v1137_v37 = vpop.f32.mrf.mxu1  ;;  %v5028_v43 = vld [vmem:[#allocation30_spill] sm:$0xff] }
 0x1b9   : > { %v1633_v17 = vadd.f32 %v1587_v9, %v1499_v60  ;;  %v1138_v8 = vadd.f32 %v1137_v37, %v5024_v6  ;;  %v5029_v37 = vld [vmem:[#allocation26_spill] sm:$0xff] }
 0x1bb   : > { %v1456_v15 = vpop.f32.mrf.mxu2  ;;  %v4419_v0 = vadd.f32 %v1743_v41, %v1633_v17 }
 0x1bc   : > { %v1500_v44 = vadd.f32 %v1456_v15, %v1136_v20 }
 0x1bd   : > { %3216 = vmatmul.msk.bf16.gmra.mxu3 %vm793_vm4, %v5022_v55 }
 0x1bf   : > { %v1746_v33 = vpop.f32.mrf.mxu0 }
 0x1c0   : > { %v1590_v3 = vpop.f32.mrf.mxu3  ;;  %v1140_v40 = vpop.f32.mrf.mxu1 }
 0x1c1   : > { %v1634_v48 = vadd.f32 %v1590_v3, %v1500_v44  ;;  %v1141_v12 = vadd.f32 %v1140_v40, %v5026_v1  ;;  %v5034_v1 = vld [vmem:[#allocation31_spill] sm:$0xff] }
 0x1c2   : > { %3234 = vmatmul.msk.bf16.gmra.mxu0 %vm793_vm4, %v5023_v2 }
 0x1c3   : > { %v1458_v39 = vpop.f32.mrf.mxu2  ;;  %3179 = vmatmul.msk.bf16.gmra.mxu1 %vm793_vm4, %v5023_v2  ;;  %v4428_v29 = vadd.f32 %v1746_v33, %v1634_v48  ;;  %v5030_v33 = vld [vmem:[#allocation32_spill] sm:$0xff]  ;;  %v5031_v48 = vld [vmem:[#allocation29_spill] sm:$0xff] }
 0x1c4   : > { %v1501_v18 = vadd.f32 %v1458_v39, %v1138_v8 }
 0x1c7   : > { %v1748_v34 = vpop.f32.mrf.mxu0 }
 0x1c8   : > { %v1592_v62 = vpop.f32.mrf.mxu3  ;;  %3200 = vmatmul.msk.bf16.gmra.mxu2 %vm793_vm4, %v5025_v45  ;;  %v1142_v5 = vpop.f32.mrf.mxu1 }
 0x1c9   : > { %v1635_v24 = vadd.f32 %v1592_v62, %v1501_v18  ;;  %v1143_v17 = vadd.f32 %v1142_v5, %v5029_v37  ;;  %v5032_v18 = vld [vmem:[#allocation8_spill] sm:$0xff] }
 0x1cb   : > { %v1461_v57 = vpop.f32.mrf.mxu2  ;;  %v4433_v52 = vadd.f32 %v1748_v34, %v1635_v24  ;;  %v5033_v24 = vld [vmem:[#allocation34_spill] sm:$0xff] }
 0x1cc   : > { %v1502_v51 = vadd.f32 %v1461_v57, %v1141_v12 }
 0x1cd   : > { %3217 = vmatmul.msk.bf16.gmra.mxu3 %vm793_vm4, %v5027_v27 }
 0x1cf   : > { %v1751_v38 = vpop.f32.mrf.mxu0 }
 0x1d0   : > { %v1595_v60 = vpop.f32.mrf.mxu3  ;;  %v1145_v41 = vpop.f32.mrf.mxu1 }
 0x1d1   : > { %v1636_v9 = vadd.f32 %v1595_v60, %v1502_v51  ;;  %v1146_v2 = vadd.f32 %v1145_v41, %v5031_v48 }
 0x1d2   : > { %3235 = vmatmul.msk.bf16.gmra.mxu0 %vm793_vm4, %v5028_v43 }
 0x1d3   : > { %v1463_v63 = vpop.f32.mrf.mxu2  ;;  %3180 = vmatmul.msk.bf16.gmra.mxu1 %vm793_vm4, %v5028_v43  ;;  %v4442_v20 = vadd.f32 %v1751_v38, %v1636_v9  ;;  %v5035_v43 = vld [vmem:[#allocation33_spill] sm:$0xff] }
 0x1d4   : > { %v1503_v15 = vadd.f32 %v1463_v63, %v1143_v17 }
 0x1d7   : > { %v1753_v44 = vpop.f32.mrf.mxu0 }
 0x1d8   : > { %v1597_v55 = vpop.f32.mrf.mxu3  ;;  %3201 = vmatmul.msk.bf16.gmra.mxu2 %vm793_vm4, %v5030_v33  ;;  %v1147_v3 = vpop.f32.mrf.mxu1 }
 0x1d9   : > { %v1637_v40 = vadd.f32 %v1597_v55, %v1503_v15  ;;  %v1148_v12 = vadd.f32 %v1147_v3, %v5034_v1 }
 0x1db   : > { %v1466_v6 = vpop.f32.mrf.mxu2  ;;  %v4447_v8 = vadd.f32 %v1753_v44, %v1637_v40  ;;  %v5036_v40 = vld [vmem:[#allocation35_spill] sm:$0xff] }
 0x1dc   : > { %v1504_v39 = vadd.f32 %v1466_v6, %v1146_v2 }
 0x1dd   : > { %3218 = vmatmul.msk.bf16.gmra.mxu3 %vm793_vm4, %v5032_v18 }
 0x1df   : > { %v1756_v34 = vpop.f32.mrf.mxu0 }
 0x1e0   : > { %v1600_v62 = vpop.f32.mrf.mxu3  ;;  %v1150_v45 = vpop.f32.mrf.mxu1 }
 0x1e1   : > { %v1638_v5 = vadd.f32 %v1600_v62, %v1504_v39  ;;  %v1151_v37 = vadd.f32 %v1150_v45, %v5035_v43 }
 0x1e2   : > { %3236 = vmatmul.msk.bf16.gmra.mxu0 %vm793_vm4, %v5033_v24 }
 0x1e3   : > { %v1468_v57 = vpop.f32.mrf.mxu2  ;;  %3181 = vmatmul.msk.bf16.gmra.mxu1 %vm793_vm4, %v5033_v24  ;;  %v4456_v51 = vadd.f32 %v1756_v34, %v1638_v5 }
 0x1e4   : > { %v1505_v27 = vadd.f32 %v1468_v57, %v1148_v12 }
 0x1e7   : > { %v1758_v38 = vpop.f32.mrf.mxu0 }
 0x1e8   : > { %v1602_v60 = vpop.f32.mrf.mxu3  ;;  %3202 = vmatmul.msk.bf16.gmra.mxu2 %vm793_vm4, %v4149_v19  ;;  %v1152_v41 = vpop.f32.mrf.mxu1 }
 0x1e9   : > { %v1639_v9 = vadd.f32 %v1602_v60, %v1505_v27  ;;  %v1153_v19 = vadd.f32 %v1152_v41, %v5036_v40 }
 0x1eb   : > { %v1471_v17 = vpop.f32.mrf.mxu2  ;;  %v4461_v63 = vadd.f32 %v1758_v38, %v1639_v9 }
 0x1ec   : > { %v1506_v15 = vadd.f32 %v1471_v17, %v1151_v37 }
 0x1ed   : > { %3219 = vmatmul.msk.bf16.gmra.mxu3 %vm793_vm4, %v3705_v4 }
 0x1ef   : > { %v1761_v44 = vpop.f32.mrf.mxu0 }
 0x1f0   : > { %v1605_v55 = vpop.f32.mrf.mxu3  ;;  %v1826_v33 = vpop.f32.mrf.mxu1 }
 0x1f1   : > { %v1640_v3 = vadd.f32 %v1605_v55, %v1506_v15  ;;  %v1906_v62 = vadd.f32 %v1826_v33, %v4164_v32  ;;  %v5037_v33 = vld [vmem:[#allocation21_spill] sm:$0xff] }
 0x1f2   : > { %3237 = vmatmul.msk.bf16.gmra.mxu0 %vm793_vm4, %v4166_v10 }
 0x1f3   : > { %v1473_v48 = vpop.f32.mrf.mxu2  ;;  %3182 = vmatmul.msk.bf16.gmra.mxu1 %vm793_vm4, %v4166_v10  ;;  %v4470_v2 = vadd.f32 %v1761_v44, %v1640_v3 }
 0x1f4   : > { %v1507_v6 = vadd.f32 %v1473_v48, %v1153_v19 }
 0x1f7   : > { %v1763_v39 = vpop.f32.mrf.mxu0 }
 0x1f8   : > { %v1607_v18 = vpop.f32.mrf.mxu3  ;;  %3203 = vmatmul.msk.bf16.gmra.mxu2 %vm793_vm4, %v4173_v42  ;;  %v1828_v4 = vpop.f32.mrf.mxu1 }
 0x1f9   : > { %v1641_v34 = vadd.f32 %v1607_v18, %v1507_v6  ;;  %v1907_v27 = vadd.f32 %v1828_v4, %v4177_v35 }
 0x1fb   : > { %v1960_v45 = vpop.f32.mrf.mxu2  ;;  %v4475_v5 = vadd.f32 %v1763_v39, %v1641_v34  ;;  %v5038_v34 = vld [vmem:[#allocation37_spill] sm:$0xff] }
 0x1fc   : > { %v2040_v10 = vadd.f32 %v1960_v45, %v1906_v62  ;;  %v5039_v45 = vld [vmem:[#allocation15_spill] sm:$0xff] }
 0x1fd   : > { %3220 = vmatmul.msk.bf16.gmra.mxu3 %vm793_vm4, %v3790_v25 }
 0x1ff   : > { %v2256_v24 = vpop.f32.mrf.mxu0 }
 0x200   : > { %v2116_v1 = vpop.f32.mrf.mxu3  ;;  %v1831_v12 = vpop.f32.mrf.mxu1 }
 0x201   : > { %v2196_v57 = vadd.f32 %v2116_v1, %v2040_v10  ;;  %v1908_v37 = vadd.f32 %v1831_v12, %v4190_v21 }
 0x202   : > { %3238 = vmatmul.msk.bf16.gmra.mxu0 %vm793_vm4, %v4192_v13 }
 0x203   : > { %v2336_v42 = vadd.f32 %v2256_v24, %v2196_v57  ;;  %v1962_v38 = vpop.f32.mrf.mxu2  ;;  %3183 = vmatmul.msk.bf16.gmra.mxu1 %vm793_vm4, %v4192_v13 }
 0x204   : > { %v2041_v25 = vadd.f32 %v1962_v38, %v1907_v27 }
 0x205   : > { %v2368_v32 = vpack.c.bf16 %v2336_v42, %v2336_v42  ;;  %v2665_v9 = vmul.f32 %v2336_v42, %v2336_v42  ;;  %v2594_v15 = vsel %vm2593_vm9, %v2336_v42, 0.0 }
 0x207   : > { %v2258_v60 = vpop.f32.mrf.mxu0  ;;  %2465 = vrot.lane.b32.xlu0 %v2368_v32, %s3453_s27  ;;  %2401 = vst.msk [vmem:[%s4490_s25] sm:$0xf] %vm2400_vm8, %v2368_v32  ;;  %v2697_v19 = vsel %vm2593_vm9, %v2665_v9, 0.0 }
 0x208   : > { %v2118_v35 = vpop.f32.mrf.mxu3  ;;  %3204 = vmatmul.msk.bf16.gmra.mxu2 %vm793_vm4, %v4199_v50  ;;  %v1833_v13 = vpop.f32.mrf.mxu1 }
 0x209   : > { %v2197_v41 = vadd.f32 %v2118_v35, %v2041_v25  ;;  %v1909_v10 = vadd.f32 %v1833_v13, %v5039_v45  ;;  %v5040_v35 = vld [vmem:[#allocation38_spill] sm:$0xff] }
 0x20b   : > { %v2337_v43 = vadd.f32 %v2258_v60, %v2197_v41  ;;  %v1965_v17 = vpop.f32.mrf.mxu2 }
 0x20c   : > { %v2042_v3 = vadd.f32 %v1965_v17, %v1908_v37 }
 0x20d   : > { %v2595_v44 = vsel %vm2593_vm9, %v2337_v43, 0.0  ;;  %v2666_v55 = vmul.f32 %v2337_v43, %v2337_v43  ;;  %3221 = vmatmul.msk.bf16.gmra.mxu3 %vm793_vm4, %v5037_v33  ;;  %v2369_v40 = vpack.c.bf16 %v2337_v43, %v2337_v43  ;;  %v5041_v43 = vld [vmem:[#allocation36_spill] sm:$0xff] }
 0x20e   : > { %v2596_v50 = vadd.f32 %v2595_v44, %v2594_v15 }
 0x20f   : > { %v2698_v48 = vsel %vm2593_vm9, %v2666_v55, 0.0  ;;  %v2261_v6 = vpop.f32.mrf.mxu0  ;;  %2467 = vrot.lane.b32.xlu0 %v2369_v40, %s3453_s27  ;;  %2402 = vst.msk [vmem:[%s4490_s25 + $0x4] sm:$0xf] %vm2400_vm8, %v2369_v40  ;;  %v5042_v55 = vld [vmem:[#allocation9_spill] sm:$0xff] }
 0x210   : > { %v2699_v21 = vadd.f32 %v2698_v48, %v2697_v19  ;;  %v2121_v39 = vpop.f32.mrf.mxu3  ;;  %v1836_v18 = vpop.f32.mrf.mxu1 }
 0x211   : > { %v2198_v4 = vadd.f32 %v2121_v39, %v2042_v3  ;;  %v1910_v37 = vadd.f32 %v1836_v18, %v5041_v43  ;;  %v5043_v18 = vld [vmem:[#allocation41_spill] sm:$0xff] }
 0x212   : > { %3239 = vmatmul.msk.bf16.gmra.mxu0 %vm793_vm4, %v5038_v34 }
 0x213   : > { %v2338_v62 = vadd.f32 %v2261_v6, %v2198_v4  ;;  %v1967_v24 = vpop.f32.mrf.mxu2  ;;  %3184 = vmatmul.msk.bf16.gmra.mxu1 %vm793_vm4, %v5038_v34  ;;  %v5044_v34 = vld [vmem:[#allocation39_spill] sm:$0xff] }
 0x214   : > { %v2043_v57 = vadd.f32 %v1967_v24, %v1909_v10 }
 0x215   : > { %v2597_v1 = vsel %vm2593_vm9, %v2338_v62, 0.0  ;;  %v2667_v12 = vmul.f32 %v2338_v62, %v2338_v62  ;;  %v2370_v42 = vpack.c.bf16 %v2338_v62, %v2338_v62 }
 0x216   : > { %v2598_v27 = vadd.f32 %v2597_v1, %v2596_v50 }
 0x217   : > { %v2700_v38 = vsel %vm2593_vm9, %v2667_v12, 0.0  ;;  %v2263_v25 = vpop.f32.mrf.mxu0  ;;  %2469 = vrot.lane.b32.xlu1 %v2370_v42, %s3453_s27  ;;  %2403 = vst.msk [vmem:[%s4490_s25 + $0x8] sm:$0xf] %vm2400_vm8, %v2370_v42 }
 0x218   : > { %v2701_v32 = vadd.f32 %v2700_v38, %v2699_v21  ;;  %v2123_v60 = vpop.f32.mrf.mxu3  ;;  %3205 = vmatmul.msk.bf16.gmra.mxu2 %vm793_vm4, %v5040_v35  ;;  %v1838_v13 = vpop.f32.mrf.mxu1 }
 0x219   : > { %v2199_v41 = vadd.f32 %v2123_v60, %v2043_v57  ;;  %v1911_v62 = vadd.f32 %v1838_v13, %v5044_v34 }
 0x21b   : > { %v2339_v9 = vadd.f32 %v2263_v25, %v2199_v41  ;;  %v1970_v17 = vpop.f32.mrf.mxu2  ;;  %v5046_v41 = vld [vmem:[#allocation40_spill] sm:$0xff] }
 0x21c   : > { %v2044_v33 = vadd.f32 %v1970_v17, %v1910_v37 }
 0x21d   : > { %v2599_v15 = vsel %vm2593_vm9, %v2339_v9, 0.0  ;;  %v2668_v44 = vmul.f32 %v2339_v9, %v2339_v9  ;;  %3222 = vmatmul.msk.bf16.gmra.mxu3 %vm793_vm4, %v5042_v55  ;;  %v2371_v3 = vpack.c.bf16 %v2339_v9, %v2339_v9 }
 0x21e   : > { %v2600_v40 = vadd.f32 %v2599_v15, %v2598_v27  ;;  %v5047_v15 = vld [vmem:[#allocation10_spill] sm:$0xff] }
 0x21f   : > { %v2702_v50 = vsel %vm2593_vm9, %v2668_v44, 0.0  ;;  %v2266_v19 = vpop.f32.mrf.mxu0  ;;  %2471 = vrot.lane.b32.xlu1 %v2371_v3, %s3453_s27  ;;  %2404 = vst.msk [vmem:[%s4490_s25 + $0xc] sm:$0xf] %vm2400_vm8, %v2371_v3 }
 0x220   : > { %v2703_v48 = vadd.f32 %v2702_v50, %v2701_v32  ;;  %v2126_v6 = vpop.f32.mrf.mxu3  ;;  %v1841_v21 = vpop.f32.mrf.mxu1  ;;  %v5045_v32 = vld [vmem:[#allocation42_spill] sm:$0xff] }
 0x221   : > { %v2200_v39 = vadd.f32 %v2126_v6, %v2044_v33  ;;  %v1912_v9 = vadd.f32 %v1841_v21, %v5046_v41  ;;  %v5048_v21 = vld [vmem:[#allocation45_spill] sm:$0xff] }
 0x222   : > { %3240 = vmatmul.msk.bf16.gmra.mxu0 %vm793_vm4, %v5043_v18 }
 0x223   : > { %v2340_v4 = vadd.f32 %v2266_v19, %v2200_v39  ;;  %v1972_v45 = vpop.f32.mrf.mxu2  ;;  %3185 = vmatmul.msk.bf16.gmra.mxu1 %vm793_vm4, %v5043_v18  ;;  %v5049_v18 = vld [vmem:[#allocation43_spill] sm:$0xff] }
 0x224   : > { %v2045_v1 = vadd.f32 %v1972_v45, %v1911_v62 }
 0x225   : > { %v2601_v10 = vsel %vm2593_vm9, %v2340_v4, 0.0  ;;  %v2669_v24 = vmul.f32 %v2340_v4, %v2340_v4  ;;  %v2372_v12 = vpack.c.bf16 %v2340_v4, %v2340_v4 }
 0x226   : > { %v2602_v57 = vadd.f32 %v2601_v10, %v2600_v40 }
 0x227   : > { %v2704_v42 = vsel %vm2593_vm9, %v2669_v24, 0.0  ;;  %v2268_v27 = vpop.f32.mrf.mxu0  ;;  %2473 = vrot.lane.b32.xlu2 %v2372_v12, %s3453_s27  ;;  %2405 = vst.msk [vmem:[%s4490_s25 + $0x10] sm:$0xf] %vm2400_vm8, %v2372_v12 }
 0x228   : > { %v2705_v38 = vadd.f32 %v2704_v42, %v2703_v48  ;;  %v2128_v25 = vpop.f32.mrf.mxu3  ;;  %3206 = vmatmul.msk.bf16.gmra.mxu2 %vm793_vm4, %v5045_v32  ;;  %v1843_v60 = vpop.f32.mrf.mxu1 }
 0x229   : > { %v2201_v35 = vadd.f32 %v2128_v25, %v2045_v1  ;;  %v1913_v4 = vadd.f32 %v1843_v60, %v5049_v18 }
 0x22b   : > { %v2341_v13 = vadd.f32 %v2268_v27, %v2201_v35  ;;  %v1975_v43 = vpop.f32.mrf.mxu2  ;;  %v5051_v35 = vld [vmem:[#allocation44_spill] sm:$0xff] }
 0x22c   : > { %v2046_v44 = vadd.f32 %v1975_v43, %v1912_v9 }
 0x22d   : > { %v2603_v37 = vsel %vm2593_vm9, %v2341_v13, 0.0  ;;  %v2670_v17 = vmul.f32 %v2341_v13, %v2341_v13  ;;  %3223 = vmatmul.msk.bf16.gmra.mxu3 %vm793_vm4, %v5047_v15  ;;  %v2373_v55 = vpack.c.bf16 %v2341_v13, %v2341_v13 }
 0x22e   : > { %v2604_v33 = vadd.f32 %v2603_v37, %v2602_v57  ;;  %v5052_v37 = vld [vmem:[#allocation16_spill] sm:$0xff] }
 0x22f   : > { %v2706_v3 = vsel %vm2593_vm9, %v2670_v17, 0.0  ;;  %v2271_v40 = vpop.f32.mrf.mxu0  ;;  %2475 = vrot.lane.b32.xlu2 %v2373_v55, %s3453_s27  ;;  %2406 = vst.msk [vmem:[%s4490_s25 + $0x14] sm:$0xf] %vm2400_vm8, %v2373_v55 }
 0x230   : > { %v2707_v50 = vadd.f32 %v2706_v3, %v2705_v38  ;;  %v2131_v19 = vpop.f32.mrf.mxu3  ;;  %v1846_v48 = vpop.f32.mrf.mxu1  ;;  %v5050_v38 = vld [vmem:[#allocation12_spill] sm:$0xff] }
 0x231   : > { %v2202_v6 = vadd.f32 %v2131_v19, %v2046_v44  ;;  %v1914_v13 = vadd.f32 %v1846_v48, %v5051_v35  ;;  %v5053_v48 = vld [vmem:[#allocation47_spill] sm:$0xff]  ;;  %v4581_v35 = vld [vmem:[%s3567_s29 + $0xcc] sm:$0xf] }
 0x232   : > { %3241 = vmatmul.msk.bf16.gmra.mxu0 %vm793_vm4, %v5048_v21 }
 0x233   : > { %v2342_v39 = vadd.f32 %v2271_v40, %v2202_v6  ;;  %v1977_v34 = vpop.f32.mrf.mxu2  ;;  %3186 = vmatmul.msk.bf16.gmra.mxu1 %vm793_vm4, %v5048_v21  ;;  %v5054_v21 = vld [vmem:[#allocation13_spill] sm:$0xff] }
 0x234   : > { %v2047_v10 = vadd.f32 %v1977_v34, %v1913_v4 }
 0x235   : > { %v2605_v62 = vsel %vm2593_vm9, %v2342_v39, 0.0  ;;  %v2671_v45 = vmul.f32 %v2342_v39, %v2342_v39  ;;  %v2374_v24 = vpack.c.bf16 %v2342_v39, %v2342_v39 }
 0x236   : > { %v2606_v1 = vadd.f32 %v2605_v62, %v2604_v33 }
 0x237   : > { %v2708_v12 = vsel %vm2593_vm9, %v2671_v45, 0.0  ;;  %v2273_v57 = vpop.f32.mrf.mxu0  ;;  %2477 = vrot.lane.b32.xlu0 %v2374_v24, %s3453_s27  ;;  %2407 = vst.msk [vmem:[%s4490_s25 + $0x18] sm:$0xf] %vm2400_vm8, %v2374_v24 }
 0x238   : > { %v2709_v42 = vadd.f32 %v2708_v12, %v2707_v50  ;;  %v2133_v27 = vpop.f32.mrf.mxu3  ;;  %3207 = vmatmul.msk.bf16.gmra.mxu2 %vm793_vm4, %v5050_v38  ;;  %v1848_v25 = vpop.f32.mrf.mxu1 }
 0x239   : > { %v2203_v32 = vadd.f32 %v2133_v27, %v2047_v10  ;;  %v1915_v39 = vadd.f32 %v1848_v25, %v5054_v21  ;;  %v5055_v25 = vld [vmem:[#allocation46_spill] sm:$0xff]  ;;  %v5057_v21 = vld [vmem:[#allocation11_spill] sm:$0xff] }
 0x23b   : > { %v2343_v60 = vadd.f32 %v2273_v57, %v2203_v32  ;;  %v1980_v41 = vpop.f32.mrf.mxu2 }
 0x23c   : > { %v2048_v17 = vadd.f32 %v1980_v41, %v1914_v13 }
 0x23d   : > { %v2607_v9 = vsel %vm2593_vm9, %v2343_v60, 0.0  ;;  %v2672_v43 = vmul.f32 %v2343_v60, %v2343_v60  ;;  %3224 = vmatmul.msk.bf16.gmra.mxu3 %vm793_vm4, %v5052_v37  ;;  %v2375_v15 = vpack.c.bf16 %v2343_v60, %v2343_v60  ;;  %v4587_v37 = vld [vmem:[%s3567_s29 + $0xd0] sm:$0xf] }
 0x23e   : > { %v2608_v44 = vadd.f32 %v2607_v9, %v2606_v1 }
 0x23f   : > { %v2710_v55 = vsel %vm2593_vm9, %v2672_v43, 0.0  ;;  %v2276_v33 = vpop.f32.mrf.mxu0  ;;  %2479 = vrot.lane.b32.xlu1 %v2375_v15, %s3453_s27  ;;  %2408 = vst.msk [vmem:[%s4490_s25 + $0x1c] sm:$0xf] %vm2400_vm8, %v2375_v15 }
 0x240   : > { %v2711_v3 = vadd.f32 %v2710_v55, %v2709_v42  ;;  %v2136_v40 = vpop.f32.mrf.mxu3  ;;  %v1851_v50 = vpop.f32.mrf.mxu1 }
 0x241   : > { %v2204_v19 = vadd.f32 %v2136_v40, %v2048_v17  ;;  %v1916_v32 = vadd.f32 %v1851_v50, %v5055_v25 }
 0x242   : > { %3242 = vmatmul.msk.bf16.gmra.mxu0 %vm793_vm4, %v5053_v48 }
 0x243   : > { %v2344_v6 = vadd.f32 %v2276_v33, %v2204_v19  ;;  %v1982_v18 = vpop.f32.mrf.mxu2  ;;  %3187 = vmatmul.msk.bf16.gmra.mxu1 %vm793_vm4, %v5053_v48  ;;  %v2073_v33 = vshrl.u32 %v4581_v35, 16  ;;  %v2082_v19 = vshll.u32 %v4587_v37, 16  ;;  %v2086_v48 = vshrl.u32 %v4587_v37, 16 }
 0x244   : > { %v2049_v62 = vadd.f32 %v1982_v18, %v1915_v39  ;;  %v3172_v39 = vrot.slane %v5057_v21, 9 }
 0x245   : > { %v2609_v4 = vsel %vm2593_vm9, %v2344_v6, 0.0  ;;  %v2673_v34 = vmul.f32 %v2344_v6, %v2344_v6  ;;  %v2376_v45 = vpack.c.bf16 %v2344_v6, %v2344_v6 }
 0x246   : > { %v2610_v10 = vadd.f32 %v2609_v4, %v2608_v44  ;;  %v5056_v44 = vld [vmem:[#allocation48_spill] sm:$0xff] }
 0x247   : > { %v2712_v24 = vsel %vm2593_vm9, %v2673_v34, 0.0  ;;  %v2278_v1 = vpop.f32.mrf.mxu0  ;;  %2481 = vrot.lane.b32.xlu2 %v2376_v45, %s3453_s27  ;;  %2409 = vst.msk [vmem:[%s4490_s25 + $0x20] sm:$0xf] %vm2400_vm8, %v2376_v45  ;;  %v1801_v55 = vrot.slane %v5056_v44, 5  ;;  %v1804_v45 = vrot.slane %v4319_v11, 5 }
 0x248   : > { %v2713_v12 = vadd.f32 %v2712_v24, %v2711_v3  ;;  %v2138_v57 = vpop.f32.mrf.mxu3  ;;  %3208 = vmatmul.msk.bf16.gmra.mxu2 %vm793_vm4, %v4312_v30  ;;  %v1853_v42 = vpop.f32.mrf.mxu1 }
 0x249   : > { %v2205_v27 = vadd.f32 %v2138_v57, %v2049_v62  ;;  %v1917_v4 = vadd.f32 %v1853_v42, %v4316_v49  ;;  %v1803_v62 = vrot.slane %v1801_v55, 4  ;;  %v1802_v11 = vsel %vm3897_vm7, %v3172_v39, %v1801_v55 }
 0x24a   : > { %v1808_v44 = vunpack.c.l.b16 %v1802_v11 }
 0x24b   : > { %v2345_v38 = vadd.f32 %v2278_v1, %v2205_v27  ;;  %v1985_v60 = vpop.f32.mrf.mxu2  ;;  %v2084_v1 = vrot.slane %v2082_v19, 5 }
 0x24c   : > { %v2050_v9 = vadd.f32 %v1985_v60, %v1916_v32  ;;  %v4607_v32 = vld [vmem:[%s3567_s29 + $0xd4] sm:$0x1] }
 0x24d   : > { %v2611_v13 = vsel %vm2593_vm9, %v2345_v38, 0.0  ;;  %v2674_v41 = vmul.f32 %v2345_v38, %v2345_v38  ;;  %3225 = vmatmul.msk.bf16.gmra.mxu3 %vm793_vm4, %v3906_v53  ;;  %v2377_v43 = vpack.c.bf16 %v2345_v38, %v2345_v38  ;;  %v2076_v53 = vshll.u32 %v4581_v35, 16 }
 0x24e   : > { %v2612_v30 = vadd.f32 %v2611_v13, %v2610_v10  ;;  %v2075_v10 = vrot.slane %v2073_v33, 4 }
 0x24f   : > { %v2714_v17 = vsel %vm2593_vm9, %v2674_v41, 0.0  ;;  %v2281_v15 = vpop.f32.mrf.mxu0  ;;  %2483 = vrot.lane.b32.xlu0 %v2377_v43, %s3453_s27  ;;  %2410 = vst.msk [vmem:[%s4490_s25 + $0x24] sm:$0xf] %vm2400_vm8, %v2377_v43  ;;  %v2078_v24 = vrot.slane %v2076_v53, 5 }
 0x250   : > { %v2715_v3 = vadd.f32 %v2714_v17, %v2713_v12  ;;  %v2141_v40 = vpop.f32.mrf.mxu3  ;;  %v1856_v50 = vpop.f32.mrf.mxu1  ;;  %v2088_v12 = vrot.slane %v2086_v48, 4  ;;  %v2092_v17 = vshll.u32 %v4607_v32, 16 }
 0x251   : > { %v2206_v6 = vadd.f32 %v2141_v40, %v2050_v9  ;;  %v2079_v43 = vor.u32 %v2078_v24, %v2075_v10  ;;  %v1918_v55 = vadd.f32 %v1856_v50, %v4333_v7  ;;  %v2231_v7 = vrot.slane %v4587_v37, 5 }
 0x252   : > { %3243 = vmatmul.msk.bf16.gmra.mxu0 %vm793_vm4, %v4335_v46 }
 0x253   : > { %v2346_v18 = vadd.f32 %v2281_v15, %v2206_v6  ;;  %v1987_v34 = vpop.f32.mrf.mxu2  ;;  %3188 = vmatmul.msk.bf16.gmra.mxu1 %vm793_vm4, %v4335_v46  ;;  %v1805_v46 = vsel %vm3897_vm7, %v1803_v62, %v1804_v45  ;;  %v2080_v19 = vrot.slane %v2079_v43, 4  ;;  %v2233_v37 = vrot.slane %v2231_v7, 4 }
 0x254   : > { %v2051_v38 = vadd.f32 %v1987_v34, %v1917_v4  ;;  %v1809_v33 = vunpack.c.l.b16 %v1805_v46 }
 0x255   : > { %v2613_v57 = vsel %vm2593_vm9, %v2346_v18, 0.0  ;;  %v2675_v27 = vmul.f32 %v2346_v18, %v2346_v18  ;;  %v2378_v25 = vpack.c.bf16 %v2346_v18, %v2346_v18 }
 0x256   : > { %v2614_v49 = vadd.f32 %v2613_v57, %v2612_v30  ;;  %v2089_v30 = vor.u32 %v2088_v12, %v2084_v1  ;;  %v1810_v4 = vpack.c.b16 %v1809_v33, %v1808_v44  ;;  %v3228_v57 = vrot.slane %v4581_v35, 9 }
 0x257   : > { %v2716_v42 = vsel %vm2593_vm9, %v2675_v27, 0.0  ;;  %v2283_v60 = vpop.f32.mrf.mxu0  ;;  %2411 = vst.msk [vmem:[%s4490_s25 + $0x28] sm:$0xf] %vm2400_vm8, %v2378_v25  ;;  %2485 = vrot.lane.b32.xlu1 %v2378_v25, %s3453_s27 }
 0x258   : > { %v2717_v13 = vadd.f32 %v2716_v42, %v2715_v3  ;;  %v2143_v41 = vpop.f32.mrf.mxu3  ;;  %3209 = vmatmul.msk.bf16.gmra.mxu2 %vm793_vm4, %v4344_v54  ;;  %v1858_v9 = vpop.f32.mrf.mxu1  ;;  %v2090_v48 = vrot.slane %v2089_v30, 4  ;;  %v2094_v3 = vrot.slane %v2092_v17, 5  ;;  %v3267_v42 = vld [vmem:[%s3567_s29 + $0xcc] sm:$0xff]  ;;  %s4828_s29 = sshll.u32 %s2821_s15, 4  ;;  %s2826_s29 = int_to_ptr.hbm [resolvable:$true] %s4828_s29 }
 0x259   : > { %v2207_v15 = vadd.f32 %v2143_v41, %v2051_v38  ;;  %v1919_v38 = vadd.f32 %v1858_v9, %v4347_v28  ;;  %v2232_v28 = vsel %vm3897_vm7, %v3228_v57, %v2231_v7 }
 0x25a   : > { %v2095_v12 = vsel %vm3594_vm3, %v2090_v48, %v2094_v3  ;;  %v2238_v33 = vunpack.c.l.b16 %v2232_v28 }
 0x25b   : > { %v2347_v40 = vadd.f32 %v2283_v60, %v2207_v15  ;;  %v1990_v53 = vpop.f32.mrf.mxu2 }
 0x25c   : > { %v2052_v54 = vadd.f32 %v1990_v53, %v1918_v55 }
 0x25d   : > { %v2615_v6 = vsel %vm2593_vm9, %v2347_v40, 0.0  ;;  %v2676_v21 = vmul.f32 %v2347_v40, %v2347_v40  ;;  %3226 = vmatmul.msk.bf16.gmra.mxu3 %vm793_vm4, %v4351_v22  ;;  %v2379_v39 = vpack.c.bf16 %v2347_v40, %v2347_v40  ;;  %v2085_v22 = vsel %vm3594_vm3, %v2080_v19, %v2084_v1 }
 0x25e   : > { %v2616_v18 = vadd.f32 %v2615_v6, %v2614_v49  ;;  %v2234_v49 = vrot.slane %v4607_v32, 5  ;;  %v2098_v60 = vunpack.c.l.b16 %v2085_v22  ;;  %v2099_v1 = vunpack.c.l.b16 %v2095_v12 }
 0x25f   : > { %v2718_v34 = vsel %vm2593_vm9, %v2676_v21, 0.0  ;;  %v2286_v62 = vpop.f32.mrf.mxu0  ;;  %2487 = vrot.lane.b32.xlu2 %v2379_v39, %s3453_s27  ;;  %2412 = vst.msk [vmem:[%s4490_s25 + $0x2c] sm:$0xf] %vm2400_vm8, %v2379_v39 }
 0x260   : > { %v2719_v50 = vadd.f32 %v2718_v34, %v2717_v13  ;;  %v2146_v45 = vpop.f32.mrf.mxu3  ;;  %v1861_v10 = vpop.f32.mrf.mxu1  ;;  %v2235_v32 = vsel %vm3897_vm7, %v2233_v37, %v2234_v49  ;;  %v2100_v44 = vpack.c.b16 %v2099_v1, %v2098_v60 }
 0x261   : > { %v2208_v24 = vadd.f32 %v2146_v45, %v2052_v54  ;;  %v2239_v40 = vunpack.c.l.b16 %v2235_v32  ;;  %v1920_v53 = vadd.f32 %v1861_v10, %v4358_v58 }
 0x262   : > { %3244 = vmatmul.msk.bf16.gmra.mxu0 %vm793_vm4, %v1810_v4 }
 0x263   : > { %v2348_v27 = vadd.f32 %v2286_v62, %v2208_v24  ;;  %v1992_v25 = vpop.f32.mrf.mxu2  ;;  %3189 = vmatmul.msk.bf16.gmra.mxu1 %vm793_vm4, %v1810_v4  ;;  %v2240_v54 = vpack.c.b16 %v2239_v40, %v2238_v33 }
 0x264   : > { %v2053_v46 = vadd.f32 %v1992_v25, %v1919_v38 }
 0x265   : > { %v2617_v36 = vsel %vm2593_vm9, %v2348_v27, 0.0  ;;  %v2677_v11 = vmul.f32 %v2348_v27, %v2348_v27  ;;  %v2380_v13 = vpack.c.bf16 %v2348_v27, %v2348_v27 }
 0x266   : > { %v2618_v41 = vadd.f32 %v2617_v36, %v2616_v18 }
 0x267   : > { %v2720_v35 = vsel %vm2593_vm9, %v2677_v11, 0.0  ;;  %v2288_v43 = vpop.f32.mrf.mxu0  ;;  %2489 = vrot.lane.b32.xlu0 %v2380_v13, %s3453_s27  ;;  %2413 = vst.msk [vmem:[%s4490_s25 + $0x30] sm:$0xf] %vm2400_vm8, %v2380_v13 }
 0x268   : > { %v2721_v9 = vadd.f32 %v2720_v35, %v2719_v50  ;;  %v2148_v30 = vpop.f32.mrf.mxu3  ;;  %3210 = vmatmul.msk.bf16.gmra.mxu2 %vm793_vm4, %v3267_v42  ;;  %v1863_v17 = vpop.f32.mrf.mxu1 }
 0x269   : > { %v2209_v15 = vadd.f32 %v2148_v30, %v2053_v46  ;;  %v1921_v50 = vadd.f32 %v1863_v17, %v4363_v31 }
 0x26b   : > { %v2349_v55 = vadd.f32 %v2288_v43, %v2209_v15  ;;  %v1995_v19 = vpop.f32.mrf.mxu2 }
 0x26c   : > { %v2054_v14 = vadd.f32 %v1995_v19, %v1920_v53 }
 0x26d   : > { %v2619_v48 = vsel %vm2593_vm9, %v2349_v55, 0.0  ;;  %v2678_v3 = vmul.f32 %v2349_v55, %v2349_v55  ;;  %3227 = vmatmul.msk.bf16.gmra.mxu3 %vm793_vm4, %v2100_v44  ;;  %v2381_v6 = vpack.c.bf16 %v2349_v55, %v2349_v55 }
 0x26e   : > { %v2620_v21 = vadd.f32 %v2619_v48, %v2618_v41 }
 0x26f   : > { %v2722_v39 = vsel %vm2593_vm9, %v2678_v3, 0.0  ;;  %v2291_v18 = vpop.f32.mrf.mxu0  ;;  %2414 = vst.msk [vmem:[%s4490_s25 + $0x34] sm:$0xf] %vm2400_vm8, %v2381_v6  ;;  %2491 = vrot.lane.b32.xlu1 %v2381_v6, %s3453_s27 }
 0x270   : > { %v2723_v4 = vadd.f32 %v2722_v39, %v2721_v9  ;;  %v2151_v58 = vpop.f32.mrf.mxu3  ;;  %v1866_v34 = vpop.f32.mrf.mxu1 }
 0x271   : > { %v2210_v62 = vadd.f32 %v2151_v58, %v2054_v14  ;;  %v1922_v1 = vadd.f32 %v1866_v34, %v4372_v16 }
 0x272   : > { %3245 = vmatmul.msk.bf16.gmra.mxu0 %vm793_vm4, %v2240_v54 }
 0x273   : > { %v2350_v7 = vadd.f32 %v2291_v18, %v2210_v62  ;;  %v1997_v45 = vpop.f32.mrf.mxu2 }
 0x274   : > { %v2055_v22 = vadd.f32 %v1997_v45, %v1921_v50 }
 0x275   : > { %v2621_v10 = vsel %vm2593_vm9, %v2350_v7, 0.0  ;;  %v2679_v24 = vmul.f32 %v2350_v7, %v2350_v7  ;;  %v2382_v12 = vpack.c.bf16 %v2350_v7, %v2350_v7 }
 0x276   : > { %v2622_v57 = vadd.f32 %v2621_v10, %v2620_v21 }
 0x277   : > { %v2724_v27 = vsel %vm2593_vm9, %v2679_v24, 0.0  ;;  %v2293_v38 = vpop.f32.mrf.mxu0  ;;  %2493 = vrot.lane.b32.xlu2 %v2382_v12, %s3453_s27  ;;  %2415 = vst.msk [vmem:[%s4490_s25 + $0x38] sm:$0xf] %vm2400_vm8, %v2382_v12 }
 0x278   : > { %v2725_v31 = vadd.f32 %v2724_v27, %v2723_v4  ;;  %v2153_v25 = vpop.f32.mrf.mxu3  ;;  %v1868_v37 = vpop.f32.mrf.mxu1 }
 0x279   : > { %v2211_v49 = vadd.f32 %v2153_v25, %v2055_v22  ;;  %v2466_v42 = vpop.permute.xlu0 %2465  ;;  %v1923_v33 = vadd.f32 %v1868_v37, %v4377_v26 }
 0x27a   : > { %2561 = vst.msk [vmem:[%s4668_s8] sm:$0xf] %vm2400_vm8, %v2466_v42 }
 0x27b   : > { %v2351_v60 = vadd.f32 %v2293_v38, %v2211_v49  ;;  %v2000_v36 = vpop.f32.mrf.mxu2 }
 0x27c   : > { %v2056_v13 = vadd.f32 %v2000_v36, %v1922_v1 }
 0x27d   : > { %v2623_v11 = vsel %vm2593_vm9, %v2351_v60, 0.0  ;;  %v2680_v46 = vmul.f32 %v2351_v60, %v2351_v60  ;;  %v2383_v41 = vpack.c.bf16 %v2351_v60, %v2351_v60 }
 0x27e   : > { %v2624_v35 = vadd.f32 %v2623_v11, %v2622_v57 }
 0x27f   : > { %v2726_v43 = vsel %vm2593_vm9, %v2680_v46, 0.0  ;;  %v2296_v28 = vpop.f32.mrf.mxu0  ;;  %2495 = vrot.lane.b32.xlu0 %v2383_v41, %s3453_s27  ;;  %2416 = vst.msk [vmem:[%s4490_s25 + $0x3c] sm:$0xf] %vm2400_vm8, %v2383_v41 }
 0x280   : > { %v2727_v32 = vadd.f32 %v2726_v43, %v2725_v31  ;;  %v2156_v9 = vpop.f32.mrf.mxu3  ;;  %v1871_v30 = vpop.f32.mrf.mxu1 }
 0x281   : > { %v2212_v16 = vadd.f32 %v2156_v9, %v2056_v13  ;;  %v2468_v17 = vpop.permute.xlu0 %2467  ;;  %v2474_v15 = vpop.permute.xlu2 %2473  ;;  %v1924_v34 = vadd.f32 %v1871_v30, %v4386_v59 }
 0x282   : > { %2562 = vst.msk [vmem:[%s4668_s8 + $0x4] sm:$0xf] %vm2400_vm8, %v2468_v17 }
 0x283   : > { %v2352_v44 = vadd.f32 %v2296_v28, %v2212_v16  ;;  %2565 = vst.msk [vmem:[%s4668_s8 + $0x10] sm:$0xf] %vm2400_vm8, %v2474_v15  ;;  %v2002_v40 = vpop.f32.mrf.mxu2 }
 0x284   : > { %v2057_v19 = vadd.f32 %v2002_v40, %v1923_v33 }
 0x285   : > { %v2625_v55 = vsel %vm2593_vm9, %v2352_v44, 0.0  ;;  %v2681_v53 = vmul.f32 %v2352_v44, %v2352_v44  ;;  %v2384_v48 = vpack.c.bf16 %v2352_v44, %v2352_v44 }
 0x286   : > { %v2626_v3 = vadd.f32 %v2625_v55, %v2624_v35 }
 0x287   : > { %v2728_v14 = vsel %vm2593_vm9, %v2681_v53, 0.0  ;;  %v2298_v6 = vpop.f32.mrf.mxu0  ;;  %2417 = vst.msk [vmem:[%s4490_s25 + $0x40] sm:$0xf] %vm2400_vm8, %v2384_v48  ;;  %2497 = vrot.lane.b32.xlu1 %v2384_v48, %s3453_s27 }
 0x288   : > { %v2729_v21 = vadd.f32 %v2728_v14, %v2727_v32  ;;  %v2158_v26 = vpop.f32.mrf.mxu3  ;;  %v1873_v54 = vpop.f32.mrf.mxu1 }
 0x289   : > { %v2213_v39 = vadd.f32 %v2158_v26, %v2057_v19  ;;  %v2470_v18 = vpop.permute.xlu1 %2469  ;;  %v2476_v4 = vpop.permute.xlu2 %2475  ;;  %v1925_v37 = vadd.f32 %v1873_v54, %v4391_v47 }
 0x28a   : > { %2563 = vst.msk [vmem:[%s4668_s8 + $0x8] sm:$0xf] %vm2400_vm8, %v2470_v18 }
 0x28b   : > { %v2353_v58 = vadd.f32 %v2298_v6, %v2213_v39  ;;  %2566 = vst.msk [vmem:[%s4668_s8 + $0x14] sm:$0xf] %vm2400_vm8, %v2476_v4  ;;  %v2005_v62 = vpop.f32.mrf.mxu2 }
 0x28c   : > { %v2058_v45 = vadd.f32 %v2005_v62, %v1924_v34 }
 0x28d   : > { %v2627_v7 = vsel %vm2593_vm9, %v2353_v58, 0.0  ;;  %v2682_v50 = vmul.f32 %v2353_v58, %v2353_v58  ;;  %v2385_v10 = vpack.c.bf16 %v2353_v58, %v2353_v58 }
 0x28e   : > { %v2628_v24 = vadd.f32 %v2627_v7, %v2626_v3 }
 0x28f   : > { %v2730_v22 = vsel %vm2593_vm9, %v2682_v50, 0.0  ;;  %v2301_v12 = vpop.f32.mrf.mxu0  ;;  %2499 = vrot.lane.b32.xlu2 %v2385_v10, %s3453_s27  ;;  %2418 = vst.msk [vmem:[%s4490_s25 + $0x44] sm:$0xf] %vm2400_vm8, %v2385_v10 }
 0x290   : > { %v2731_v57 = vadd.f32 %v2730_v22, %v2729_v21  ;;  %v2161_v27 = vpop.f32.mrf.mxu3  ;;  %v1876_v59 = vpop.f32.mrf.mxu1 }
 0x291   : > { %v2214_v38 = vadd.f32 %v2161_v27, %v2058_v45  ;;  %v2472_v31 = vpop.permute.xlu1 %2471  ;;  %v1926_v32 = vadd.f32 %v1876_v59, %v4400_v23 }
 0x292   : > { %2564 = vst.msk [vmem:[%s4668_s8 + $0xc] sm:$0xf] %vm2400_vm8, %v2472_v31 }
 0x293   : > { %v2354_v25 = vadd.f32 %v2301_v12, %v2214_v38  ;;  %v2007_v49 = vpop.f32.mrf.mxu2 }
 0x294   : > { %v2059_v1 = vadd.f32 %v2007_v49, %v1925_v37 }
 0x295   : > { %v2629_v42 = vsel %vm2593_vm9, %v2354_v25, 0.0  ;;  %v2683_v60 = vmul.f32 %v2354_v25, %v2354_v25  ;;  %v2386_v36 = vpack.c.bf16 %v2354_v25, %v2354_v25 }
 0x296   : > { %v2630_v11 = vadd.f32 %v2629_v42, %v2628_v24 }
 0x297   : > { %v2732_v46 = vsel %vm2593_vm9, %v2683_v60, 0.0  ;;  %v2303_v13 = vpop.f32.mrf.mxu0  ;;  %2501 = vrot.lane.b32.xlu0 %v2386_v36, %s3453_s27  ;;  %2419 = vst.msk [vmem:[%s4490_s25 + $0x48] sm:$0xf] %vm2400_vm8, %v2386_v36 }
 0x298   : > { %v2733_v41 = vadd.f32 %v2732_v46, %v2731_v57  ;;  %v2163_v35 = vpop.f32.mrf.mxu3  ;;  %v1878_v43 = vpop.f32.mrf.mxu1 }
 0x299   : > { %v2215_v28 = vadd.f32 %v2163_v35, %v2059_v1  ;;  %v1927_v14 = vadd.f32 %v1878_v43, %v4405_v61 }
 0x29b   : > { %v2355_v47 = vadd.f32 %v2303_v13, %v2215_v28  ;;  %v2010_v9 = vpop.f32.mrf.mxu2 }
 0x29c   : > { %v2060_v17 = vadd.f32 %v2010_v9, %v1926_v32 }
 0x29d   : > { %v2631_v30 = vsel %vm2593_vm9, %v2355_v47, 0.0  ;;  %v2684_v16 = vmul.f32 %v2355_v47, %v2355_v47  ;;  %v2387_v15 = vpack.c.bf16 %v2355_v47, %v2355_v47 }
 0x29e   : > { %v2632_v44 = vadd.f32 %v2631_v30, %v2630_v11 }
 0x29f   : > { %v2734_v33 = vsel %vm2593_vm9, %v2684_v16, 0.0  ;;  %v2306_v40 = vpop.f32.mrf.mxu0  ;;  %2420 = vst.msk [vmem:[%s4490_s25 + $0x4c] sm:$0xf] %vm2400_vm8, %v2387_v15  ;;  %2503 = vrot.lane.b32.xlu1 %v2387_v15, %s3453_s27 }
 0x2a0   : > { %v2735_v55 = vadd.f32 %v2734_v33, %v2733_v41  ;;  %v2166_v53 = vpop.f32.mrf.mxu3  ;;  %v1881_v19 = vpop.f32.mrf.mxu1 }
 0x2a1   : > { %v2216_v23 = vadd.f32 %v2166_v53, %v2060_v17  ;;  %v2482_v48 = vpop.permute.xlu2 %2481  ;;  %v1928_v10 = vadd.f32 %v1881_v19, %v4414_v56 }
 0x2a2   : > { %2569 = vst.msk [vmem:[%s4668_s8 + $0x20] sm:$0xf] %vm2400_vm8, %v2482_v48 }
 0x2a3   : > { %v2356_v3 = vadd.f32 %v2306_v40, %v2216_v23  ;;  %v2012_v6 = vpop.f32.mrf.mxu2 }
 0x2a4   : > { %v2061_v54 = vadd.f32 %v2012_v6, %v1927_v14 }
 0x2a5   : > { %v2633_v21 = vsel %vm2593_vm9, %v2356_v3, 0.0  ;;  %v2685_v26 = vmul.f32 %v2356_v3, %v2356_v3  ;;  %v2388_v39 = vpack.c.bf16 %v2356_v3, %v2356_v3 }
 0x2a6   : > { %v2634_v18 = vadd.f32 %v2633_v21, %v2632_v44 }
 0x2a7   : > { %v2736_v4 = vsel %vm2593_vm9, %v2685_v26, 0.0  ;;  %v2308_v58 = vpop.f32.mrf.mxu0  ;;  %2505 = vrot.lane.b32.xlu2 %v2388_v39, %s3453_s27  ;;  %2421 = vst.msk [vmem:[%s4490_s25 + $0x50] sm:$0xf] %vm2400_vm8, %v2388_v39 }
 0x2a8   : > { %v2737_v34 = vadd.f32 %v2736_v4, %v2735_v55  ;;  %v2168_v62 = vpop.f32.mrf.mxu3  ;;  %v1883_v7 = vpop.f32.mrf.mxu1 }
 0x2a9   : > { %v2217_v61 = vadd.f32 %v2168_v62, %v2061_v54  ;;  %v2478_v50 = vpop.permute.xlu0 %2477  ;;  %v1929_v1 = vadd.f32 %v1883_v7, %v4419_v0 }
 0x2aa   : > { %2567 = vst.msk [vmem:[%s4668_s8 + $0x18] sm:$0xf] %vm2400_vm8, %v2478_v50 }
 0x2ab   : > { %v2357_v45 = vadd.f32 %v2308_v58, %v2217_v61  ;;  %v2015_v24 = vpop.f32.mrf.mxu2 }
 0x2ac   : > { %v2062_v57 = vadd.f32 %v2015_v24, %v1928_v10 }
 0x2ad   : > { %v2635_v22 = vsel %vm2593_vm9, %v2357_v45, 0.0  ;;  %v2686_v12 = vmul.f32 %v2357_v45, %v2357_v45  ;;  %v2389_v27 = vpack.c.bf16 %v2357_v45, %v2357_v45 }
 0x2ae   : > { %v2636_v59 = vadd.f32 %v2635_v22, %v2634_v18 }
 0x2af   : > { %v2738_v38 = vsel %vm2593_vm9, %v2686_v12, 0.0  ;;  %v2311_v31 = vpop.f32.mrf.mxu0  ;;  %2507 = vrot.lane.b32.xlu0 %v2389_v27, %s3453_s27  ;;  %2422 = vst.msk [vmem:[%s4490_s25 + $0x54] sm:$0xf] %vm2400_vm8, %v2389_v27 }
 0x2b0   : > { %v2739_v25 = vadd.f32 %v2738_v38, %v2737_v34  ;;  %v2171_v37 = vpop.f32.mrf.mxu3  ;;  %v1886_v49 = vpop.f32.mrf.mxu1 }
 0x2b1   : > { %v2218_v56 = vadd.f32 %v2171_v37, %v2062_v57  ;;  %v2480_v42 = vpop.permute.xlu1 %2479  ;;  %v1930_v17 = vadd.f32 %v1886_v49, %v4428_v29 }
 0x2b2   : > { %2568 = vst.msk [vmem:[%s4668_s8 + $0x1c] sm:$0xf] %vm2400_vm8, %v2480_v42 }
 0x2b3   : > { %v2358_v60 = vadd.f32 %v2311_v31, %v2218_v56  ;;  %v2017_v36 = vpop.f32.mrf.mxu2 }
 0x2b4   : > { %v2063_v13 = vadd.f32 %v2017_v36, %v1929_v1 }
 0x2b5   : > { %v2637_v11 = vsel %vm2593_vm9, %v2358_v60, 0.0  ;;  %v2687_v46 = vmul.f32 %v2358_v60, %v2358_v60  ;;  %v2390_v41 = vpack.c.bf16 %v2358_v60, %v2358_v60 }
 0x2b6   : > { %v2638_v35 = vadd.f32 %v2637_v11, %v2636_v59 }
 0x2b7   : > { %v2740_v43 = vsel %vm2593_vm9, %v2687_v46, 0.0  ;;  %v2313_v28 = vpop.f32.mrf.mxu0  ;;  %2423 = vst.msk [vmem:[%s4490_s25 + $0x58] sm:$0xf] %vm2400_vm8, %v2390_v41  ;;  %2509 = vrot.lane.b32.xlu1 %v2390_v41, %s3453_s27 }
 0x2b8   : > { %v2741_v47 = vadd.f32 %v2740_v43, %v2739_v25  ;;  %v2173_v32 = vpop.f32.mrf.mxu3  ;;  %v1888_v9 = vpop.f32.mrf.mxu1 }
 0x2b9   : > { %v2219_v0 = vadd.f32 %v2173_v32, %v2063_v13  ;;  %v2488_v30 = vpop.permute.xlu2 %2487  ;;  %v1931_v26 = vadd.f32 %v1888_v9, %v4433_v52 }
 0x2ba   : > { %2572 = vst.msk [vmem:[%s4668_s8 + $0x2c] sm:$0xf] %vm2400_vm8, %v2488_v30 }
 0x2bb   : > { %v2359_v16 = vadd.f32 %v2313_v28, %v2219_v0  ;;  %v2020_v15 = vpop.f32.mrf.mxu2 }
 0x2bc   : > { %v2064_v40 = vadd.f32 %v2020_v15, %v1930_v17 }
 0x2bd   : > { %v2639_v44 = vsel %vm2593_vm9, %v2359_v16, 0.0  ;;  %v2688_v33 = vmul.f32 %v2359_v16, %v2359_v16  ;;  %v2391_v55 = vpack.c.bf16 %v2359_v16, %v2359_v16 }
 0x2be   : > { %v2640_v53 = vadd.f32 %v2639_v44, %v2638_v35 }
 0x2bf   : > { %v2742_v19 = vsel %vm2593_vm9, %v2688_v33, 0.0  ;;  %v2316_v23 = vpop.f32.mrf.mxu0  ;;  %2511 = vrot.lane.b32.xlu2 %v2391_v55, %s3453_s27  ;;  %2424 = vst.msk [vmem:[%s4490_s25 + $0x5c] sm:$0xf] %vm2400_vm8, %v2391_v55 }
 0x2c0   : > { %v2743_v48 = vadd.f32 %v2742_v19, %v2741_v47  ;;  %v2176_v3 = vpop.f32.mrf.mxu3  ;;  %v1891_v14 = vpop.f32.mrf.mxu1 }
 0x2c1   : > { %v2220_v29 = vadd.f32 %v2176_v3, %v2064_v40  ;;  %v2484_v6 = vpop.permute.xlu0 %2483  ;;  %v1932_v22 = vadd.f32 %v1891_v14, %v4442_v20 }
 0x2c2   : > { %2570 = vst.msk [vmem:[%s4668_s8 + $0x24] sm:$0xf] %vm2400_vm8, %v2484_v6 }
 0x2c3   : > { %v2360_v21 = vadd.f32 %v2316_v23, %v2220_v29  ;;  %v2022_v54 = vpop.f32.mrf.mxu2 }
 0x2c4   : > { %v2065_v4 = vadd.f32 %v2022_v54, %v1931_v26 }
 0x2c5   : > { %v2641_v39 = vsel %vm2593_vm9, %v2360_v21, 0.0  ;;  %v2689_v18 = vmul.f32 %v2360_v21, %v2360_v21  ;;  %v2392_v58 = vpack.c.bf16 %v2360_v21, %v2360_v21 }
 0x2c6   : > { %v2642_v34 = vadd.f32 %v2641_v39, %v2640_v53 }
 0x2c7   : > { %v2744_v62 = vsel %vm2593_vm9, %v2689_v18, 0.0  ;;  %v2318_v7 = vpop.f32.mrf.mxu0  ;;  %2513 = vrot.lane.b32.xlu0 %v2392_v58, %s3453_s27  ;;  %2425 = vst.msk [vmem:[%s4490_s25 + $0x60] sm:$0xf] %vm2400_vm8, %v2392_v58 }
 0x2c8   : > { %v2745_v61 = vadd.f32 %v2744_v62, %v2743_v48  ;;  %v2178_v50 = vpop.f32.mrf.mxu3  ;;  %v1893_v45 = vpop.f32.mrf.mxu1 }
 0x2c9   : > { %v2221_v52 = vadd.f32 %v2178_v50, %v2065_v4  ;;  %v2486_v10 = vpop.permute.xlu1 %2485  ;;  %v1933_v36 = vadd.f32 %v1893_v45, %v4447_v8 }
 0x2ca   : > { %2571 = vst.msk [vmem:[%s4668_s8 + $0x28] sm:$0xf] %vm2400_vm8, %v2486_v10 }
 0x2cb   : > { %v2361_v24 = vadd.f32 %v2318_v7, %v2221_v52  ;;  %v2025_v12 = vpop.f32.mrf.mxu2 }
 0x2cc   : > { %v2066_v59 = vadd.f32 %v2025_v12, %v1932_v22 }
 0x2cd   : > { %v2643_v57 = vsel %vm2593_vm9, %v2361_v24, 0.0  ;;  %v2690_v27 = vmul.f32 %v2361_v24, %v2361_v24  ;;  %v2393_v38 = vpack.c.bf16 %v2361_v24, %v2361_v24 }
 0x2ce   : > { %v2644_v31 = vadd.f32 %v2643_v57, %v2642_v34 }
 0x2cf   : > { %v2746_v25 = vsel %vm2593_vm9, %v2690_v27, 0.0  ;;  %v2321_v37 = vpop.f32.mrf.mxu0  ;;  %2426 = vst.msk [vmem:[%s4490_s25 + $0x64] sm:$0xf] %vm2400_vm8, %v2393_v38  ;;  %2515 = vrot.lane.b32.xlu1 %v2393_v38, %s3453_s27 }
 0x2d0   : > { %v2747_v49 = vadd.f32 %v2746_v25, %v2745_v61  ;;  %v2181_v56 = vpop.f32.mrf.mxu3  ;;  %v1896_v60 = vpop.f32.mrf.mxu1 }
 0x2d1   : > { %v2222_v42 = vadd.f32 %v2181_v56, %v2066_v59  ;;  %v2494_v20 = vpop.permute.xlu2 %2493  ;;  %v1934_v16 = vadd.f32 %v1896_v60, %v4456_v51 }
 0x2d2   : > { %2575 = vst.msk [vmem:[%s4668_s8 + $0x38] sm:$0xf] %vm2400_vm8, %v2494_v20 }
 0x2d3   : > { %v2362_v1 = vadd.f32 %v2321_v37, %v2222_v42  ;;  %v2027_v11 = vpop.f32.mrf.mxu2 }
 0x2d4   : > { %v2067_v41 = vadd.f32 %v2027_v11, %v1933_v36 }
 0x2d5   : > { %v2645_v46 = vsel %vm2593_vm9, %v2362_v1, 0.0  ;;  %v2691_v13 = vmul.f32 %v2362_v1, %v2362_v1  ;;  %v2394_v35 = vpack.c.bf16 %v2362_v1, %v2362_v1 }
 0x2d6   : > { %v2646_v43 = vadd.f32 %v2645_v46, %v2644_v31 }
 0x2d7   : > { %v2748_v28 = vsel %vm2593_vm9, %v2691_v13, 0.0  ;;  %v2323_v47 = vpop.f32.mrf.mxu0  ;;  %2517 = vrot.lane.b32.xlu2 %v2394_v35, %s3453_s27  ;;  %2427 = vst.msk [vmem:[%s4490_s25 + $0x68] sm:$0xf] %vm2400_vm8, %v2394_v35 }
 0x2d8   : > { %v2749_v32 = vadd.f32 %v2748_v28, %v2747_v49  ;;  %v2183_v9 = vpop.f32.mrf.mxu3  ;;  %v1898_v15 = vpop.f32.mrf.mxu1 }
 0x2d9   : > { %v2223_v0 = vadd.f32 %v2183_v9, %v2067_v41  ;;  %v2490_v30 = vpop.permute.xlu0 %2489  ;;  %v1935_v6 = vadd.f32 %v1898_v15, %v4461_v63 }
 0x2da   : > { %2573 = vst.msk [vmem:[%s4668_s8 + $0x30] sm:$0xf] %vm2400_vm8, %v2490_v30 }
 0x2db   : > { %v2363_v8 = vadd.f32 %v2323_v47, %v2223_v0  ;;  %v2030_v17 = vpop.f32.mrf.mxu2 }
 0x2dc   : > { %v2068_v40 = vadd.f32 %v2030_v17, %v1934_v16 }
 0x2dd   : > { %v2647_v44 = vsel %vm2593_vm9, %v2363_v8, 0.0  ;;  %v2692_v33 = vmul.f32 %v2363_v8, %v2363_v8  ;;  %v2395_v55 = vpack.c.bf16 %v2363_v8, %v2363_v8 }
 0x2de   : > { %v2648_v53 = vadd.f32 %v2647_v44, %v2646_v43 }
 0x2df   : > { %v2750_v19 = vsel %vm2593_vm9, %v2692_v33, 0.0  ;;  %v2326_v23 = vpop.f32.mrf.mxu0  ;;  %2519 = vrot.lane.b32.xlu0 %v2395_v55, %s3453_s27  ;;  %2428 = vst.msk [vmem:[%s4490_s25 + $0x6c] sm:$0xf] %vm2400_vm8, %v2395_v55 }
 0x2e0   : > { %v2751_v48 = vadd.f32 %v2750_v19, %v2749_v32  ;;  %v2186_v3 = vpop.f32.mrf.mxu3  ;;  %v1901_v4 = vpop.f32.mrf.mxu1 }
 0x2e1   : > { %v2224_v51 = vadd.f32 %v2186_v3, %v2068_v40  ;;  %v2492_v14 = vpop.permute.xlu1 %2491  ;;  %v1936_v52 = vadd.f32 %v1901_v4, %v4470_v2 }
 0x2e2   : > { %2574 = vst.msk [vmem:[%s4668_s8 + $0x34] sm:$0xf] %vm2400_vm8, %v2492_v14 }
 0x2e3   : > { %v2364_v29 = vadd.f32 %v2326_v23, %v2224_v51  ;;  %v2032_v21 = vpop.f32.mrf.mxu2 }
 0x2e4   : > { %v2069_v39 = vadd.f32 %v2032_v21, %v1935_v6 }
 0x2e5   : > { %v2649_v26 = vsel %vm2593_vm9, %v2364_v29, 0.0  ;;  %v2693_v54 = vmul.f32 %v2364_v29, %v2364_v29  ;;  %v2396_v18 = vpack.c.bf16 %v2364_v29, %v2364_v29 }
 0x2e6   : > { %v2650_v58 = vadd.f32 %v2649_v26, %v2648_v53 }
 0x2e7   : > { %v2752_v34 = vsel %vm2593_vm9, %v2693_v54, 0.0  ;;  %v2328_v62 = vpop.f32.mrf.mxu0  ;;  %2429 = vst.msk [vmem:[%s4490_s25 + $0x70] sm:$0xf] %vm2400_vm8, %v2396_v18  ;;  %2521 = vrot.lane.b32.xlu1 %v2396_v18, %s3453_s27 }
 0x2e8   : > { %v2753_v7 = vadd.f32 %v2752_v34, %v2751_v48  ;;  %v2188_v61 = vpop.f32.mrf.mxu3  ;;  %v1903_v38 = vpop.f32.mrf.mxu1 }
 0x2e9   : > { %v2225_v63 = vadd.f32 %v2188_v61, %v2069_v39  ;;  %v2500_v50 = vpop.permute.xlu2 %2499  ;;  %v1937_v42 = vadd.f32 %v1903_v38, %v4475_v5 }
 0x2ea   : > { %2578 = vst.msk [vmem:[%s4668_s8 + $0x44] sm:$0xf] %vm2400_vm8, %v2500_v50 }
 0x2eb   : > { %v2365_v45 = vadd.f32 %v2328_v62, %v2225_v63  ;;  %v2035_v10 = vpop.f32.mrf.mxu2 }
 0x2ec   : > { %v2070_v12 = vadd.f32 %v2035_v10, %v1936_v52 }
 0x2ed   : > { %v2651_v24 = vsel %vm2593_vm9, %v2365_v45, 0.0  ;;  %v2694_v22 = vmul.f32 %v2365_v45, %v2365_v45  ;;  %v2397_v57 = vpack.c.bf16 %v2365_v45, %v2365_v45 }
 0x2ee   : > { %v2652_v27 = vadd.f32 %v2651_v24, %v2650_v58 }
 0x2ef   : > { %v2754_v59 = vsel %vm2593_vm9, %v2694_v22, 0.0  ;;  %2523 = vrot.lane.b32.xlu2 %v2397_v57, %s3453_s27  ;;  %2430 = vst.msk [vmem:[%s4490_s25 + $0x74] sm:$0xf] %vm2400_vm8, %v2397_v57  ;;  %v2331_v25 = vpop.f32.mrf.mxu0 }
 0x2f0   : > { %v2755_v31 = vadd.f32 %v2754_v59, %v2753_v7  ;;  %v2191_v37 = vpop.f32.mrf.mxu3 }
 0x2f1   : > { %v2226_v2 = vadd.f32 %v2191_v37, %v2070_v12  ;;  %v2496_v49 = vpop.permute.xlu0 %2495 }
 0x2f2   : > { %2576 = vst.msk [vmem:[%s4668_s8 + $0x3c] sm:$0xf] %vm2400_vm8, %v2496_v49 }
 0x2f3   : > { %v2366_v56 = vadd.f32 %v2331_v25, %v2226_v2  ;;  %v2037_v20 = vpop.f32.mrf.mxu2 }
 0x2f4   : > { %v2071_v36 = vadd.f32 %v2037_v20, %v1937_v42 }
 0x2f5   : > { %v2653_v60 = vsel %vm2593_vm9, %v2366_v56, 0.0  ;;  %v2695_v1 = vmul.f32 %v2366_v56, %v2366_v56  ;;  %v2398_v11 = vpack.c.bf16 %v2366_v56, %v2366_v56 }
 0x2f6   : > { %v2654_v46 = vadd.f32 %v2653_v60, %v2652_v27 }
 0x2f7   : > { %v2756_v13 = vsel %vm2593_vm9, %v2695_v1, 0.0  ;;  %2525 = vrot.lane.b32.xlu0 %v2398_v11, %s3453_s27  ;;  %2431 = vst.msk [vmem:[%s4490_s25 + $0x78] sm:$0xf] %vm2400_vm8, %v2398_v11  ;;  %v2333_v5 = vpop.f32.mrf.mxu0 }
 0x2f8   : > { %v2757_v41 = vadd.f32 %v2756_v13, %v2755_v31  ;;  %v2193_v35 = vpop.f32.mrf.mxu3 }
 0x2f9   : > { %v2227_v43 = vadd.f32 %v2193_v35, %v2071_v36  ;;  %v2498_v28 = vpop.permute.xlu1 %2497 }
 0x2fa   : > { %2577 = vst.msk [vmem:[%s4668_s8 + $0x40] sm:$0xf] %vm2400_vm8, %v2498_v28 }
 0x2fb   : > { %v2367_v47 = vadd.f32 %v2333_v5, %v2227_v43 }
 0x2fd   : > { %v2655_v32 = vsel %vm2593_vm9, %v2367_v47, 0.0  ;;  %v2696_v9 = vmul.f32 %v2367_v47, %v2367_v47  ;;  %v2399_v0 = vpack.c.bf16 %v2367_v47, %v2367_v47 }
 0x2fe   : > { %v2656_v30 = vadd.f32 %v2655_v32, %v2654_v46 }
 0x2ff   : > { %v2758_v8 = vsel %vm2593_vm9, %v2696_v9, 0.0  ;;  %2432 = vst.msk [vmem:[%s4490_s25 + $0x7c] sm:$0xf] %vm2400_vm8, %v2399_v0  ;;  %2527 = vrot.lane.b32.xlu1 %v2399_v0, %s3453_s27  ;;  %s268_s25 = scalar_lea.vmem [#allocation4], %s4810_s11 }
 0x300   : > { %v2657_v16 = vrot.slane %v2656_v30, 4  ;;  %v2759_v17 = vadd.f32 %v2758_v8, %v2757_v41  ;;  %s4826_s27 = sshll.u32 %s268_s25, 4  ;;  %s2824_s27 = int_to_ptr.vmem [resolvable:$true] %s4826_s27 }
 0x301   : > { %v2506_v15 = vpop.permute.xlu2 %2505 }
 0x302   : > { %v2658_v44 = vadd.f32 %v2657_v16, %v2656_v30  ;;  %v2760_v33 = vrot.slane %v2759_v17, 4  ;;  %2581 = vst.msk [vmem:[%s4668_s8 + $0x50] sm:$0xf] %vm2400_vm8, %v2506_v15 }
 0x304   : > { %v2659_v40 = vrot.slane %v2658_v44, 2  ;;  %v2761_v55 = vadd.f32 %v2760_v33, %v2759_v17 }
 0x306   : > { %v2660_v53 = vadd.f32 %v2659_v40, %v2658_v44  ;;  %v2762_v19 = vrot.slane %v2761_v55, 2 }
 0x308   : > { %v2661_v23 = vrot.slane %v2660_v53, 1  ;;  %v2763_v48 = vadd.f32 %v2762_v19, %v2761_v55 }
 0x309   : > { %v2502_v3 = vpop.permute.xlu0 %2501 }
 0x30a   : > { %2579 = vst.msk [vmem:[%s4668_s8 + $0x48] sm:$0xf] %vm2400_vm8, %v2502_v3  ;;  %v2662_v51 = vadd.f32 %v2661_v23, %v2660_v53  ;;  %v2764_v14 = vrot.slane %v2763_v48, 1 }
 0x30c   : > { %2664 = vst.msk [vmem:[%s262_s16] sm:$0x1] %vm2663_vm10, %v2662_v51  ;;  %v2765_v29 = vadd.f32 %v2764_v14, %v2763_v48 }
 0x30d   : > { %3368 = shalt.err (!%p3365_p5)
}
 0x30e   : > { %3272 = dma.vmem_to_hbm [thread:$0]  (%p3524_p4), %s2810_s17, 16, %s2812_s24, %s2786_s21   ;;  %2766 = vst.msk [vmem:[%s268_s25] sm:$0x1] %vm2663_vm10, %v2765_v29 }
 0x30f   : > { %s2790_s16 = scalar_lea.sflag [#allocation5], %s4810_s11  ;;  %s3383_s10 = sshra.s32 %s2826_s29, 4  ;;  %s3384_s10 = int_to_ptr.hbm [resolvable:$true] %s3383_s10 }
 0x310   : > { %s3385_s12 = scalar_lea.hbm %s3384_s10, 1  ;;  %s3389_s13 = scalar_lea.hbm %s4917_s5, 2 }
 0x311   : > { %p3386_p6 = scmp.ne.s32.totalorder %s3384_s10, %s3385_s12  ;;  %p3390_p10 = scmp.lt.s32.totalorder %s3384_s10, %s4917_s5 }
 0x312   : > { %p3391_p11 = scmp.lt.s32.totalorder %s3389_s13, %s3385_s12 }
 0x313   : > { %p3387_p7 = pnand %p3386_p6, %p3524_p4 }
 0x314   : > { %p3392_p12 = por %p3391_p11, %p3390_p10 }
 0x315   : > { %p3388_p9 = pneg %p3387_p7 }
 0x317   : > { %p3393_p13 = pnand %p3392_p12, %p3388_p9 }
 0x319   : > { %3396 = shalt.err (!%p3393_p13)
}
 0x31a   : > { %3273 = dma.vmem_to_hbm [thread:$0]  (%p3524_p4), %s2824_s27, 16, %s2826_s29, %s2790_s16   ;;  %v2504_v6 = vpop.permute.xlu1 %2503  ;;  %v2512_v21 = vpop.permute.xlu2 %2511 }
 0x31b   : > { %2580 = vst.msk [vmem:[%s4668_s8 + $0x4c] sm:$0xf] %vm2400_vm8, %v2504_v6 }
 0x31c   : > { %2584 = vst.msk [vmem:[%s4668_s8 + $0x5c] sm:$0xf] %vm2400_vm8, %v2512_v21 }
 0x321   : > { %v2508_v26 = vpop.permute.xlu0 %2507 }
 0x322   : > { %2582 = vst.msk [vmem:[%s4668_s8 + $0x54] sm:$0xf] %vm2400_vm8, %v2508_v26 }
 0x329   : > { %v2510_v54 = vpop.permute.xlu1 %2509 }
 0x32a   : > { %2583 = vst.msk [vmem:[%s4668_s8 + $0x58] sm:$0xf] %vm2400_vm8, %v2510_v54 }
 0x331   : > { %v2518_v39 = vpop.permute.xlu2 %2517 }
 0x332   : > { %2587 = vst.msk [vmem:[%s4668_s8 + $0x68] sm:$0xf] %vm2400_vm8, %v2518_v39 }
 0x339   : > { %v2514_v18 = vpop.permute.xlu0 %2513 }
 0x33a   : > { %2585 = vst.msk [vmem:[%s4668_s8 + $0x60] sm:$0xf] %vm2400_vm8, %v2514_v18 }
 0x341   : > { %v2516_v4 = vpop.permute.xlu1 %2515 }
 0x342   : > { %2586 = vst.msk [vmem:[%s4668_s8 + $0x64] sm:$0xf] %vm2400_vm8, %v2516_v4 }
 0x349   : > { %v2524_v58 = vpop.permute.xlu2 %2523 }
 0x34a   : > { %2590 = vst.msk [vmem:[%s4668_s8 + $0x74] sm:$0xf] %vm2400_vm8, %v2524_v58 }
 0x351   : > { %v2520_v34 = vpop.permute.xlu0 %2519 }
 0x352   : > { %2588 = vst.msk [vmem:[%s4668_s8 + $0x6c] sm:$0xf] %vm2400_vm8, %v2520_v34 }
 0x359   : > { %v2522_v62 = vpop.permute.xlu1 %2521 }
 0x35a   : > { %2589 = vst.msk [vmem:[%s4668_s8 + $0x70] sm:$0xf] %vm2400_vm8, %v2522_v62 }
 0x369   : > { %v2526_v7 = vpop.permute.xlu0 %2525 }
 0x36a   : > { %2591 = vst.msk [vmem:[%s4668_s8 + $0x78] sm:$0xf] %vm2400_vm8, %v2526_v7 }
 0x371   : > { %v2528_v61 = vpop.permute.xlu1 %2527 }
 0x372   : > { %2592 = vst.msk [vmem:[%s4668_s8 + $0x7c] sm:$0xf] %vm2400_vm8, %v2528_v61 }
 0x373 PF: > { %p3283_p4 = scmp.ge.s32.totalorder %s3451_s23, 2  ;;  %s2861_s28 = sand.u32 1, %s3431_s18  }
 0x374   : > { %s2862_s11 = scalar_lea.sflag [#allocation3], %s2861_s28 }
 0x375   : > { %p3277_p0 = pnand %p3283_p4, %p3531_p8 }
 0x377   : > { %p3278_p1 = pneg %p3277_p0 }
 0x379   : > { %3422 = dma.done.wait (%p3278_p1), %s2862_s11, 16  }
 0x37a   : > { %3424 = vsyncadd (%p3278_p1), %s2862_s11, 4294967280  ;;  %s2871_s17 = scalar_lea.sflag [#allocation5], %s2861_s28 }
 0x37b   : > { %3426 = dma.done.wait (%p3278_p1), %s2871_s17, 16  }
 0x37c   : > { %3428 = vsyncadd (%p3278_p1), %s2871_s17, 4294967280  ;;  %s22_s23 = sadd.s32 1, %s3451_s23   ;;  %s5058_s18 = smov %s3435_s19 }
 0x37d   : > { %p19_p2 = scmp.ge.s32.totalorder %s22_s23, 4   ;;  %s5059_s19 = smov %s3439_s20 }
 0x37e   : > { %s5060_s20 = smov %s3537_s6  ;;  %s5061_s21 = smov %s3447_s22 }
 0x37f   : > { %s5062_s22 = smov %s5064_s26  ;;  %21 = sbr.rel (!%p19_p2) target bundleno = 6 (0x6), region = 113 }
 0x384   :  { %2876 = vsyncpa [#allocation3], 1 }
 0x385   :  { %2878 = vsyncpa [#allocation3 + $0x1], 1 }
 0x386   :  { %2879 = vsyncpa [#allocation5], 1 }
 0x387   :  { %2881 = vsyncpa [#allocation5 + $0x1], 1 }

</bundles_post_ra>
